<compile_context>
chip_gen: v7x
topology: tpu7x:2x2x1
jax: 0.10.0
libtpu: 0.0.40
codegen_flags: <defaults>
</compile_context>

<pallas_src>
import functools

import jax
import jax.numpy as jnp
from jax.experimental import pallas as pl
from jax.experimental.pallas import tpu as pltpu


def _round_up(x, m):
    return (x + m - 1) // m * m


def _vmem_limit_bytes():
    """Generation-aware scoped-VMEM budget (~3/4 of physical, clamped to [32, 100] MiB).

    v7x: 64 MiB physical -> 48 MiB; v5e/v6e: 128 MiB -> 96 MiB.
    """
    try:
        cap = getattr(pltpu.get_tpu_info(), "vmem_capacity_bytes", 128 * 1024 * 1024)
    except Exception:  # query unsupported -> conservative default
        cap = 128 * 1024 * 1024
    return max(32 * 1024 * 1024, min(100 * 1024 * 1024, (cap * 3) // 4))


def _make_kernel(H, W, Cp, block_n, compute_dtype):
    """Kernel body for one grid step (processes `block_n` batch elements at once)."""
    M = block_n * H * W  # matmul M dimension (one big im2col matmul per conv)

    def kernel(x_ref, w1_ref, w2_ref, sb_ref, out_ref, xpad_ref, mid_ref):
        # Folded-BN per-channel scale/bias (f32), packed as rows of a single (4, Cp) operand.
        s1 = sb_ref[0:1, :]
        b1 = sb_ref[1:2, :]
        s2 = sb_ref[2:3, :]
        b2 = sb_ref[3:4, :]

        # Zero ONLY the 1-pixel halo of the two padded scratches, not the whole buffer.
        # Done every grid step on purpose: with dimension_semantics=("parallel",) each
        # TensorCore owns its own (uninitialized) scratch instance, so a program_id()==0
        # one-shot init would leave the second core's halo uninitialized.
        zrow = jnp.zeros((block_n, 1, W + 2, Cp), compute_dtype)
        zcol = jnp.zeros((block_n, H + 2, 1, Cp), compute_dtype)
        for ref in (xpad_ref, mid_ref):
            ref[:, 0:1, :, :] = zrow
            ref[:, H + 1:H + 2, :, :] = zrow
            ref[:, :, 0:1, :] = zcol
            ref[:, :, W + 1:W + 2, :] = zcol

        def conv3x3(pad_ref, w):
            """3x3 / pad=1 conv over the whole batch block as one im2col MXU matmul.

            Operands are compute_dtype (bf16 by default), accumulation is f32.
            K = 9*Cp, M = block_n*H*W.
            """
            xp = pad_ref[...]                                        # (bn, H+2, W+2, Cp)
            # 128-lane-aligned tap slices concatenated along the minor (lane) dim.
            patches = jnp.concatenate(
                [xp[:, dy:dy + H, dx:dx + W, :]
                 for dy in range(3) for dx in range(3)], axis=-1)    # (bn, H, W, 9*Cp)
            y = jax.lax.dot_general(
                patches.reshape(M, 9 * Cp), w,
                (((1,), (0,)), ((), ())),
                preferred_element_type=jnp.float32)                  # (M, Cp) f32
            return y.reshape(block_n, H, W, Cp)

        x = x_ref[...]                                               # (bn, H, W, Cp) f32

        # conv1 -> BN1 -> ReLU   (x cast to compute_dtype exactly once, into the scratch)
        xpad_ref[:, 1:H + 1, 1:W + 1, :] = x.astype(compute_dtype)
        y1 = jnp.maximum(conv3x3(xpad_ref, w1_ref[...]) * s1 + b1, 0.0)

        # conv2 -> BN2 -> +residual (f32) -> ReLU
        mid_ref[:, 1:H + 1, 1:W + 1, :] = y1.astype(compute_dtype)
        y2 = conv3x3(mid_ref, w2_ref[...]) * s2 + b2 + x
        out_ref[...] = jnp.maximum(y2, 0.0).astype(out_ref.dtype)    # lane-dense store

    return kernel


def _fold_bn(conv_bias, gamma, beta, mean, var, eps):
    """Fold conv bias + inference-mode BatchNorm into per-channel scale/bias."""
    scale = gamma / jnp.sqrt(var + eps)
    bias = beta + scale * (conv_bias - mean)
    return scale, bias


@functools.partial(jax.jit, static_argnames=("block_n", "compute_dtype"))
def residual_block_pallas(x_nchw, w1, cb1, g1, be1, m1, v1,
                          w2, cb2, g2, be2, m2, v2, *,
                          block_n=None, compute_dtype=jnp.bfloat16):
    """ResidualBlock forward.  x_nchw: (N, C, H, W) f32; weights OIHW like nn.Conv2d."""
    eps = 1e-5
    N, C, H, W = x_nchw.shape
    # Lane-dense channel count.  Intended regime is C >= 128 (no-op pad); for C << 128
    # (e.g. the C=4 functional test) the pad inflates MXU work and HBM writeback and this
    # kernel is a correctness demo rather than the fast path.
    Cp = _round_up(C, 128)

    if block_n is None:
        # Largest of {8,4,2} dividing N while keeping >=2 grid steps (both v7x cores busy).
        block_n = 1
        for cand in (8, 4, 2):
            if N % cand == 0 and N // cand >= 2:
                block_n = cand
                break
    assert N % block_n == 0

    # Wrapper-side layout glue: NCHW -> NHWC and channel pad (XLA fuses these).
    x = jnp.transpose(x_nchw, (0, 2, 3, 1))
    x = jnp.pad(x, ((0, 0), (0, 0), (0, 0), (0, Cp - C)))

    def prep_w(w):
        # OIHW -> HWIO, pad channels, flatten to the im2col layout (9*Cp, Cp) so that
        # row (dy*3 + dx)*Cp + ci matches the in-kernel patch concatenation order.
        w_hwio = jnp.transpose(w, (2, 3, 1, 0))
        w_hwio = jnp.pad(w_hwio, ((0, 0), (0, 0), (0, Cp - C), (0, Cp - C)))
        return w_hwio.reshape(9 * Cp, Cp).astype(compute_dtype)

    def prep_sb(cb, g, be, m, v):
        s, b = _fold_bn(cb, g, be, m, v, eps)
        # Padded channels get scale=0 / bias=0 so they stay exactly zero end-to-end.
        return jnp.pad(s, (0, Cp - C)), jnp.pad(b, (0, Cp - C))

    w1p = prep_w(w1)
    w2p = prep_w(w2)
    s1, b1 = prep_sb(cb1, g1, be1, m1, v1)
    s2, b2 = prep_sb(cb2, g2, be2, m2, v2)
    sb = jnp.stack([s1, b1, s2, b2])                 # (4, Cp) f32, one small operand

    kernel = _make_kernel(H, W, Cp, block_n, compute_dtype)

    # VMEM budget per step (in/out double-buffered by the pipeline):
    #   2*in + 2*out f32 blocks (block_n*H*W*Cp each)
    #   + 2*2 bf16 weight blocks (9*Cp*Cp each)
    #   + 2 bf16 padded scratches (block_n*(H+2)*(W+2)*Cp)
    #   + per-conv im2col temp (block_n*H*W*9*Cp bf16) and f32 matmul result.
    # ~4 MiB at (block_n=2, H=W=16, Cp=128); re-derive (and shrink block_n / add row
    # tiling) for 56x56-class images so v7x's smaller VMEM still fits.
    grid_spec = pltpu.PrefetchScalarGridSpec(
        num_scalar_prefetch=0,
        grid=(N // block_n,),
        in_specs=[
            pl.BlockSpec((block_n, H, W, Cp), lambda n: (n, 0, 0, 0)),
            pl.BlockSpec((9 * Cp, Cp), lambda n: (0, 0)),
            pl.BlockSpec((9 * Cp, Cp), lambda n: (0, 0)),
            pl.BlockSpec((4, Cp), lambda n: (0, 0)),
        ],
        out_specs=pl.BlockSpec((block_n, H, W, Cp), lambda n: (n, 0, 0, 0)),
        scratch_shapes=[pltpu.VMEM((block_n, H + 2, W + 2, Cp), compute_dtype),
                        pltpu.VMEM((block_n, H + 2, W + 2, Cp), compute_dtype)],
    )

    out = pl.pallas_call(
        kernel,
        out_shape=jax.ShapeDtypeStruct((N, H, W, Cp), x_nchw.dtype),
        grid_spec=grid_spec,
        compiler_params=pltpu.CompilerParams(
            dimension_semantics=("parallel",),          # batch steps are independent
            vmem_limit_bytes=_vmem_limit_bytes()),
    )(x, w1p, w2p, sb)

    # Drop the channel padding, back to NCHW.
    return jnp.transpose(out[..., :C], (0, 3, 1, 2))


def _ref_forward(x_nchw, p):
    """Pure-JAX reference mirroring the PyTorch module (BN in eval mode)."""
    eps = 1e-5

    def conv(x, w, b):
        y = jax.lax.conv_general_dilated(
            x, w, window_strides=(1, 1), padding="SAME",
            dimension_numbers=("NCHW", "OIHW", "NCHW"))
        return y + b[None, :, None, None]

    def bn(x, gamma, beta, mean, var):
        return (gamma[None, :, None, None] * (x - mean[None, :, None, None])
                / jnp.sqrt(var[None, :, None, None] + eps)
                + beta[None, :, None, None])

    y = conv(x_nchw, p["w1"], p["cb1"])
    y = bn(y, p["g1"], p["be1"], p["m1"], p["v1"])
    y = jnp.maximum(y, 0.0)
    y = conv(y, p["w2"], p["cb2"])
    y = bn(y, p["g2"], p["be2"], p["m2"], p["v2"])
    return jnp.maximum(y + x_nchw, 0.0)


if __name__ == "__main__":
    N, C, H, W = 2, 4, 16, 16
    key = jax.random.PRNGKey(0)
    keys = jax.random.split(key, 13)

    x_nchw = jax.random.normal(keys[0], (N, C, H, W), jnp.float32)

    # Deterministic parameter init (shapes follow nn.Conv2d / nn.BatchNorm2d).
    params = {
        "w1": jax.random.normal(keys[1], (C, C, 3, 3), jnp.float32) * 0.2,   # OIHW
        "cb1": jax.random.normal(keys[2], (C,), jnp.float32) * 0.1,
        "g1": jax.random.uniform(keys[3], (C,), jnp.float32, 0.5, 1.5),
        "be1": jax.random.normal(keys[4], (C,), jnp.float32) * 0.1,
        "m1": jax.random.normal(keys[5], (C,), jnp.float32) * 0.1,
        "v1": jax.random.uniform(keys[6], (C,), jnp.float32, 0.5, 1.5),
        "w2": jax.random.normal(keys[7], (C, C, 3, 3), jnp.float32) * 0.2,
        "cb2": jax.random.normal(keys[8], (C,), jnp.float32) * 0.1,
        "g2": jax.random.uniform(keys[9], (C,), jnp.float32, 0.5, 1.5),
        "be2": jax.random.normal(keys[10], (C,), jnp.float32) * 0.1,
        "m2": jax.random.normal(keys[11], (C,), jnp.float32) * 0.1,
        "v2": jax.random.uniform(keys[12], (C,), jnp.float32, 0.5, 1.5),
    }
    args = (x_nchw,
            params["w1"], params["cb1"], params["g1"], params["be1"], params["m1"], params["v1"],
            params["w2"], params["cb2"], params["g2"], params["be2"], params["m2"], params["v2"])

    ref = _ref_forward(x_nchw, params)

    # Fast path: bf16 matmul operands, f32 accumulation (default).
    out_bf16 = jax.block_until_ready(residual_block_pallas(*args))
    assert out_bf16.shape == ref.shape == (N, C, H, W)
    assert jnp.allclose(out_bf16, ref, atol=1e-1, rtol=5e-2), \
        float(jnp.max(jnp.abs(out_bf16 - ref)))

    # Full-precision path for a tight structural correctness check.
    out_f32 = jax.block_until_ready(
        residual_block_pallas(*args, compute_dtype=jnp.float32))
    assert jnp.allclose(out_f32, ref, atol=2e-3, rtol=2e-3), \
        float(jnp.max(jnp.abs(out_f32 - ref)))

    print("KERNEL_OK")
</pallas_src>

<mosaic_0001>
module attributes {stable_mosaic.version = 11 : i64} {
  func.func @kernel(%arg0: i32, %arg1: memref<1x16x16x128xf32, #tpu.memory_space<vmem>>, %arg2: memref<1152x128xbf16, #tpu.memory_space<vmem>>, %arg3: memref<1152x128xbf16, #tpu.memory_space<vmem>>, %arg4: memref<4x128xf32, #tpu.memory_space<vmem>>, %arg5: memref<1x16x16x128xf32, #tpu.memory_space<vmem>>, %arg6: memref<1x18x18x128xbf16, #tpu.memory_space<vmem>>, %arg7: memref<1x18x18x128xbf16, #tpu.memory_space<vmem>>) attributes {dimension_semantics = [#tpu.dimension_semantics<parallel>], iteration_bounds = array<i64: 2>, scalar_prefetch = 0 : i64, scratch_operands = 2 : i64, tpu.core_type = #tpu.core_type<tc>, window_params = [{transform_indices = @transform_0, window_bounds = array<i64: 1, 16, 16, 128>}, {pipeline_mode = #tpu.pipeline_mode<synchronous>, transform_indices = @transform_1, window_bounds = array<i64: 1152, 128>}, {pipeline_mode = #tpu.pipeline_mode<synchronous>, transform_indices = @transform_2, window_bounds = array<i64: 1152, 128>}, {pipeline_mode = #tpu.pipeline_mode<synchronous>, transform_indices = @transform_3, window_bounds = array<i64: 4, 128>}, {transform_indices = @transform_4, window_bounds = array<i64: 1, 16, 16, 128>}]} {
    %c0 = arith.constant 0 : index
    %c0_0 = arith.constant 0 : index
    %0 = vector.load %arg4[%c0, %c0_0] : memref<4x128xf32, #tpu.memory_space<vmem>>, vector<1x128xf32>
    %c1 = arith.constant 1 : index
    %c0_1 = arith.constant 0 : index
    %1 = vector.load %arg4[%c1, %c0_1] : memref<4x128xf32, #tpu.memory_space<vmem>>, vector<1x128xf32>
    %c2 = arith.constant 2 : index
    %c0_2 = arith.constant 0 : index
    %2 = vector.load %arg4[%c2, %c0_2] : memref<4x128xf32, #tpu.memory_space<vmem>>, vector<1x128xf32>
    %c3 = arith.constant 3 : index
    %c0_3 = arith.constant 0 : index
    %3 = vector.load %arg4[%c3, %c0_3] : memref<4x128xf32, #tpu.memory_space<vmem>>, vector<1x128xf32>
    %cst = arith.constant 0.000000e+00 : bf16
    %4 = vector.broadcast %cst : bf16 to vector<1x1x18x128xbf16>
    %cst_4 = arith.constant 0.000000e+00 : bf16
    %5 = vector.broadcast %cst_4 : bf16 to vector<1x18x1x128xbf16>
    %c0_5 = arith.constant 0 : index
    %c0_6 = arith.constant 0 : index
    %c0_7 = arith.constant 0 : index
    %c0_8 = arith.constant 0 : index
    %6 = vector.load %arg6[%c0_5, %c0_6, %c0_7, %c0_8] : memref<1x18x18x128xbf16, #tpu.memory_space<vmem>>, vector<1x1x18x128xbf16>
    tpu.vector_store %arg6[%c0_5, %c0_6, %c0_7, %c0_8], %4 {strides = array<i32>} : memref<1x18x18x128xbf16, #tpu.memory_space<vmem>>, vector<1x1x18x128xbf16>,
    %c0_9 = arith.constant 0 : index
    %c17 = arith.constant 17 : index
    %c0_10 = arith.constant 0 : index
    %c0_11 = arith.constant 0 : index
    %7 = vector.load %arg6[%c0_9, %c17, %c0_10, %c0_11] : memref<1x18x18x128xbf16, #tpu.memory_space<vmem>>, vector<1x1x18x128xbf16>
    tpu.vector_store %arg6[%c0_9, %c17, %c0_10, %c0_11], %4 {strides = array<i32>} : memref<1x18x18x128xbf16, #tpu.memory_space<vmem>>, vector<1x1x18x128xbf16>,
    %c0_12 = arith.constant 0 : index
    %c0_13 = arith.constant 0 : index
    %c0_14 = arith.constant 0 : index
    %c0_15 = arith.constant 0 : index
    %8 = vector.load %arg6[%c0_12, %c0_13, %c0_14, %c0_15] : memref<1x18x18x128xbf16, #tpu.memory_space<vmem>>, vector<1x18x1x128xbf16>
    tpu.vector_store %arg6[%c0_12, %c0_13, %c0_14, %c0_15], %5 {strides = array<i32>} : memref<1x18x18x128xbf16, #tpu.memory_space<vmem>>, vector<1x18x1x128xbf16>,
    %c0_16 = arith.constant 0 : index
    %c0_17 = arith.constant 0 : index
    %c17_18 = arith.constant 17 : index
    %c0_19 = arith.constant 0 : index
    %9 = vector.load %arg6[%c0_16, %c0_17, %c17_18, %c0_19] : memref<1x18x18x128xbf16, #tpu.memory_space<vmem>>, vector<1x18x1x128xbf16>
    tpu.vector_store %arg6[%c0_16, %c0_17, %c17_18, %c0_19], %5 {strides = array<i32>} : memref<1x18x18x128xbf16, #tpu.memory_space<vmem>>, vector<1x18x1x128xbf16>,
    %c0_20 = arith.constant 0 : index
    %c0_21 = arith.constant 0 : index
    %c0_22 = arith.constant 0 : index
    %c0_23 = arith.constant 0 : index
    %10 = vector.load %arg7[%c0_20, %c0_21, %c0_22, %c0_23] : memref<1x18x18x128xbf16, #tpu.memory_space<vmem>>, vector<1x1x18x128xbf16>
    tpu.vector_store %arg7[%c0_20, %c0_21, %c0_22, %c0_23], %4 {strides = array<i32>} : memref<1x18x18x128xbf16, #tpu.memory_space<vmem>>, vector<1x1x18x128xbf16>,
    %c0_24 = arith.constant 0 : index
    %c17_25 = arith.constant 17 : index
    %c0_26 = arith.constant 0 : index
    %c0_27 = arith.constant 0 : index
    %11 = vector.load %arg7[%c0_24, %c17_25, %c0_26, %c0_27] : memref<1x18x18x128xbf16, #tpu.memory_space<vmem>>, vector<1x1x18x128xbf16>
    tpu.vector_store %arg7[%c0_24, %c17_25, %c0_26, %c0_27], %4 {strides = array<i32>} : memref<1x18x18x128xbf16, #tpu.memory_space<vmem>>, vector<1x1x18x128xbf16>,
    %c0_28 = arith.constant 0 : index
    %c0_29 = arith.constant 0 : index
    %c0_30 = arith.constant 0 : index
    %c0_31 = arith.constant 0 : index
    %12 = vector.load %arg7[%c0_28, %c0_29, %c0_30, %c0_31] : memref<1x18x18x128xbf16, #tpu.memory_space<vmem>>, vector<1x18x1x128xbf16>
    tpu.vector_store %arg7[%c0_28, %c0_29, %c0_30, %c0_31], %5 {strides = array<i32>} : memref<1x18x18x128xbf16, #tpu.memory_space<vmem>>, vector<1x18x1x128xbf16>,
    %c0_32 = arith.constant 0 : index
    %c0_33 = arith.constant 0 : index
    %c17_34 = arith.constant 17 : index
    %c0_35 = arith.constant 0 : index
    %13 = vector.load %arg7[%c0_32, %c0_33, %c17_34, %c0_35] : memref<1x18x18x128xbf16, #tpu.memory_space<vmem>>, vector<1x18x1x128xbf16>
    tpu.vector_store %arg7[%c0_32, %c0_33, %c17_34, %c0_35], %5 {strides = array<i32>} : memref<1x18x18x128xbf16, #tpu.memory_space<vmem>>, vector<1x18x1x128xbf16>,
    %c0_36 = arith.constant 0 : index
    %c0_37 = arith.constant 0 : index
    %c0_38 = arith.constant 0 : index
    %c0_39 = arith.constant 0 : index
    %14 = vector.load %arg1[%c0_36, %c0_37, %c0_38, %c0_39] : memref<1x16x16x128xf32, #tpu.memory_space<vmem>>, vector<1x16x16x128xf32>
    %15 = arith.truncf %14 : vector<1x16x16x128xf32> to vector<1x16x16x128xbf16>
    %c0_40 = arith.constant 0 : index
    %c1_41 = arith.constant 1 : index
    %c1_42 = arith.constant 1 : index
    %c0_43 = arith.constant 0 : index
    %16 = vector.load %arg6[%c0_40, %c1_41, %c1_42, %c0_43] : memref<1x18x18x128xbf16, #tpu.memory_space<vmem>>, vector<1x16x16x128xbf16>
    tpu.vector_store %arg6[%c0_40, %c1_41, %c1_42, %c0_43], %15 {strides = array<i32>} : memref<1x18x18x128xbf16, #tpu.memory_space<vmem>>, vector<1x16x16x128xbf16>,
    %c0_44 = arith.constant 0 : index
    %c0_45 = arith.constant 0 : index
    %17 = vector.load %arg2[%c0_44, %c0_45] : memref<1152x128xbf16, #tpu.memory_space<vmem>>, vector<1152x128xbf16>
    %c0_46 = arith.constant 0 : index
    %c0_47 = arith.constant 0 : index
    %c0_48 = arith.constant 0 : index
    %c0_49 = arith.constant 0 : index
    %18 = vector.load %arg6[%c0_46, %c0_47, %c0_48, %c0_49] : memref<1x18x18x128xbf16, #tpu.memory_space<vmem>>, vector<1x18x18x128xbf16>
    %19 = vector.extract_strided_slice %18 {offsets = [0, 0, 0, 0], sizes = [1, 16, 16, 128], strides = [1, 1, 1, 1]} : vector<1x18x18x128xbf16> to vector<1x16x16x128xbf16>
    %20 = vector.extract_strided_slice %18 {offsets = [0, 0, 1, 0], sizes = [1, 16, 16, 128], strides = [1, 1, 1, 1]} : vector<1x18x18x128xbf16> to vector<1x16x16x128xbf16>
    %21 = vector.extract_strided_slice %18 {offsets = [0, 0, 2, 0], sizes = [1, 16, 16, 128], strides = [1, 1, 1, 1]} : vector<1x18x18x128xbf16> to vector<1x16x16x128xbf16>
    %22 = vector.extract_strided_slice %18 {offsets = [0, 1, 0, 0], sizes = [1, 16, 16, 128], strides = [1, 1, 1, 1]} : vector<1x18x18x128xbf16> to vector<1x16x16x128xbf16>
    %23 = vector.extract_strided_slice %18 {offsets = [0, 1, 1, 0], sizes = [1, 16, 16, 128], strides = [1, 1, 1, 1]} : vector<1x18x18x128xbf16> to vector<1x16x16x128xbf16>
    %24 = vector.extract_strided_slice %18 {offsets = [0, 1, 2, 0], sizes = [1, 16, 16, 128], strides = [1, 1, 1, 1]} : vector<1x18x18x128xbf16> to vector<1x16x16x128xbf16>
    %25 = vector.extract_strided_slice %18 {offsets = [0, 2, 0, 0], sizes = [1, 16, 16, 128], strides = [1, 1, 1, 1]} : vector<1x18x18x128xbf16> to vector<1x16x16x128xbf16>
    %26 = vector.extract_strided_slice %18 {offsets = [0, 2, 1, 0], sizes = [1, 16, 16, 128], strides = [1, 1, 1, 1]} : vector<1x18x18x128xbf16> to vector<1x16x16x128xbf16>
    %27 = vector.extract_strided_slice %18 {offsets = [0, 2, 2, 0], sizes = [1, 16, 16, 128], strides = [1, 1, 1, 1]} : vector<1x18x18x128xbf16> to vector<1x16x16x128xbf16>
    %28 = tpu.concatenate %19, %20, %21, %22, %23, %24, %25, %26, %27 in 3 : vector<1x16x16x128xbf16>, vector<1x16x16x128xbf16>, vector<1x16x16x128xbf16>, vector<1x16x16x128xbf16>, vector<1x16x16x128xbf16>, vector<1x16x16x128xbf16>, vector<1x16x16x128xbf16>, vector<1x16x16x128xbf16>, vector<1x16x16x128xbf16> -> vector<1x16x16x1152xbf16>
    %29 = vector.shape_cast %28 : vector<1x16x16x1152xbf16> to vector<256x1152xbf16>
    %cst_50 = arith.constant dense<0.000000e+00> : vector<256x128xf32>
    %30 = tpu.matmul %29, %17, %cst_50 {dimension_numbers = #tpu.dot_dimension_numbers<[1], [0], [0], [1], [0, 0, 1, 1], [], []>} : vector<256x1152xbf16>, vector<1152x128xbf16>, vector<256x128xf32> -> vector<256x128xf32>
    %31 = vector.shape_cast %30 : vector<256x128xf32> to vector<1x16x16x128xf32>
    %32 = vector.shape_cast %0 : vector<1x128xf32> to vector<1x1x1x128xf32>
    %33 = vector.broadcast %32 : vector<1x1x1x128xf32> to vector<1x16x16x128xf32>
    %34 = arith.mulf %31, %33 : vector<1x16x16x128xf32>
    %35 = vector.shape_cast %1 : vector<1x128xf32> to vector<1x1x1x128xf32>
    %36 = vector.broadcast %35 : vector<1x1x1x128xf32> to vector<1x16x16x128xf32>
    %37 = arith.addf %34, %36 : vector<1x16x16x128xf32>
    %cst_51 = arith.constant 0.000000e+00 : f32
    %38 = vector.broadcast %cst_51 : f32 to vector<1x16x16x128xf32>
    %39 = arith.maximumf %37, %38 : vector<1x16x16x128xf32>
    %40 = arith.truncf %39 : vector<1x16x16x128xf32> to vector<1x16x16x128xbf16>
    %c0_52 = arith.constant 0 : index
    %c1_53 = arith.constant 1 : index
    %c1_54 = arith.constant 1 : index
    %c0_55 = arith.constant 0 : index
    %41 = vector.load %arg7[%c0_52, %c1_53, %c1_54, %c0_55] : memref<1x18x18x128xbf16, #tpu.memory_space<vmem>>, vector<1x16x16x128xbf16>
    tpu.vector_store %arg7[%c0_52, %c1_53, %c1_54, %c0_55], %40 {strides = array<i32>} : memref<1x18x18x128xbf16, #tpu.memory_space<vmem>>, vector<1x16x16x128xbf16>,
    %c0_56 = arith.constant 0 : index
    %c0_57 = arith.constant 0 : index
    %42 = vector.load %arg3[%c0_56, %c0_57] : memref<1152x128xbf16, #tpu.memory_space<vmem>>, vector<1152x128xbf16>
    %c0_58 = arith.constant 0 : index
    %c0_59 = arith.constant 0 : index
    %c0_60 = arith.constant 0 : index
    %c0_61 = arith.constant 0 : index
    %43 = vector.load %arg7[%c0_58, %c0_59, %c0_60, %c0_61] : memref<1x18x18x128xbf16, #tpu.memory_space<vmem>>, vector<1x18x18x128xbf16>
    %44 = vector.extract_strided_slice %43 {offsets = [0, 0, 0, 0], sizes = [1, 16, 16, 128], strides = [1, 1, 1, 1]} : vector<1x18x18x128xbf16> to vector<1x16x16x128xbf16>
    %45 = vector.extract_strided_slice %43 {offsets = [0, 0, 1, 0], sizes = [1, 16, 16, 128], strides = [1, 1, 1, 1]} : vector<1x18x18x128xbf16> to vector<1x16x16x128xbf16>
    %46 = vector.extract_strided_slice %43 {offsets = [0, 0, 2, 0], sizes = [1, 16, 16, 128], strides = [1, 1, 1, 1]} : vector<1x18x18x128xbf16> to vector<1x16x16x128xbf16>
    %47 = vector.extract_strided_slice %43 {offsets = [0, 1, 0, 0], sizes = [1, 16, 16, 128], strides = [1, 1, 1, 1]} : vector<1x18x18x128xbf16> to vector<1x16x16x128xbf16>
    %48 = vector.extract_strided_slice %43 {offsets = [0, 1, 1, 0], sizes = [1, 16, 16, 128], strides = [1, 1, 1, 1]} : vector<1x18x18x128xbf16> to vector<1x16x16x128xbf16>
    %49 = vector.extract_strided_slice %43 {offsets = [0, 1, 2, 0], sizes = [1, 16, 16, 128], strides = [1, 1, 1, 1]} : vector<1x18x18x128xbf16> to vector<1x16x16x128xbf16>
    %50 = vector.extract_strided_slice %43 {offsets = [0, 2, 0, 0], sizes = [1, 16, 16, 128], strides = [1, 1, 1, 1]} : vector<1x18x18x128xbf16> to vector<1x16x16x128xbf16>
    %51 = vector.extract_strided_slice %43 {offsets = [0, 2, 1, 0], sizes = [1, 16, 16, 128], strides = [1, 1, 1, 1]} : vector<1x18x18x128xbf16> to vector<1x16x16x128xbf16>
    %52 = vector.extract_strided_slice %43 {offsets = [0, 2, 2, 0], sizes = [1, 16, 16, 128], strides = [1, 1, 1, 1]} : vector<1x18x18x128xbf16> to vector<1x16x16x128xbf16>
    %53 = tpu.concatenate %44, %45, %46, %47, %48, %49, %50, %51, %52 in 3 : vector<1x16x16x128xbf16>, vector<1x16x16x128xbf16>, vector<1x16x16x128xbf16>, vector<1x16x16x128xbf16>, vector<1x16x16x128xbf16>, vector<1x16x16x128xbf16>, vector<1x16x16x128xbf16>, vector<1x16x16x128xbf16>, vector<1x16x16x128xbf16> -> vector<1x16x16x1152xbf16>
    %54 = vector.shape_cast %53 : vector<1x16x16x1152xbf16> to vector<256x1152xbf16>
    %cst_62 = arith.constant dense<0.000000e+00> : vector<256x128xf32>
    %55 = tpu.matmul %54, %42, %cst_62 {dimension_numbers = #tpu.dot_dimension_numbers<[1], [0], [0], [1], [0, 0, 1, 1], [], []>} : vector<256x1152xbf16>, vector<1152x128xbf16>, vector<256x128xf32> -> vector<256x128xf32>
    %56 = vector.shape_cast %55 : vector<256x128xf32> to vector<1x16x16x128xf32>
    %57 = vector.shape_cast %2 : vector<1x128xf32> to vector<1x1x1x128xf32>
    %58 = vector.broadcast %57 : vector<1x1x1x128xf32> to vector<1x16x16x128xf32>
    %59 = arith.mulf %56, %58 : vector<1x16x16x128xf32>
    %60 = vector.shape_cast %3 : vector<1x128xf32> to vector<1x1x1x128xf32>
    %61 = vector.broadcast %60 : vector<1x1x1x128xf32> to vector<1x16x16x128xf32>
    %62 = arith.addf %59, %61 : vector<1x16x16x128xf32>
    %63 = arith.addf %62, %14 : vector<1x16x16x128xf32>
    %cst_63 = arith.constant 0.000000e+00 : f32
    %64 = vector.broadcast %cst_63 : f32 to vector<1x16x16x128xf32>
    %65 = arith.maximumf %63, %64 : vector<1x16x16x128xf32>
    %c0_64 = arith.constant 0 : index
    %c0_65 = arith.constant 0 : index
    %c0_66 = arith.constant 0 : index
    %c0_67 = arith.constant 0 : index
    %66 = vector.load %arg5[%c0_64, %c0_65, %c0_66, %c0_67] : memref<1x16x16x128xf32, #tpu.memory_space<vmem>>, vector<1x16x16x128xf32>
    tpu.vector_store %arg5[%c0_64, %c0_65, %c0_66, %c0_67], %65 {strides = array<i32>} : memref<1x16x16x128xf32, #tpu.memory_space<vmem>>, vector<1x16x16x128xf32>,
    return
  }
  func.func @transform_0(%arg0: i32) -> (i32, i32, i32, i32) {
    %c0_i32 = arith.constant 0 : i32
    %c0_i32_0 = arith.constant 0 : i32
    %c0_i32_1 = arith.constant 0 : i32
    %c0_i32_2 = arith.constant 0 : i32
    return %arg0, %c0_i32, %c0_i32_0, %c0_i32_1 : i32, i32, i32, i32
  }
  func.func @transform_1(%arg0: i32) -> (i32, i32) {
    %c0_i32 = arith.constant 0 : i32
    %c0_i32_0 = arith.constant 0 : i32
    %c0_i32_1 = arith.constant 0 : i32
    return %c0_i32, %c0_i32_0 : i32, i32
  }
  func.func @transform_2(%arg0: i32) -> (i32, i32) {
    %c0_i32 = arith.constant 0 : i32
    %c0_i32_0 = arith.constant 0 : i32
    %c0_i32_1 = arith.constant 0 : i32
    return %c0_i32, %c0_i32_0 : i32, i32
  }
  func.func @transform_3(%arg0: i32) -> (i32, i32) {
    %c0_i32 = arith.constant 0 : i32
    %c0_i32_0 = arith.constant 0 : i32
    %c0_i32_1 = arith.constant 0 : i32
    return %c0_i32, %c0_i32_0 : i32, i32
  }
  func.func @transform_4(%arg0: i32) -> (i32, i32, i32, i32) {
    %c0_i32 = arith.constant 0 : i32
    %c0_i32_0 = arith.constant 0 : i32
    %c0_i32_1 = arith.constant 0 : i32
    %c0_i32_2 = arith.constant 0 : i32
    return %arg0, %c0_i32, %c0_i32_0, %c0_i32_1 : i32, i32, i32, i32
  }
}

</mosaic_0001>

<bundles_post_ra>
// kernel: residual_block_pallas.1
= control target key start
LH: loop header
LB: loop body
LE: loop exit
PB: predicated region body
PF: predicated region fallthrough
CT: control target
= control target key end

     0   :  { %9 = vsyncpa [#allocation5], 0  ;;  %s9926_s0 = inlined_call_operand.hbm [shape: f32[2,16,16,128], index: 0, kind: input, shape index: {}]   ;;  %s9927_s1 = inlined_call_operand.hbm [shape: bf16[1152,128], index: 1, kind: input, shape index: {}]   ;;  %s9928_s2 = inlined_call_operand.hbm [shape: bf16[1152,128], index: 2, kind: input, shape index: {}]   ;;  %s9929_s3 = inlined_call_operand.hbm [shape: f32[4,128], index: 3, kind: input, shape index: {}]   ;;  %s9930_s4 = inlined_call_operand.hbm [shape: f32[2,16,16,128], index: 4, kind: output, shape index: {}]  }
   0x1   :  { %11 = vsyncpa [#allocation5 + $0x1], 0 }
   0x2   :  { %12 = vsyncpa [#allocation8], 0 }
   0x3   :  { %13 = vsyncpa [#allocation11], 0 }
   0x4   :  { %14 = vsyncpa [#allocation6], 0 }
   0x5   :  { %16 = vsyncpa [#allocation6 + $0x1], 0  ;;  %s7769_s15 = smov 0   ;;  %s7771_s16 = smov 0  }
   0x6   :  { %s7773_s17 = smov 0   ;;  %s7775_s18 = smov 0  }
   0x7 LB: > { %s7790_s19 = sadd.s32 4294967295, %s7730_s18   ;;  %s5788_s20 = sadd.s32 4294967294, %s7730_s18   ;;  %s7730_s18 = sphi %s7775_s18, %s9961_s18   ;;  %s7726_s17 = sphi %s7773_s17, %s9960_s17   ;;  %s7722_s16 = sphi %s7771_s16, %s9959_s16   ;;  %s7718_s15 = sphi %s7769_s15, %s9958_s15  }
   0x8   : > { %p42_p0 = scmp.ne.s32.totalorder %s7722_s16, %s7718_s15  ;;  %p9931_p1 = scmp.eq.s32.totalorder %s7790_s19, 0 }
   0x9   : > { %p135_p3 = scmp.eq.s32.totalorder %s5788_s20, 1  ;;  %p5789_p5 = scmp.ge.s32.totalorder %s7730_s18, 1 }
   0xa   : > { %p7799_p4 = por %p9931_p1, %p42_p0  ;;  %p142_p7 = scmp.lt.s32.totalorder %s7730_s18, 3 }
   0xb   : > { %p7804_p6 = por %p135_p3, %p42_p0  ;;  %s7732_s24 = smov [#allocation7]  }
   0xc   : > { %s9934_s21 = scalar_select %p7799_p4, 1, 0 }
   0xd   : > { %s9935_s22 = scalar_select %p7804_p6, 1, 0 }
   0xe   : > { %p7809_p8 = pnand %p5789_p5, %p142_p7  ;;  %s154_s25 = sshll.u32 %s7732_s24, 4  ;;  %s7813_s25 = int_to_ptr.vmem [resolvable:$true] %s154_s25 }
   0xf   : > { %s7733_s27 = smov [#allocation9]   ;;  %s7734_s29 = smov [#allocation10]  }
  0x10   : > { %s9936_s23 = scalar_select %p7809_p8, 1, 0 }
  0x11   : > { %p7214_p9 = pneg %p7809_p8  ;;  %s167_s28 = sshll.u32 %s7733_s27, 4  ;;  %s7824_s28 = int_to_ptr.vmem [resolvable:$true] %s167_s28 }
  0x12   : > { %s7826_s30 = sshll.u32 %s7734_s29, 4  ;;  %s7542_s7 = scalar_lea.hbm %s9927_s1, 9216  ;;  %s182_s30 = int_to_ptr.vmem [resolvable:$true] %s7826_s30 }
  0x13   : > { %p7820_p11 = pnand %p7214_p9, %p9931_p1  ;;  %p7543_p12 = scmp.ne.s32.totalorder %s9927_s1, %s7542_s7 }
  0x14   : > { %p7549_p5 = scmp.lt.u32.totalorder %s7542_s7, %s9927_s1 }
  0x15   : > { %p7836_p13 = pneg %p7820_p11 }
  0x17   : > { %p7545_p0 = pnand %p7836_p13, %p7543_p12 }
  0x19   : > { %p7546_p3 = pneg %p7545_p0 }
  0x1b   : > { %p7551_p7 = pnand %p7549_p5, %p7546_p3 }
  0x1d   : > { %7554 = shalt.err (!%p7551_p7)
}
  0x1e   : > { %s7555_s13 = scalar_lea.vmem %s7813_s25, 9216  ;;  %p7563_p2 = scmp.lt.s32.totalorder %s7813_s25, %s7813_s25 }
  0x1f   : > { %p7556_p9 = scmp.ne.s32.totalorder %s7813_s25, %s7555_s13  ;;  %p7564_p6 = scmp.lt.s32.totalorder %s7555_s13, %s7555_s13 }
  0x21   : > { %p7558_p10 = pnand %p7556_p9, %p7836_p13  ;;  %p7565_p12 = por %p7564_p6, %p7563_p2 }
  0x23   : > { %p7559_p1 = pneg %p7558_p10 }
  0x25   : > { %p7566_p0 = pnand %p7565_p12, %p7559_p1 }
  0x27   : > { %7569 = shalt.err (!%p7566_p0)
}
  0x28   : > { %s7735_s14 = smov 64   ;;  %s7736_s20 = smov 4  }
  0x29   : > { %7217 = dma.hbm_to_vmem [thread:$0]  (!%p7820_p11), %s9927_s1, 9216, %s7813_s25, [#allocation8], %s7735_s14, %s7735_s14, %s7736_s20  }
  0x2a   : > { %s7570_s6 = scalar_lea.hbm %s9928_s2, 9216 }
  0x2b   : > { %p7571_p2 = scmp.ne.s32.totalorder %s9928_s2, %s7570_s6  ;;  %p7577_p10 = scmp.lt.u32.totalorder %s7570_s6, %s9928_s2 }
  0x2d   : > { %p7573_p1 = pnand %p7571_p2, %p7836_p13 }
  0x2f   : > { %p7574_p6 = pneg %p7573_p1 }
  0x31   : > { %p7579_p3 = pnand %p7577_p10, %p7574_p6 }
  0x33   : > { %7582 = shalt.err (!%p7579_p3)
}
  0x34   : > { %s7583_s25 = scalar_lea.vmem %s7824_s28, 9216  ;;  %p7591_p12 = scmp.lt.s32.totalorder %s7824_s28, %s7824_s28 }
  0x35   : > { %p7584_p5 = scmp.ne.s32.totalorder %s7824_s28, %s7583_s25  ;;  %p7592_p0 = scmp.lt.s32.totalorder %s7583_s25, %s7583_s25 }
  0x37   : > { %p7586_p7 = pnand %p7584_p5, %p7836_p13  ;;  %p7593_p2 = por %p7592_p0, %p7591_p12 }
  0x39   : > { %p7587_p9 = pneg %p7586_p7 }
  0x3b   : > { %p7594_p1 = pnand %p7593_p2, %p7587_p9 }
  0x3d   : > { %7597 = shalt.err (!%p7594_p1)
}
  0x3e   : > { %7220 = dma.hbm_to_vmem [thread:$0]  (!%p7820_p11), %s9928_s2, 9216, %s7824_s28, [#allocation8], %s7735_s14, %s7735_s14, %s7736_s20  }
  0x3f   : > { %s7598_s29 = scalar_lea.hbm %s9929_s3, 64 }
  0x40   : > { %p7599_p6 = scmp.ne.s32.totalorder %s9929_s3, %s7598_s29  ;;  %p7605_p5 = scmp.lt.u32.totalorder %s7598_s29, %s9929_s3 }
  0x42   : > { %p7601_p10 = pnand %p7599_p6, %p7836_p13 }
  0x44   : > { %p7602_p3 = pneg %p7601_p10 }
  0x46   : > { %p7607_p7 = pnand %p7605_p5, %p7602_p3 }
  0x48   : > { %7610 = shalt.err (!%p7607_p7)
}
  0x49   : > { %s7611_s9 = scalar_lea.vmem %s182_s30, 64  ;;  %p7619_p2 = scmp.lt.s32.totalorder %s182_s30, %s182_s30 }
  0x4a   : > { %p7612_p9 = scmp.ne.s32.totalorder %s182_s30, %s7611_s9  ;;  %p7620_p1 = scmp.lt.s32.totalorder %s7611_s9, %s7611_s9 }
  0x4c   : > { %p7614_p12 = pnand %p7612_p9, %p7836_p13  ;;  %p7621_p4 = por %p7620_p1, %p7619_p2 }
  0x4e   : > { %p7615_p0 = pneg %p7614_p12 }
  0x50   : > { %p7622_p8 = pnand %p7621_p4, %p7615_p0 }
  0x52   : > { %7625 = shalt.err (!%p7622_p8)
}
  0x53   : > { %7223 = dma.hbm_to_vmem [thread:$0]  (!%p7820_p11), %s9929_s3, 64, %s182_s30, [#allocation11]  }
  0x54   : > { %s7900_s10 = sadd.s32 1, %s7730_s18   ;;  %s29_s26 = sadd.s32 1, %s7726_s17 }
  0x55   : > { %s26_s20 = ssub.s32 %s7730_s18, %s7900_s10  ;;  %p36_p8 = scmp.ne.s32.totalorder %s7726_s17, %s7722_s16 }
  0x56   : > { %p27_p4 = scmp.eq.s32.totalorder %s26_s20, 0  ;;  %p37_p13 = scmp.eq.s32.totalorder %s7730_s18, 0 }
  0x57   : > { %p7235_p6 = scmp.lt.s32.totalorder %s7730_s18, 2  ;;  %p9939_p3 = scmp.eq.s32.totalorder %s7790_s19, 1 }
  0x58   : > { %s7910_s11 = scalar_select %p27_p4, %s7726_s17, %s29_s26  }
  0x59   : > { %p38_p10 = por %p37_p13, %p36_p8  ;;  %p7914_p5 = por %p9939_p3, %p36_p8 }
  0x5a   : > { %s192_s12 = sand.u32 1, %s7726_s17   ;;  %s6092_s13 = sshll.u32 %s7730_s18, 12 }
  0x5b   : > { %s5794_s30 = sshll.u32 %s192_s12, 8  ;;  %s7923_s29 = scalar_lea.hbm %s9926_s0, %s6092_s13 }
  0x5c   : > { %s196_s5 = scalar_lea.vmem [#allocation4], %s5794_s30  ;;  %p7925_p11 = pnand %p7235_p6, %p38_p10 }
  0x5d   : > { %s203_s6 = sshll.u32 %s196_s5, 4  ;;  %s7931_s8 = scalar_lea.sflag [#allocation5], %s192_s12  ;;  %s7929_s6 = int_to_ptr.vmem [resolvable:$true] %s203_s6 }
  0x5e   : > { %s7626_s9 = scalar_lea.hbm %s7923_s29, 4096  ;;  %p7628_p9 = pneg %p7925_p11 }
  0x5f   : > { %p7627_p7 = scmp.ne.s32.totalorder %s7923_s29, %s7626_s9  ;;  %s7631_s20 = scalar_lea.hbm %s9926_s0, 8192 }
  0x60   : > { %p7632_p2 = scmp.lt.u32.totalorder %s7923_s29, %s9926_s0  ;;  %p7633_p1 = scmp.lt.u32.totalorder %s7631_s20, %s7626_s9 }
  0x61   : > { %p7629_p12 = pnand %p7628_p9, %p7627_p7  ;;  %p7635_p8 = scmp.lt.u32.totalorder %s7626_s9, %s7923_s29 }
  0x62   : > { %p7634_p4 = por %p7633_p1, %p7632_p2 }
  0x63   : > { %p7630_p0 = pneg %p7629_p12 }
  0x64   : > { %p7636_p13 = por %p7635_p8, %p7634_p4 }
  0x66   : > { %p7637_p6 = pnand %p7636_p13, %p7630_p0 }
  0x68   : > { %7640 = shalt.err (!%p7637_p6)
}
  0x69   : > { %s7641_s12 = scalar_lea.vmem %s7929_s6, 4096  ;;  %s7737_s30 = smov [#allocation4]  }
  0x6a   : > { %p7642_p10 = scmp.ne.s32.totalorder %s7929_s6, %s7641_s12  ;;  %s7646_s24 = sshll.u32 %s7737_s30, 4  ;;  %s7647_s24 = int_to_ptr.vmem [resolvable:$false] %s7646_s24 }
  0x6b   : > { %s7648_s27 = scalar_lea.vmem %s7647_s24, 8192  ;;  %p7649_p12 = scmp.lt.s32.totalorder %s7929_s6, %s7647_s24 }
  0x6c   : > { %p7644_p3 = pnand %p7642_p10, %p7628_p9  ;;  %p7650_p2 = scmp.lt.s32.totalorder %s7648_s27, %s7641_s12 }
  0x6e   : > { %p7645_p7 = pneg %p7644_p3  ;;  %p7651_p1 = por %p7650_p2, %p7649_p12 }
  0x70   : > { %p7652_p4 = pnand %p7651_p1, %p7645_p7 }
  0x72   : > { %7655 = shalt.err (!%p7652_p4)
}
  0x73   : > { %s7738_s5 = smov 128   ;;  %s7739_s9 = smov 8  }
  0x74   : > { %7227 = dma.hbm_to_vmem [thread:$0]  (!%p7925_p11), %s7923_s29, 4096, %s7929_s6, %s7931_s8, %s7738_s5, %s7738_s5, %s7739_s9  }
  0x75   : > { %p9942_p9 = scmp.ne.s32.totalorder %s9936_s23, 0 }
  0x76   : > { %s7962_s28 = sand.u32 (!%p9942_p9), 1, %s7722_s16   ;;  %p9943_p0 = scmp.ne.s32.totalorder (!%p9942_p9), %s9934_s21, 0 }
  0x77   : > { %215 = sbr.rel (%p9942_p9) target bundleno = 1260 (0x4ec), region = 36  ;;  %s5798_s14 = sshll.u32 (!%p9942_p9), %s7962_s28, 8 }
  0x78   : > { %s218_s20 = scalar_lea.sflag (!%p9942_p9), [#allocation5], %s7962_s28  ;;  %s7968_s26 = scalar_lea.vmem (!%p9942_p9), [#allocation4], %s5798_s14 }
  0x7e   : > { %7701 = dma.done.wait (%p9943_p0), %s218_s20, 4096  }
  0x7f   : > { %7703 = vsyncadd (%p9943_p0), %s218_s20, 4294963200  ;;  %p9944_p11 = scmp.eq.s32.totalorder %s7790_s19, 0 }
  0x81   : > { %7705 = dma.done.wait (%p9944_p11), [#allocation8], 18432   ;;  %p9945_p8 = pmov %p9944_p11 }
  0x83   : > { %7707 = vsyncadd (%p9945_p8), [#allocation8], 4294948864  ;;  %p9946_p13 = pmov %p9945_p8 }
  0x84   : > { %p9947_p6 = pmov %p9945_p8 }
  0x85   : > { %7709 = dma.done.wait (%p9946_p13), [#allocation11], 64  }
  0x86   : > { %7711 = vsyncadd (%p9947_p6), [#allocation11], 4294967232  ;;  %v7740_v0 = vmov 0   ;;  %v7282_v1 = vld [vmem:[#allocation7 + $0x40] sm:$0xff]   ;;  %v7286_v5 = vld [vmem:[#allocation7 + $0x48] sm:$0xff]   ;;  %vm270_vm2 = vcmask 1040384  }
  0x87   : > { %263 = vst [vmem:[#allocation2] sm:$0xf] %v7740_v0  ;;  %264 = vst [vmem:[#allocation2 + $0x4] sm:$0xf] %v7740_v0  ;;  %v7283_v2 = vld [vmem:[#allocation7 + $0xc0] sm:$0xff]   ;;  %6158 = vmatprep.subr.bf16.mxu0 %v7282_v1  ;;  %v7287_v6 = vld [vmem:[#allocation7 + $0xc8] sm:$0xff]  }
  0x88   : > { %265 = vst [vmem:[#allocation2 + $0x8] sm:$0x1] %v7740_v0  ;;  %267 = vst [vmem:[#allocation2 + $0xcc] sm:$0xf] %v7740_v0  ;;  %v7284_v3 = vld [vmem:[#allocation7] sm:$0xff]   ;;  %6270 = vmatprep.subr.bf16.mxu1 %v7283_v2  ;;  %v7288_v7 = vld [vmem:[#allocation7 + $0x8] sm:$0xff]  }
  0x89   : > { %268 = vst [vmem:[#allocation2 + $0xd0] sm:$0xf] %v7740_v0  ;;  %269 = vst [vmem:[#allocation2 + $0xd4] sm:$0x1] %v7740_v0  ;;  %v7285_v4 = vld [vmem:[#allocation7 + $0x80] sm:$0xff]   ;;  %6159 = vmatpush3.bf16.msra.mxu0 %v7284_v3  ;;  %v7289_v8 = vld [vmem:[#allocation7 + $0x88] sm:$0xff]  }
  0x8a   : > { %383 = vst [vmem:[#allocation3] sm:$0xf] %v7740_v0  ;;  %384 = vst [vmem:[#allocation3 + $0x4] sm:$0xf] %v7740_v0  ;;  %6271 = vmatpush3.bf16.msra.mxu1 %v7285_v4  ;;  %6160 = vmatprep.subr.bf16.mxu0 %v7286_v5  ;;  %v7290_v9 = vld [vmem:[#allocation7 + $0x50] sm:$0xff]   ;;  %v7294_v13 = vld [vmem:[#allocation7 + $0x58] sm:$0xff]  }
  0x8b   : > { %385 = vst [vmem:[#allocation3 + $0x8] sm:$0x1] %v7740_v0  ;;  %387 = vst [vmem:[#allocation3 + $0xcc] sm:$0xf] %v7740_v0  ;;  %6272 = vmatprep.subr.bf16.mxu1 %v7287_v6  ;;  %v7291_v10 = vld [vmem:[#allocation7 + $0xd0] sm:$0xff]   ;;  %v7295_v14 = vld [vmem:[#allocation7 + $0xd8] sm:$0xff]  }
  0x8c   : > { %388 = vst [vmem:[#allocation3 + $0xd0] sm:$0xf] %v7740_v0  ;;  %389 = vst [vmem:[#allocation3 + $0xd4] sm:$0x1] %v7740_v0  ;;  %v7292_v11 = vld [vmem:[#allocation7 + $0x10] sm:$0xff]   ;;  %v7296_v15 = vld [vmem:[#allocation7 + $0x18] sm:$0xff]  }
  0x8d   : > { %6161 = vmatpush3.bf16.msra.mxu0 %v7288_v7  ;;  %v7293_v12 = vld [vmem:[#allocation7 + $0x90] sm:$0xff]   ;;  %vm327_vm0 = vsmask.f32 7938  ;;  %vm271_vm1 = vsmask.f32 256  ;;  %v7297_v16 = vld [vmem:[#allocation7 + $0x98] sm:$0xff]  }
  0x8e   : > { %6273 = vmatpush3.bf16.msra.mxu1 %v7289_v8  ;;  %6162 = vmatprep.subr.bf16.mxu0 %v7290_v9  ;;  %v7298_v17 = vld [vmem:[#allocation7 + $0x60] sm:$0xff]   ;;  %v7302_v21 = vld [vmem:[#allocation7 + $0x68] sm:$0xff]   ;;  %vm7983_vm3 = vmand %vm270_vm2, %vm327_vm0  ;;  %vm626_vm5 = vsmask.f32 4368  ;;  %vm949_vm6 = vcmask 1043456   ;;  %vm1614_vm9 = vcmask 1046528  }
  0x8f   : > { %6274 = vmatprep.subr.bf16.mxu1 %v7291_v10  ;;  %v7299_v18 = vld [vmem:[#allocation7 + $0xe0] sm:$0xff]   ;;  %v7303_v22 = vld [vmem:[#allocation7 + $0xe8] sm:$0xff]   ;;  %vm7988_vm4 = vmand %vm270_vm2, %vm271_vm1  ;;  %vm1405_vm7 = vsmask.f32 7424  ;;  %s9731_s21 = scalar_lea.vmem [#allocation12], %s5798_s14  ;;  %s6157_s23 = sshll.u32 %s7790_s19, 12 }
  0x90   : > { %v7300_v19 = vld [vmem:[#allocation7 + $0x20] sm:$0xff]   ;;  %v7304_v23 = vld [vmem:[#allocation7 + $0x28] sm:$0xff]   ;;  %v7306_v27 = vld [vmem:[#allocation7 + $0x70] sm:$0xff]   ;;  %s5686_s29 = sshll.u32 %s9731_s21, 4  ;;  %s9877_s8 = scalar_lea.hbm %s9930_s4, %s6157_s23  ;;  %s9879_s29 = int_to_ptr.vmem [resolvable:$true] %s5686_s29 }
  0x91   : > { %6163 = vmatpush3.bf16.msra.mxu0 %v7292_v11  ;;  %v7301_v20 = vld [vmem:[#allocation7 + $0xa0] sm:$0xff]   ;;  %v7305_v25 = vld [vmem:[#allocation7 + $0xa8] sm:$0xff]   ;;  %v7307_v28 = vld [vmem:[#allocation7 + $0xf0] sm:$0xff]   ;;  %s5673_s19 = scalar_lea.sflag [#allocation6], %s7962_s28  ;;  %s7656_s13 = scalar_lea.vmem %s9879_s29, 4096 }
  0x92   : > { %6275 = vmatpush3.bf16.msra.mxu1 %v7293_v12  ;;  %6164 = vmatprep.subr.bf16.mxu0 %v7294_v13  ;;  %v7308_v29 = vld [vmem:[#allocation7 + $0x30] sm:$0xff]   ;;  %v7310_v31 = vld [vmem:[#allocation7 + $0x78] sm:$0xff]   ;;  %v498_v40 = vld [vmem:[%s7968_s26] sm:$0xff]  ;;  %p7657_p10 = scmp.ne.s32.totalorder %s9879_s29, %s7656_s13  ;;  %s7741_s12 = smov [#allocation12]  }
  0x93   : > { %6276 = vmatprep.subr.bf16.mxu1 %v7295_v14  ;;  %v7309_v30 = vld [vmem:[#allocation7 + $0xb0] sm:$0xff]   ;;  %v7311_v32 = vld [vmem:[#allocation7 + $0xf8] sm:$0xff]   ;;  %v499_v41 = vld [vmem:[%s7968_s26 + $0x8] sm:$0xff]  ;;  %v6093_v43 = vpack.c.bf16 %v498_v40, %v498_v40  ;;  %s7660_s30 = sshll.u32 %s7741_s12, 4  ;;  %s7661_s30 = int_to_ptr.vmem [resolvable:$false] %s7660_s30 }
  0x94   : > { %v7312_v33 = vld [vmem:[#allocation7 + $0x38] sm:$0xff]   ;;  %v273_v35 = vld [vmem:[#allocation2] sm:$0x1]  ;;  %v6094_v44 = vpack.c.bf16 %v499_v41, %v499_v41  ;;  %v7317_v45 = vld [vmem:[#allocation7 + $0x140] sm:$0xff]   ;;  %p7658_p3 = pnand %p7657_p10, %p7914_p5  ;;  %s7662_s24 = scalar_lea.vmem %s7661_s30, 8192 }
  0x95   : > { %6165 = vmatpush3.bf16.msra.mxu0 %v7296_v15  ;;  %v7313_v34 = vld [vmem:[#allocation7 + $0xb8] sm:$0xff]   ;;  %v274_v37 = vsel %vm7988_vm4, 0, %v273_v35  ;;  %v629_v46 = vshrl.u32 %v6093_v43, 16  ;;  %v632_v47 = vshll.u32 %v6093_v43, 16  ;;  %v332_v50 = vld [vmem:[#allocation2 + $0x14] sm:$0x1]  ;;  %vm8009_vm8 = vmor %vm271_vm1, %vm626_vm5  ;;  %p7663_p12 = scmp.lt.s32.totalorder %s9879_s29, %s7661_s30  ;;  %p7664_p2 = scmp.lt.s32.totalorder %s7662_s24, %s7656_s13 }
  0x96   : > { %6277 = vmatpush3.bf16.msra.mxu1 %v7297_v16  ;;  %6166 = vmatprep.subr.bf16.mxu0 %v7298_v17  ;;  %v329_v36 = vld [vmem:[#allocation2 + $0x8] sm:$0x1]  ;;  %v276_v39 = vld [vmem:[#allocation2 + $0xc] sm:$0x1]  ;;  %275 = vst [vmem:[#allocation2] sm:$0x1] %v274_v37  ;;  %vm8018_vm10 = vmand %vm949_vm6, %vm327_vm0  ;;  %p7659_p7 = pneg %p7658_p3 }
  0x97   : > { %6278 = vmatprep.subr.bf16.mxu1 %v7299_v18  ;;  %v330_v38 = vsel %vm7983_vm3, 0, %v329_v36  ;;  %v277_v42 = vsel %vm7988_vm4, 0, %v276_v39  ;;  %v637_v48 = vshrl.u32 %v6094_v44, 16  ;;  %v640_v49 = vshll.u32 %v6094_v44, 16  ;;  %v279_v52 = vld [vmem:[#allocation2 + $0x18] sm:$0x1]  ;;  %p7665_p1 = por %p7664_p2, %p7663_p12 }
  0x98   : > { %331 = vst [vmem:[#allocation2 + $0x8] sm:$0x1] %v330_v38  ;;  %278 = vst [vmem:[#allocation2 + $0xc] sm:$0x1] %v277_v42  ;;  %v333_v51 = vsel %vm7983_vm3, 0, %v332_v50  ;;  %v500_v53 = vld [vmem:[%s7968_s26 + $0x10] sm:$0xff] }
  0x99   : > { %6167 = vmatpush3.bf16.msra.mxu0 %v7300_v19  ;;  %v501_v54 = vld [vmem:[%s7968_s26 + $0x18] sm:$0xff]  ;;  %v631_v55 = vrot.slane %v629_v46, 7  ;;  %v639_v56 = vrot.slane %v637_v48, 7  ;;  %334 = vst [vmem:[#allocation2 + $0x14] sm:$0x1] %v333_v51  ;;  %v280_v57 = vsel %vm7988_vm4, 0, %v279_v52  ;;  %v6095_v58 = vpack.c.bf16 %v500_v53, %v500_v53  ;;  %p7666_p4 = pnand %p7665_p1, %p7659_p7 }
  0x9a   : > { %6279 = vmatpush3.bf16.msra.mxu1 %v7301_v20  ;;  %6168 = vmatprep.subr.bf16.mxu0 %v7302_v21  ;;  %v335_v59 = vld [vmem:[#allocation2 + $0x20] sm:$0x1]  ;;  %v502_v60 = vld [vmem:[%s7968_s26 + $0x20] sm:$0xff]  ;;  %281 = vst [vmem:[#allocation2 + $0x18] sm:$0x1] %v280_v57  ;;  %v6096_v62 = vpack.c.bf16 %v501_v54, %v501_v54  ;;  %v503_v0 = vld [vmem:[%s7968_s26 + $0x28] sm:$0xff] }
  0x9b   : > { %6280 = vmatprep.subr.bf16.mxu1 %v7303_v22  ;;  %v336_v63 = vsel %vm7983_vm3, 0, %v335_v59  ;;  %v634_v1 = vor.u32 %v632_v47, %v631_v55  ;;  %v635_v2 = vrot.slane %v631_v55, 4  ;;  %v642_v3 = vor.u32 %v640_v49, %v639_v56  ;;  %v282_v6 = vld [vmem:[#allocation2 + $0x24] sm:$0x1]  ;;  %v338_v36 = vld [vmem:[#allocation2 + $0x2c] sm:$0x1] }
  0x9c   : > { %v644_v5 = vrot.slane %v639_v56, 4  ;;  %337 = vst [vmem:[#allocation2 + $0x20] sm:$0x1] %v336_v63  ;;  %v646_v8 = vshrl.u32 %v6095_v58, 16  ;;  %v6097_v9 = vpack.c.bf16 %v502_v60, %v502_v60  ;;  %v649_v13 = vshll.u32 %v6095_v58, 16  ;;  %v7323_v42 = vld [vmem:[#allocation7 + $0x148] sm:$0xff]  }
  0x9d   : > { %6169 = vmatpush3.bf16.msra.mxu0 %v7304_v23  ;;  %v7314_v7 = vld [vmem:[#allocation2] sm:$0xff]   ;;  %v643_v11 = vsel %vm8009_vm8, %v635_v2, %v642_v3  ;;  %v8024_v14 = vpack.c.bf16 %v503_v0, %v503_v0  ;;  %v654_v22 = vshrl.u32 %v6096_v62, 16  ;;  %v285_v48 = vld [vmem:[#allocation2 + $0x30] sm:$0x1]  ;;  %v505_v49 = vld [vmem:[%s7968_s26 + $0x38] sm:$0xff]  ;;  %v339_v59 = vsel %vm7983_vm3, 0, %v338_v36 }
  0x9e   : > { %6281 = vmatpush3.bf16.msra.mxu1 %v7305_v25  ;;  %6170 = vmatprep.subr.bf16.mxu0 %v7306_v27  ;;  %v1407_v15 = vshrl.u32 %v7314_v7, 16  ;;  %v1409_v16 = vshll.u32 %v7314_v7, 16  ;;  %954 = vst [vmem:[#allocation2 + $0x10] sm:$0xf] %v643_v11  ;;  %v1615_v18 = vrot.slane %v7314_v7, 1  ;;  %v648_v21 = vrot.slane %v646_v8, 7 }
  0x9f   : > { %6282 = vmatprep.subr.bf16.mxu1 %v7307_v28  ;;  %v7315_v10 = vld [vmem:[#allocation2 + $0x8] ss:$0 sps:$4 sm:$0x11]   ;;  %v951_v12 = vld [vmem:[#allocation2 + $0xc] sm:$0xf]  ;;  %v657_v27 = vshll.u32 %v6096_v62, 16  ;;  %v6100_v3 = vpack.c.bf16 %v505_v49, %v505_v49 }
  0xa0   : > { %v952_v17 = vsel %vm8018_vm10, %v634_v1, %v951_v12  ;;  %v1414_v19 = vshll.u32 %v7315_v10, 16  ;;  %v1616_v20 = vrot.slane %v7315_v10, 1  ;;  %v1411_v23 = vrot.slane %v1409_v16, 1  ;;  %v955_v25 = vld [vmem:[#allocation2 + $0x14] sm:$0x1]  ;;  %v504_v43 = vld [vmem:[%s7968_s26 + $0x30] sm:$0xff] }
  0xa1   : > { %6171 = vmatpush3.bf16.msra.mxu0 %v7308_v29  ;;  %953 = vst [vmem:[#allocation2 + $0xc] sm:$0xf] %v952_v17  ;;  %v283_v28 = vsel %vm7988_vm4, 0, %v282_v6  ;;  %v663_v29 = vshrl.u32 %v6097_v9, 16  ;;  %v958_v35 = vld [vmem:[#allocation2 + $0x18] sm:$0xf]  ;;  %v6099_v2 = vpack.c.bf16 %v504_v43, %v504_v43 }
  0xa2   : > { %6283 = vmatpush3.bf16.msra.mxu1 %v7309_v30  ;;  %6172 = vmatprep.subr.bf16.mxu0 %v7310_v31  ;;  %v1416_v30 = vrot.slane %v1414_v19, 1  ;;  %v1617_v31 = vsel %vm1614_vm9, %v1615_v18, %v1616_v20  ;;  %284 = vst [vmem:[#allocation2 + $0x24] sm:$0x1] %v283_v28  ;;  %v1412_v37 = vor.u32 %v1411_v23, %v1407_v15  ;;  %v652_v38 = vrot.slane %v648_v21, 4  ;;  %v341_v54 = vld [vmem:[#allocation2 + $0x38] sm:$0x1] }
  0xa3   : > { %6284 = vmatprep.subr.bf16.mxu1 %v7311_v32  ;;  %v7318_v32 = vld [vmem:[#allocation7 + $0x100] sm:$0xff]   ;;  %v656_v39 = vrot.slane %v654_v22, 7  ;;  %v962_v40 = vld [vmem:[#allocation2 + $0x20] sm:$0x1]  ;;  %v665_v41 = vrot.slane %v663_v29, 7  ;;  %v671_v46 = vshrl.u32 %v8024_v14, 16 }
  0xa4   : > { %v674_v47 = vshll.u32 %v8024_v14, 16  ;;  %v1417_v50 = vsel %vm1405_vm7, %v1412_v37, %v1416_v30  ;;  %v288_v55 = vld [vmem:[#allocation2 + $0x3c] sm:$0x1]  ;;  %v286_v60 = vsel %vm7988_vm4, 0, %v285_v48  ;;  %v506_v62 = vld [vmem:[%s7968_s26 + $0x40] sm:$0xff]  ;;  %v680_v14 = vshrl.u32 %v6099_v2, 16 }
  0xa5   : > { %6173 = vmatpush3.bf16.msra.mxu0 %v7312_v33  ;;  %v956_v33 = vsel %vm7988_vm4, %v644_v5, %v955_v25  ;;  %v659_v51 = vor.u32 %v657_v27, %v656_v39  ;;  %v661_v52 = vrot.slane %v656_v39, 4  ;;  %v669_v53 = vrot.slane %v665_v41, 4  ;;  %2195 = vmatprep.mubr.bf16.mxu0 %v1417_v50  ;;  %v7324_v58 = vld [vmem:[#allocation7 + $0x108] sm:$0xff]   ;;  %340 = vst [vmem:[#allocation2 + $0x2c] sm:$0x1] %v339_v59  ;;  %v7330_v30 = vld [vmem:[#allocation7 + $0x110] sm:$0xff]  }
  0xa6   : > { %6285 = vmatpush3.bf16.msra.mxu1 %v7313_v34  ;;  %6382 = vmatprep.subr.bf16.mxu0 %v7317_v45  ;;  %v651_v34 = vor.u32 %v649_v13, %v648_v21  ;;  %957 = vst [vmem:[#allocation2 + $0x14] sm:$0x1] %v956_v33  ;;  %v666_v45 = vshll.u32 %v6097_v9, 16  ;;  %v8040_v57 = vrot.slane %v671_v46, 7  ;;  %287 = vst [vmem:[#allocation2 + $0x30] sm:$0x1] %v286_v60 }
  0xa7   : > { %v660_v0 = vsel %vm8009_vm8, %v652_v38, %v659_v51  ;;  %v963_v1 = vsel %vm7988_vm4, %v661_v52, %v962_v40  ;;  %v289_v8 = vsel %vm7988_vm4, 0, %v288_v55  ;;  %v7329_v9 = vld [vmem:[#allocation7 + $0x150] sm:$0xff]   ;;  %v507_v15 = vld [vmem:[%s7968_s26 + $0x48] sm:$0xff]  ;;  %v683_v19 = vshll.u32 %v6099_v2, 16  ;;  %v7490_v26 = vld [vmem:[#allocation9 + $0x218] sm:$0xff]  }
  0xa8   : > { %v959_v44 = vsel %vm8018_vm10, %v651_v34, %v958_v35  ;;  %v668_v56 = vor.u32 %v666_v45, %v665_v41  ;;  %v8047_v63 = vld [vmem:[#allocation2 + $0xc] sm:$0xff]   ;;  %2196 = vmatmul.mubr.bf16.vlgmr.msra.gmra.mrb[0].mxu0 %v7314_v7  ;;  %961 = vst [vmem:[#allocation2 + $0x1c] sm:$0xf] %v660_v0  ;;  %964 = vst [vmem:[#allocation2 + $0x20] sm:$0x1] %v963_v1  ;;  %v676_v5 = vor.u32 %v674_v47, %v8040_v57  ;;  %v508_v35 = vld [vmem:[%s7968_s26 + $0x50] sm:$0xff] }
  0xa9   : > { %960 = vst [vmem:[#allocation2 + $0x18] sm:$0xf] %v959_v44  ;;  %6383 = vmatpush3.bf16.msra.mxu0 %v7318_v32  ;;  %v678_v6 = vrot.slane %v8040_v57, 4  ;;  %v342_v7 = vsel %vm7983_vm3, 0, %v341_v54  ;;  %2356 = vmatprep.mubr.bf16.mxu1 %v8047_v63  ;;  %v1419_v10 = vshrl.u32 %v8047_v63, 16  ;;  %v1421_v11 = vshll.u32 %v8047_v63, 16 }
  0xaa   : > { %v1618_v12 = vrot.slane %v8047_v63, 1  ;;  %v965_v13 = vld [vmem:[#allocation2 + $0x24] sm:$0xf]  ;;  %6384 = vmatprep.subr.bf16.mxu0 %v7323_v42  ;;  %343 = vst [vmem:[#allocation2 + $0x38] sm:$0x1] %v342_v7  ;;  %2357 = vmatmul.mubr.bf16.vlgmr.msra.gmra.mrb[0].mxu1 %v1617_v31  ;;  %v677_v17 = vsel %vm8009_vm8, %v669_v53, %v676_v5  ;;  %v6101_v20 = vpack.c.bf16 %v506_v62, %v506_v62  ;;  %v682_v22 = vrot.slane %v680_v14, 7 }
  0xab   : > { %290 = vst [vmem:[#allocation2 + $0x3c] sm:$0x1] %v289_v8  ;;  %v966_v18 = vsel %vm8018_vm10, %v668_v56, %v965_v13  ;;  %v1423_v21 = vrot.slane %v1421_v11, 1  ;;  %968 = vst [vmem:[#allocation2 + $0x28] sm:$0xf] %v677_v17  ;;  %v688_v23 = vshrl.u32 %v6100_v3, 16  ;;  %v6102_v40 = vpack.c.bf16 %v507_v15, %v507_v15 }
  0xac   : > { %967 = vst [vmem:[#allocation2 + $0x24] sm:$0xf] %v966_v18  ;;  %v691_v25 = vshll.u32 %v6100_v3, 16  ;;  %v697_v29 = vshrl.u32 %v6101_v20, 16  ;;  %v685_v32 = vor.u32 %v683_v19, %v682_v22  ;;  %v686_v33 = vrot.slane %v682_v22, 4  ;;  %v509_v57 = vld [vmem:[%s7968_s26 + $0x58] sm:$0xff] }
  0xad   : > { %v7319_v16 = vld [vmem:[#allocation2 + $0x14] ss:$0 sps:$4 sm:$0x11]   ;;  %6385 = vmatpush3.bf16.msra.mxu0 %v7324_v58  ;;  %v1424_v31 = vor.u32 %v1423_v21, %v1419_v10  ;;  %v690_v34 = vrot.slane %v688_v23, 7  ;;  %v969_v38 = vld [vmem:[#allocation2 + $0x2c] sm:$0x1]  ;;  %v6103_v0 = vpack.c.bf16 %v508_v35, %v508_v35 }
  0xae   : > { %v1426_v27 = vshll.u32 %v7319_v16, 16  ;;  %v1619_v28 = vrot.slane %v7319_v16, 1  ;;  %6386 = vmatprep.subr.bf16.mxu0 %v7329_v9  ;;  %v972_v39 = vld [vmem:[#allocation2 + $0x30] sm:$0xf]  ;;  %v8072_v41 = vrot.slane %v697_v29, 7  ;;  %v970_v43 = vsel %vm7988_vm4, %v678_v6, %v969_v38  ;;  %v511_v19 = vld [vmem:[%s7968_s26 + $0x68] sm:$0xff] }
  0xaf   : > { %v693_v44 = vor.u32 %v691_v25, %v690_v34  ;;  %v973_v45 = vsel %vm8018_vm10, %v685_v32, %v972_v39  ;;  %v695_v46 = vrot.slane %v690_v34, 4  ;;  %v7321_v48 = vld [vmem:[#allocation2 + $0x20] ss:$0 sps:$4 sm:$0x11]   ;;  %971 = vst [vmem:[#allocation2 + $0x2c] sm:$0x1] %v970_v43 }
  0xb0   : > { %v1428_v36 = vrot.slane %v1426_v27, 1  ;;  %v8070_v37 = vsel %vm1614_vm9, %v1618_v12, %v1619_v28  ;;  %v8074_v42 = vld [vmem:[#allocation2 + $0x18] sm:$0xff]   ;;  %974 = vst [vmem:[#allocation2 + $0x30] sm:$0xf] %v973_v45  ;;  %v700_v50 = vshll.u32 %v6101_v20, 16  ;;  %v1438_v58 = vshll.u32 %v7321_v48, 16 }
  0xb1   : > { %v976_v49 = vld [vmem:[#allocation2 + $0x38] sm:$0x1]  ;;  %6387 = vmatpush3.bf16.msra.mxu0 %v7330_v30  ;;  %2364 = vmatprep.mubr.bf16.mxu1 %v8074_v42  ;;  %v1431_v51 = vshrl.u32 %v8074_v42, 16  ;;  %v1433_v52 = vshll.u32 %v8074_v42, 16  ;;  %v1621_v53 = vrot.slane %v8074_v42, 1  ;;  %v694_v54 = vsel %vm8009_vm8, %v686_v33, %v693_v44  ;;  %v510_v14 = vld [vmem:[%s7968_s26 + $0x60] sm:$0xff] }
  0xb2   : > { %v8081_v47 = vsel %vm1405_vm7, %v1424_v31, %v1428_v36  ;;  %v979_v55 = vld [vmem:[#allocation2 + $0x3c] sm:$0xf]  ;;  %v344_v56 = vld [vmem:[#allocation2 + $0x44] sm:$0x1]  ;;  %2365 = vmatmul.mubr.bf16.gmra.mrb[4].mxu1 %v8070_v37  ;;  %975 = vst [vmem:[#allocation2 + $0x34] sm:$0xf] %v694_v54  ;;  %v977_v60 = vsel %vm7988_vm4, %v695_v46, %v976_v49  ;;  %v702_v62 = vor.u32 %v700_v50, %v8072_v41 }
  0xb3   : > { %2203 = vmatprep.mubr.bf16.mxu0 %v8081_v47  ;;  %v8093_v59 = vld [vmem:[#allocation2 + $0x24] sm:$0xff]   ;;  %v1435_v1 = vrot.slane %v1433_v52, 1  ;;  %v1622_v2 = vrot.slane %v7321_v48, 1  ;;  %978 = vst [vmem:[#allocation2 + $0x38] sm:$0x1] %v977_v60  ;;  %v705_v3 = vshrl.u32 %v6102_v40, 16  ;;  %v8130_v43 = vpack.c.bf16 %v510_v14, %v510_v14 }
  0xb4   : > { %2204 = vmatmul.mubr.bf16.gmra.mrb[4].mxu0 %v8047_v63  ;;  %v291_v5 = vld [vmem:[#allocation2 + $0x48] sm:$0x1]  ;;  %v8098_v63 = vpack.c.bf16 %v509_v57, %v509_v57  ;;  %v1440_v6 = vrot.slane %v1438_v58, 1  ;;  %2372 = vmatprep.mubr.bf16.mxu1 %v8093_v59  ;;  %v1443_v7 = vshrl.u32 %v8093_v59, 16  ;;  %v1445_v8 = vshll.u32 %v8093_v59, 16  ;;  %v7341_v14 = vld [vmem:[#allocation7 + $0x160] sm:$0xff]  }
  0xb5   : > { %v703_v9 = vrot.slane %v8072_v41, 4  ;;  %v1436_v10 = vor.u32 %v1435_v1, %v1431_v51  ;;  %v1624_v11 = vrot.slane %v8093_v59, 1  ;;  %v707_v12 = vrot.slane %v705_v3, 7  ;;  %v7335_v20 = vld [vmem:[#allocation7 + $0x158] sm:$0xff]   ;;  %v347_v39 = vld [vmem:[#allocation2 + $0x50] sm:$0x1] }
  0xb6   : > { %v708_v13 = vshll.u32 %v6102_v40, 16  ;;  %v1447_v15 = vrot.slane %v1445_v8, 1  ;;  %v980_v16 = vsel %vm8018_vm10, %v702_v62, %v979_v55  ;;  %v345_v17 = vsel %vm7983_vm3, 0, %v344_v56  ;;  %v7325_v23 = vld [vmem:[#allocation2 + $0x2c] ss:$0 sps:$4 sm:$0x11]   ;;  %6388 = vmatprep.subr.bf16.mxu0 %v7335_v20 }
  0xb7   : > { %v292_v18 = vsel %vm7988_vm4, 0, %v291_v5  ;;  %v8114_v21 = vsel %vm1405_vm7, %v1436_v10, %v1440_v6  ;;  %v8117_v22 = vsel %vm1614_vm9, %v1621_v53, %v1622_v2  ;;  %981 = vst [vmem:[#allocation2 + $0x3c] sm:$0xf] %v980_v16  ;;  %346 = vst [vmem:[#allocation2 + $0x44] sm:$0x1] %v345_v17  ;;  %v712_v27 = vrot.slane %v707_v12, 4 }
  0xb8   : > { %v710_v25 = vor.u32 %v708_v13, %v707_v12  ;;  %293 = vst [vmem:[#allocation2 + $0x48] sm:$0x1] %v292_v18  ;;  %2211 = vmatprep.mubr.bf16.mxu0 %v8114_v21  ;;  %v1448_v28 = vor.u32 %v1447_v15, %v1443_v7  ;;  %v714_v29 = vshrl.u32 %v6103_v0, 16  ;;  %v717_v30 = vshll.u32 %v6103_v0, 16  ;;  %v7336_v32 = vld [vmem:[#allocation7 + $0x118] sm:$0xff]   ;;  %v7342_v20 = vld [vmem:[#allocation7 + $0x120] sm:$0xff]  }
  0xb9   : > { %v722_v31 = vshrl.u32 %v8098_v63, 16  ;;  %v1450_v33 = vshll.u32 %v7325_v23, 16  ;;  %v8121_v34 = vld [vmem:[#allocation2 + $0x30] sm:$0xff]   ;;  %v1625_v35 = vrot.slane %v7325_v23, 1  ;;  %v725_v38 = vshll.u32 %v8098_v63, 16  ;;  %6389 = vmatpush3.bf16.msra.mxu0 %v7336_v32  ;;  %v513_v8 = vld [vmem:[%s7968_s26 + $0x78] sm:$0xff] }
  0xba   : > { %v711_v36 = vsel %vm8009_vm8, %v703_v9, %v710_v25  ;;  %2373 = vmatmul.mubr.bf16.gmra.mrb[8].mxu1 %v8117_v22  ;;  %v8128_v40 = vld [vmem:[#allocation2 + $0x38] ss:$0 sps:$4 sm:$0x11]   ;;  %v716_v41 = vrot.slane %v714_v29, 7  ;;  %v1455_v45 = vshrl.u32 %v8121_v34, 16  ;;  %v1457_v46 = vshll.u32 %v8121_v34, 16  ;;  %6390 = vmatprep.subr.bf16.mxu0 %v7341_v14 }
  0xbb   : > { %982 = vst [vmem:[#allocation2 + $0x40] sm:$0xf] %v711_v36  ;;  %v1452_v44 = vrot.slane %v1450_v33, 1  ;;  %2380 = vmatprep.mubr.bf16.mxu1 %v8121_v34  ;;  %v294_v48 = vld [vmem:[#allocation2 + $0x54] sm:$0x1]  ;;  %v8135_v49 = vpack.c.bf16 %v511_v19, %v511_v19  ;;  %v1462_v50 = vshll.u32 %v8128_v40, 16  ;;  %v8148_v58 = vsel %vm1614_vm9, %v1624_v11, %v1625_v35 }
  0xbc   : > { %2212 = vmatmul.mubr.bf16.gmra.mrb[8].mxu0 %v8074_v42  ;;  %v512_v42 = vld [vmem:[%s7968_s26 + $0x70] sm:$0xff]  ;;  %v1627_v51 = vrot.slane %v8121_v34, 1  ;;  %v1628_v52 = vrot.slane %v8128_v40, 1  ;;  %v719_v53 = vor.u32 %v717_v30, %v716_v41  ;;  %v1459_v55 = vrot.slane %v1457_v46, 1  ;;  %v350_v7 = vld [vmem:[#allocation2 + $0x5c] sm:$0x1] }
  0xbd   : > { %v8142_v54 = vsel %vm1405_vm7, %v1448_v28, %v1452_v44  ;;  %v720_v56 = vrot.slane %v716_v41, 4  ;;  %v8144_v57 = vrot.slane %v722_v31, 7  ;;  %v1464_v60 = vrot.slane %v1462_v50, 1  ;;  %v297_v13 = vld [vmem:[#allocation2 + $0x60] sm:$0x1]  ;;  %v514_v41 = vld [vmem:[%s7968_s26 + $0x80] sm:$0xff]  ;;  %6391 = vmatpush3.bf16.msra.mxu0 %v7342_v20 }
  0xbe   : > { %2219 = vmatprep.mubr.bf16.mxu0 %v8142_v54  ;;  %v983_v62 = vld [vmem:[#allocation2 + $0x44] sm:$0x1]  ;;  %v348_v0 = vsel %vm7983_vm3, 0, %v347_v39  ;;  %v8152_v1 = vpack.c.bf16 %v512_v42, %v512_v42  ;;  %v1460_v2 = vor.u32 %v1459_v55, %v1455_v45  ;;  %v295_v10 = vsel %vm7988_vm4, 0, %v294_v48  ;;  %v353_v29 = vld [vmem:[#allocation2 + $0x68] sm:$0x1] }
  0xbf   : > { %v984_v3 = vsel %vm7988_vm4, %v712_v27, %v983_v62  ;;  %v727_v5 = vor.u32 %v725_v38, %v8144_v57  ;;  %v986_v63 = vld [vmem:[#allocation2 + $0x48] sm:$0xf]  ;;  %349 = vst [vmem:[#allocation2 + $0x50] sm:$0x1] %v348_v0  ;;  %v729_v6 = vrot.slane %v8144_v57, 4  ;;  %v731_v11 = vshrl.u32 %v8130_v43, 16 }
  0xc0   : > { %985 = vst [vmem:[#allocation2 + $0x44] sm:$0x1] %v984_v3  ;;  %v987_v9 = vsel %vm8018_vm10, %v719_v53, %v986_v63  ;;  %v734_v12 = vshll.u32 %v8130_v43, 16  ;;  %v8166_v15 = vsel %vm1405_vm7, %v1460_v2, %v1464_v60  ;;  %296 = vst [vmem:[#allocation2 + $0x54] sm:$0x1] %v295_v10  ;;  %v739_v18 = vshrl.u32 %v8135_v49, 16 }
  0xc1   : > { %v728_v17 = vsel %vm8009_vm8, %v720_v56, %v727_v5  ;;  %988 = vst [vmem:[#allocation2 + $0x48] sm:$0xf] %v987_v9  ;;  %v742_v19 = vshll.u32 %v8135_v49, 16  ;;  %v733_v23 = vrot.slane %v731_v11, 7  ;;  %v351_v25 = vsel %vm7983_vm3, 0, %v350_v7  ;;  %v515_v48 = vld [vmem:[%s7968_s26 + $0x88] sm:$0xff] }
  0xc2   : > { %v8168_v16 = vld [vmem:[#allocation2 + $0x3c] sm:$0xff]   ;;  %2381 = vmatmul.mubr.bf16.gmra.mrb[12].mxu1 %v8148_v58  ;;  %989 = vst [vmem:[#allocation2 + $0x4c] sm:$0xf] %v728_v17  ;;  %v298_v27 = vsel %vm7988_vm4, 0, %v297_v13  ;;  %v6108_v28 = vpack.c.bf16 %v513_v8, %v513_v8  ;;  %v741_v32 = vrot.slane %v739_v18, 7  ;;  %v748_v38 = vshrl.u32 %v8152_v1, 16 }
  0xc3   : > { %2388 = vmatprep.mubr.bf16.mxu1 %v8168_v16  ;;  %v1467_v30 = vshrl.u32 %v8168_v16, 16  ;;  %v1630_v31 = vrot.slane %v8168_v16, 1  ;;  %352 = vst [vmem:[#allocation2 + $0x5c] sm:$0x1] %v351_v25  ;;  %299 = vst [vmem:[#allocation2 + $0x60] sm:$0x1] %v298_v27  ;;  %v736_v35 = vor.u32 %v734_v12, %v733_v23  ;;  %v8198_v56 = vsel %vm1614_vm9, %v1627_v51, %v1628_v52 }
  0xc4   : > { %2220 = vmatmul.mubr.bf16.gmra.mrb[12].mxu0 %v8093_v59  ;;  %v1469_v59 = vshll.u32 %v8168_v16, 16  ;;  %v300_v33 = vld [vmem:[#allocation2 + $0x6c] sm:$0x1]  ;;  %v737_v36 = vrot.slane %v733_v23, 4  ;;  %v751_v39 = vshll.u32 %v8152_v1, 16  ;;  %v744_v44 = vor.u32 %v742_v19, %v741_v32  ;;  %v516_v51 = vld [vmem:[%s7968_s26 + $0x90] sm:$0xff] }
  0xc5   : > { %2227 = vmatprep.mubr.bf16.mxu0 %v8166_v15  ;;  %v746_v45 = vrot.slane %v741_v32, 4  ;;  %v756_v46 = vshrl.u32 %v6108_v28, 16  ;;  %v750_v42 = vrot.slane %v748_v38, 7  ;;  %v759_v50 = vshll.u32 %v6108_v28, 16  ;;  %v517_v9 = vld [vmem:[%s7968_s26 + $0x98] sm:$0xff]  ;;  %v7347_v10 = vld [vmem:[#allocation7 + $0x168] sm:$0xff]  }
  0xc6   : > { %v1471_v43 = vrot.slane %v1469_v59, 1  ;;  %v990_v49 = vld [vmem:[#allocation2 + $0x50] sm:$0x1]  ;;  %v354_v53 = vsel %vm7983_vm3, 0, %v353_v29  ;;  %v301_v55 = vsel %vm7988_vm4, 0, %v300_v33  ;;  %v745_v62 = vsel %vm8009_vm8, %v737_v36, %v744_v44  ;;  %6392 = vmatprep.subr.bf16.mxu0 %v7347_v10  ;;  %v7348_v25 = vld [vmem:[#allocation7 + $0x128] sm:$0xff]  }
  0xc7   : > { %v7331_v57 = vld [vmem:[#allocation2 + $0x44] ss:$0 sps:$4 sm:$0x11]   ;;  %v991_v60 = vsel %vm7988_vm4, %v729_v6, %v990_v49  ;;  %v758_v0 = vrot.slane %v756_v46, 7  ;;  %355 = vst [vmem:[#allocation2 + $0x68] sm:$0x1] %v354_v53  ;;  %v753_v40 = vor.u32 %v751_v39, %v750_v42  ;;  %v6109_v5 = vpack.c.bf16 %v514_v41, %v514_v41  ;;  %6393 = vmatpush3.bf16.msra.mxu0 %v7348_v25 }
  0xc8   : > { %302 = vst [vmem:[#allocation2 + $0x6c] sm:$0x1] %v301_v55  ;;  %v1472_v1 = vor.u32 %v1471_v43, %v1467_v30  ;;  %992 = vst [vmem:[#allocation2 + $0x50] sm:$0x1] %v991_v60  ;;  %v993_v2 = vld [vmem:[#allocation2 + $0x54] sm:$0xf]  ;;  %v6110_v14 = vpack.c.bf16 %v515_v48, %v515_v48  ;;  %v8215_v23 = vpack.c.bf16 %v516_v51, %v516_v51 }
  0xc9   : > { %996 = vst [vmem:[#allocation2 + $0x58] sm:$0xf] %v745_v62  ;;  %v754_v3 = vrot.slane %v750_v42, 4  ;;  %v1474_v52 = vshll.u32 %v7331_v57, 16  ;;  %v8205_v63 = vld [vmem:[#allocation2 + $0x48] sm:$0xff]   ;;  %v1631_v7 = vrot.slane %v7331_v57, 1  ;;  %v994_v6 = vsel %vm8018_vm10, %v736_v35, %v993_v2 }
  0xca   : > { %v761_v8 = vor.u32 %v759_v50, %v758_v0  ;;  %2389 = vmatmul.mubr.bf16.gmra.mrb[16].mxu1 %v8198_v56  ;;  %995 = vst [vmem:[#allocation2 + $0x54] sm:$0xf] %v994_v6  ;;  %v997_v11 = vld [vmem:[#allocation2 + $0x5c] sm:$0x1]  ;;  %v1000_v12 = vld [vmem:[#allocation2 + $0x60] sm:$0xf]  ;;  %v8228_v44 = vpack.c.bf16 %v517_v9, %v517_v9 }
  0xcb   : > { %v763_v13 = vrot.slane %v758_v0, 4  ;;  %v765_v17 = vshrl.u32 %v6109_v5, 16  ;;  %v1476_v18 = vrot.slane %v1474_v52, 1  ;;  %2396 = vmatprep.mubr.bf16.mxu1 %v8205_v63  ;;  %v1479_v19 = vshrl.u32 %v8205_v63, 16  ;;  %v356_v30 = vld [vmem:[#allocation2 + $0x74] sm:$0x1] }
  0xcc   : > { %2228 = vmatmul.mubr.bf16.gmra.mrb[16].mxu0 %v8121_v34  ;;  %v1481_v20 = vshll.u32 %v8205_v63, 16  ;;  %v1633_v34 = vrot.slane %v8205_v63, 1  ;;  %v998_v27 = vsel %vm7988_vm4, %v746_v45, %v997_v11  ;;  %v762_v28 = vsel %vm8009_vm8, %v754_v3, %v761_v8  ;;  %v303_v36 = vld [vmem:[#allocation2 + $0x78] sm:$0x1]  ;;  %v518_v2 = vld [vmem:[%s7968_s26 + $0xa0] sm:$0xff] }
  0xcd   : > { %v1001_v29 = vsel %vm8018_vm10, %v753_v40, %v1000_v12  ;;  %v8225_v59 = vsel %vm1405_vm7, %v1472_v1, %v1476_v18  ;;  %999 = vst [vmem:[#allocation2 + $0x5c] sm:$0x1] %v998_v27  ;;  %1003 = vst [vmem:[#allocation2 + $0x64] sm:$0xf] %v762_v28  ;;  %v767_v33 = vrot.slane %v765_v17, 7  ;;  %v768_v35 = vshll.u32 %v6109_v5, 16 }
  0xce   : > { %v1483_v32 = vrot.slane %v1481_v20, 1  ;;  %1002 = vst [vmem:[#allocation2 + $0x60] sm:$0xf] %v1001_v29  ;;  %2235 = vmatprep.mubr.bf16.mxu0 %v8225_v59  ;;  %v1004_v38 = vld [vmem:[#allocation2 + $0x68] sm:$0x1]  ;;  %v773_v39 = vshrl.u32 %v6110_v14, 16  ;;  %v8233_v45 = vsel %vm1614_vm9, %v1630_v31, %v1631_v7 }
  0xcf   : > { %v776_v41 = vshll.u32 %v6110_v14, 16  ;;  %v1007_v43 = vld [vmem:[#allocation2 + $0x6c] sm:$0xf]  ;;  %v7333_v46 = vld [vmem:[#allocation2 + $0x50] ss:$0 sps:$4 sm:$0x11]   ;;  %v1005_v48 = vsel %vm7988_vm4, %v763_v13, %v1004_v38  ;;  %v770_v49 = vor.u32 %v768_v35, %v767_v33  ;;  %v8262_v13 = vpack.c.bf16 %v518_v2, %v518_v2 }
  0xd0   : > { %v771_v42 = vrot.slane %v767_v33, 4  ;;  %1006 = vst [vmem:[#allocation2 + $0x68] sm:$0x1] %v1005_v48  ;;  %v775_v50 = vrot.slane %v773_v39, 7  ;;  %v357_v53 = vsel %vm7983_vm3, 0, %v356_v30  ;;  %v304_v55 = vsel %vm7988_vm4, 0, %v303_v36 }
  0xd1   : > { %v782_v57 = vshrl.u32 %v8215_v23, 16  ;;  %v1484_v31 = vor.u32 %v1483_v32, %v1479_v19  ;;  %v1486_v60 = vshll.u32 %v7333_v46, 16  ;;  %v8242_v62 = vld [vmem:[#allocation2 + $0x54] sm:$0xff]   ;;  %v1634_v0 = vrot.slane %v7333_v46, 1  ;;  %358 = vst [vmem:[#allocation2 + $0x74] sm:$0x1] %v357_v53 }
  0xd2   : > { %v1008_v1 = vsel %vm8018_vm10, %v770_v49, %v1007_v43  ;;  %305 = vst [vmem:[#allocation2 + $0x78] sm:$0x1] %v304_v55  ;;  %2397 = vmatmul.mubr.bf16.gmra.mrb[20].mxu1 %v8233_v45  ;;  %v778_v40 = vor.u32 %v776_v41, %v775_v50  ;;  %v780_v3 = vrot.slane %v775_v50, 4  ;;  %v785_v51 = vshll.u32 %v8215_v23, 16  ;;  %v519_v52 = vld [vmem:[%s7968_s26 + $0xa8] sm:$0xff]  ;;  %v521_v29 = vld [vmem:[%s7968_s26 + $0xb8] sm:$0xff] }
  0xd3   : > { %1009 = vst [vmem:[#allocation2 + $0x6c] sm:$0xf] %v1008_v1  ;;  %v8249_v5 = vrot.slane %v782_v57, 7  ;;  %v1488_v7 = vrot.slane %v1486_v60, 1  ;;  %2404 = vmatprep.mubr.bf16.mxu1 %v8242_v62  ;;  %v1491_v6 = vshrl.u32 %v8242_v62, 16  ;;  %v1493_v8 = vshll.u32 %v8242_v62, 16 }
  0xd4   : > { %2236 = vmatmul.mubr.bf16.gmra.mrb[20].mxu0 %v8168_v16  ;;  %v790_v9 = vshrl.u32 %v8228_v44, 16  ;;  %v520_v16 = vld [vmem:[%s7968_s26 + $0xb0] sm:$0xff]  ;;  %v7337_v10 = vld [vmem:[#allocation2 + $0x5c] ss:$0 sps:$4 sm:$0x11]   ;;  %v779_v12 = vsel %vm8009_vm8, %v771_v42, %v778_v40  ;;  %v1636_v18 = vrot.slane %v8242_v62, 1  ;;  %v8268_v20 = vpack.c.bf16 %v519_v52, %v519_v52 }
  0xd5   : > { %v8258_v11 = vld [vmem:[#allocation2 + $0x60] sm:$0xff]   ;;  %v8265_v14 = vsel %vm1405_vm7, %v1484_v31, %v1488_v7  ;;  %v1495_v17 = vrot.slane %v1493_v8, 1  ;;  %1010 = vst [vmem:[#allocation2 + $0x70] sm:$0xf] %v779_v12  ;;  %v1498_v23 = vshll.u32 %v7337_v10, 16  ;;  %v1637_v25 = vrot.slane %v7337_v10, 1 }
  0xd6   : > { %v359_v19 = vld [vmem:[#allocation2 + $0x80] sm:$0x1]  ;;  %2243 = vmatprep.mubr.bf16.mxu0 %v8265_v14  ;;  %v1503_v27 = vshrl.u32 %v8258_v11, 16  ;;  %v1505_v28 = vshll.u32 %v8258_v11, 16  ;;  %v8277_v30 = vsel %vm1614_vm9, %v1633_v34, %v1634_v0  ;;  %v1639_v35 = vrot.slane %v8258_v11, 1  ;;  %v7491_v24 = vld [vmem:[#allocation9 + $0x220] sm:$0xff]  }
  0xd7   : > { %v1496_v32 = vor.u32 %v1495_v17, %v1491_v6  ;;  %v8279_v33 = vld [vmem:[#allocation2 + $0x68] ss:$0 sps:$4 sm:$0x11]   ;;  %v787_v36 = vor.u32 %v785_v51, %v8249_v5  ;;  %v306_v38 = vld [vmem:[#allocation2 + $0x84] sm:$0x1]  ;;  %v1500_v39 = vrot.slane %v1498_v23, 1  ;;  %v8284_v48 = vpack.c.bf16 %v520_v16, %v520_v16 }
  0xd8   : > { %v1507_v41 = vrot.slane %v1505_v28, 1  ;;  %v1011_v43 = vld [vmem:[#allocation2 + $0x74] sm:$0x1]  ;;  %v788_v46 = vrot.slane %v8249_v5, 4  ;;  %v7353_v49 = vld [vmem:[#allocation7 + $0x170] sm:$0xff]   ;;  %v1510_v42 = vshll.u32 %v8279_v33, 16  ;;  %v8315_v6 = vsel %vm1614_vm9, %v1636_v18, %v1637_v25 }
  0xd9   : > { %v1640_v34 = vrot.slane %v8279_v33, 1  ;;  %v1012_v50 = vsel %vm7988_vm4, %v780_v3, %v1011_v43  ;;  %v8290_v53 = vrot.slane %v790_v9, 7  ;;  %v7354_v55 = vld [vmem:[#allocation7 + $0x130] sm:$0xff]   ;;  %v8295_v57 = vsel %vm1405_vm7, %v1496_v32, %v1500_v39  ;;  %v1014_v0 = vld [vmem:[#allocation2 + $0x78] sm:$0xf]  ;;  %6394 = vmatprep.subr.bf16.mxu0 %v7353_v49  ;;  %v522_v18 = vld [vmem:[%s7968_s26 + $0xc0] sm:$0xff] }
  0xda   : > { %2405 = vmatmul.mubr.bf16.gmra.mrb[24].mxu1 %v8277_v30  ;;  %v1508_v31 = vor.u32 %v1507_v41, %v1503_v27  ;;  %1013 = vst [vmem:[#allocation2 + $0x74] sm:$0x1] %v1012_v50  ;;  %v793_v60 = vshll.u32 %v8228_v44, 16  ;;  %v360_v1 = vsel %vm7983_vm3, 0, %v359_v19  ;;  %v1512_v2 = vrot.slane %v1510_v42, 1  ;;  %6395 = vmatpush3.bf16.msra.mxu0 %v7354_v55  ;;  %v523_v23 = vld [vmem:[%s7968_s26 + $0xc8] sm:$0xff] }
  0xdb   : > { %2412 = vmatprep.mubr.bf16.mxu1 %v8258_v11  ;;  %361 = vst [vmem:[#allocation2 + $0x80] sm:$0x1] %v360_v1  ;;  %v797_v40 = vrot.slane %v8290_v53, 4  ;;  %v8305_v3 = vpack.c.bf16 %v521_v29, %v521_v29  ;;  %v307_v51 = vsel %vm7988_vm4, 0, %v306_v38  ;;  %v799_v52 = vshrl.u32 %v8262_v13, 16  ;;  %v7355_v25 = vld [vmem:[#allocation7 + $0x1c0] sm:$0xff]  }
  0xdc   : > { %2244 = vmatmul.mubr.bf16.gmra.mrb[24].mxu0 %v8205_v63  ;;  %v1015_v63 = vsel %vm8018_vm10, %v787_v36, %v1014_v0  ;;  %v8307_v5 = vld [vmem:[#allocation2 + $0x6c] sm:$0xff]   ;;  %v795_v44 = vor.u32 %v793_v60, %v8290_v53  ;;  %v802_v7 = vshll.u32 %v8262_v13, 16  ;;  %308 = vst [vmem:[#allocation2 + $0x84] sm:$0x1] %v307_v51  ;;  %v807_v8 = vshrl.u32 %v8268_v20, 16  ;;  %6494 = vmatprep.subr.bf16.mxu1 %v7355_v25 }
  0xdd   : > { %2251 = vmatprep.mubr.bf16.mxu0 %v8295_v57  ;;  %1016 = vst [vmem:[#allocation2 + $0x78] sm:$0xf] %v1015_v63  ;;  %v810_v9 = vshll.u32 %v8268_v20, 16  ;;  %v362_v16 = vld [vmem:[#allocation2 + $0x8c] sm:$0x1]  ;;  %v8320_v12 = vsel %vm1405_vm7, %v1508_v31, %v1512_v2  ;;  %v1515_v17 = vshrl.u32 %v8307_v5, 16  ;;  %v8340_v53 = vpack.c.bf16 %v522_v18, %v522_v18 }
  0xde   : > { %v309_v10 = vld [vmem:[#allocation2 + $0x90] sm:$0x1]  ;;  %v1517_v19 = vshll.u32 %v8307_v5, 16  ;;  %v796_v13 = vsel %vm8009_vm8, %v788_v46, %v795_v44  ;;  %v801_v27 = vrot.slane %v799_v52, 7  ;;  %v8328_v28 = vrot.slane %v807_v8, 7 }
  0xdf   : > { %1017 = vst [vmem:[#allocation2 + $0x7c] sm:$0xf] %v796_v13  ;;  %v363_v20 = vsel %vm7983_vm3, 0, %v362_v16  ;;  %v310_v29 = vsel %vm7988_vm4, 0, %v309_v10  ;;  %v365_v32 = vld [vmem:[#allocation2 + $0x98] sm:$0x1]  ;;  %v6118_v0 = vpack.c.bf16 %v523_v23, %v523_v23 }
  0xe0   : > { %v1519_v36 = vrot.slane %v1517_v19, 1  ;;  %364 = vst [vmem:[#allocation2 + $0x8c] sm:$0x1] %v363_v20  ;;  %311 = vst [vmem:[#allocation2 + $0x90] sm:$0x1] %v310_v29  ;;  %v816_v38 = vshrl.u32 %v8284_v48, 16  ;;  %v804_v46 = vor.u32 %v802_v7, %v801_v27  ;;  %v812_v42 = vor.u32 %v810_v9, %v8328_v28 }
  0xe1   : > { %v819_v39 = vshll.u32 %v8284_v48, 16  ;;  %v824_v41 = vshrl.u32 %v8305_v3, 16  ;;  %v8337_v43 = vld [vmem:[#allocation2 + $0x74] ss:$0 sps:$4 sm:$0x11]   ;;  %v805_v49 = vrot.slane %v801_v27, 4  ;;  %v8373_v27 = vsel %vm1614_vm9, %v1639_v35, %v1640_v34 }
  0xe2   : > { %v312_v50 = vld [vmem:[#allocation2 + $0x9c] sm:$0x1]  ;;  %2413 = vmatmul.mubr.bf16.gmra.mrb[28].mxu1 %v8315_v6  ;;  %v1642_v55 = vrot.slane %v8307_v5, 1  ;;  %v1018_v31 = vld [vmem:[#allocation2 + $0x80] sm:$0x1]  ;;  %v818_v48 = vrot.slane %v816_v38, 7  ;;  %v1520_v51 = vor.u32 %v1519_v36, %v1515_v17 }
  0xe3   : > { %v8345_v60 = vrot.slane %v824_v41, 7  ;;  %v7356_v1 = vld [vmem:[#allocation7 + $0x180] sm:$0xff]   ;;  %2420 = vmatprep.mubr.bf16.mxu1 %v8307_v5  ;;  %v1522_v2 = vshll.u32 %v8337_v43, 16  ;;  %v1019_v63 = vsel %vm7988_vm4, %v797_v40, %v1018_v31  ;;  %v814_v44 = vrot.slane %v8328_v28, 4  ;;  %v1021_v52 = vld [vmem:[#allocation2 + $0x84] sm:$0xf] }
  0xe4   : > { %2252 = vmatmul.mubr.bf16.gmra.mrb[28].mxu0 %v8242_v62  ;;  %v813_v62 = vsel %vm8009_vm8, %v805_v49, %v812_v42  ;;  %1020 = vst [vmem:[#allocation2 + $0x80] sm:$0x1] %v1019_v63  ;;  %v822_v7 = vrot.slane %v818_v48, 4  ;;  %v827_v8 = vshll.u32 %v8305_v3, 16  ;;  %v366_v9 = vsel %vm7983_vm3, 0, %v365_v32  ;;  %6495 = vmatpush3.bf16.msra.mxu1 %v7356_v1  ;;  %v7357_v16 = vld [vmem:[#allocation7 + $0x1c8] sm:$0xff]  }
  0xe5   : > { %2259 = vmatprep.mubr.bf16.mxu0 %v8320_v12  ;;  %1024 = vst [vmem:[#allocation2 + $0x88] sm:$0xf] %v813_v62  ;;  %v1524_v10 = vrot.slane %v1522_v2, 1  ;;  %v1022_v40 = vsel %vm8018_vm10, %v804_v46, %v1021_v52  ;;  %v821_v19 = vor.u32 %v819_v39, %v818_v48  ;;  %367 = vst [vmem:[#allocation2 + $0x98] sm:$0x1] %v366_v9  ;;  %v831_v13 = vrot.slane %v8345_v60, 4 }
  0xe6   : > { %v8361_v17 = vld [vmem:[#allocation2 + $0x78] sm:$0xff]   ;;  %1023 = vst [vmem:[#allocation2 + $0x84] sm:$0xf] %v1022_v40  ;;  %v829_v18 = vor.u32 %v827_v8, %v8345_v60  ;;  %v313_v3 = vsel %vm7988_vm4, 0, %v312_v50  ;;  %v833_v23 = vshrl.u32 %v8340_v53, 16  ;;  %v836_v25 = vshll.u32 %v8340_v53, 16  ;;  %6496 = vmatprep.subr.bf16.mxu1 %v7357_v16 }
  0xe7   : > { %v1025_v28 = vld [vmem:[#allocation2 + $0x8c] sm:$0x1]  ;;  %v1028_v20 = vld [vmem:[#allocation2 + $0x90] sm:$0xf]  ;;  %314 = vst [vmem:[#allocation2 + $0x9c] sm:$0x1] %v313_v3  ;;  %v8376_v36 = vsel %vm1405_vm7, %v1520_v51, %v1524_v10 }
  0xe8   : > { %v841_v29 = vshrl.u32 %v6118_v0, 16  ;;  %v844_v32 = vshll.u32 %v6118_v0, 16  ;;  %v1527_v38 = vshrl.u32 %v8361_v17, 16  ;;  %v1529_v39 = vshll.u32 %v8361_v17, 16  ;;  %v524_v41 = vld [vmem:[%s7968_s26 + $0xd0] sm:$0xff]  ;;  %v525_v8 = vld [vmem:[%s7968_s26 + $0xd8] sm:$0xff] }
  0xe9   : > { %v1026_v33 = vsel %vm7988_vm4, %v814_v44, %v1025_v28  ;;  %v830_v35 = vsel %vm8009_vm8, %v822_v7, %v829_v18  ;;  %v1029_v34 = vsel %vm8018_vm10, %v821_v19, %v1028_v20  ;;  %v835_v46 = vrot.slane %v833_v23, 7  ;;  %v7360_v44 = vld [vmem:[#allocation7 + $0x188] sm:$0xff]   ;;  %v368_v7 = vld [vmem:[#allocation2 + $0xa4] sm:$0x1]  ;;  %v315_v40 = vld [vmem:[#allocation2 + $0xa8] sm:$0x1] }
  0xea   : > { %1027 = vst [vmem:[#allocation2 + $0x8c] sm:$0x1] %v1026_v33  ;;  %v8387_v49 = vrot.slane %v841_v29, 7  ;;  %2421 = vmatmul.mubr.bf16.gmra.mrb[32].mxu1 %v8373_v27  ;;  %v1643_v42 = vrot.slane %v8337_v43, 1  ;;  %v1531_v50 = vrot.slane %v1529_v39, 1  ;;  %v6119_v60 = vpack.c.bf16 %v524_v41, %v524_v41 }
  0xeb   : > { %1030 = vst [vmem:[#allocation2 + $0x90] sm:$0xf] %v1029_v34  ;;  %1031 = vst [vmem:[#allocation2 + $0x94] sm:$0xf] %v830_v35  ;;  %2428 = vmatprep.mubr.bf16.mxu1 %v8361_v17  ;;  %v839_v31 = vrot.slane %v835_v46, 4  ;;  %v838_v1 = vor.u32 %v836_v25, %v835_v46  ;;  %v1645_v51 = vrot.slane %v8361_v17, 1  ;;  %6497 = vmatpush3.bf16.msra.mxu1 %v7360_v44 }
  0xec   : > { %2260 = vmatmul.mubr.bf16.gmra.mrb[32].mxu0 %v8258_v11  ;;  %v7345_v53 = vld [vmem:[#allocation2 + $0x80] ss:$0 sps:$4 sm:$0x11]   ;;  %v846_v48 = vor.u32 %v844_v32, %v8387_v49  ;;  %v1032_v0 = vld [vmem:[#allocation2 + $0x98] sm:$0x1]  ;;  %v1532_v11 = vor.u32 %v1531_v50, %v1527_v38  ;;  %v8406_v9 = vsel %vm1614_vm9, %v1642_v55, %v1643_v42  ;;  %v850_v19 = vshrl.u32 %v6119_v60, 16 }
  0xed   : > { %2267 = vmatprep.mubr.bf16.mxu0 %v8376_v36  ;;  %v1534_v2 = vshll.u32 %v7345_v53, 16  ;;  %v8395_v63 = vld [vmem:[#allocation2 + $0x84] sm:$0xff]   ;;  %v1033_v43 = vsel %vm7988_vm4, %v831_v13, %v1032_v0  ;;  %v6120_v20 = vpack.c.bf16 %v525_v8, %v525_v8  ;;  %v1646_v29 = vrot.slane %v7345_v53, 1  ;;  %v526_v44 = vld [vmem:[%s7968_s26 + $0xe0] sm:$0xff] }
  0xee   : > { %v847_v62 = vsel %vm8009_vm8, %v839_v31, %v846_v48  ;;  %1034 = vst [vmem:[#allocation2 + $0x98] sm:$0x1] %v1033_v43  ;;  %v1035_v52 = vld [vmem:[#allocation2 + $0x9c] sm:$0xf]  ;;  %v1541_v10 = vshll.u32 %v8395_v63, 16  ;;  %v7361_v13 = vld [vmem:[#allocation7 + $0x1d0] sm:$0xff]  }
  0xef   : > { %1038 = vst [vmem:[#allocation2 + $0xa0] sm:$0xf] %v847_v62  ;;  %v1536_v16 = vrot.slane %v1534_v2, 1  ;;  %v1539_v3 = vshrl.u32 %v8395_v63, 16  ;;  %v1036_v23 = vsel %vm8018_vm10, %v838_v1, %v1035_v52  ;;  %6498 = vmatprep.subr.bf16.mxu1 %v7361_v13  ;;  %v369_v38 = vsel %vm7983_vm3, 0, %v368_v7  ;;  %v7362_v35 = vld [vmem:[#allocation7 + $0x190] sm:$0xff]  }
  0xf0   : > { %v1543_v28 = vrot.slane %v1541_v10, 1  ;;  %1037 = vst [vmem:[#allocation2 + $0x9c] sm:$0xf] %v1036_v23  ;;  %v316_v39 = vsel %vm7988_vm4, 0, %v315_v40  ;;  %v1648_v33 = vrot.slane %v8395_v63, 1  ;;  %v852_v42 = vrot.slane %v850_v19, 7  ;;  %6499 = vmatpush3.bf16.msra.mxu1 %v7362_v35 }
  0xf1   : > { %v8409_v18 = vld [vmem:[#allocation2 + $0x8c] ss:$0 sps:$4 sm:$0x11]   ;;  %v8415_v25 = vsel %vm1405_vm7, %v1532_v11, %v1536_v16  ;;  %370 = vst [vmem:[#allocation2 + $0xa4] sm:$0x1] %v369_v38  ;;  %v853_v50 = vshll.u32 %v6119_v60, 16  ;;  %v8435_v0 = vsel %vm1614_vm9, %v1645_v51, %v1646_v29  ;;  %v6121_v16 = vpack.c.bf16 %v526_v44, %v526_v44 }
  0xf2   : > { %v8417_v55 = vld [vmem:[#allocation2 + $0x90] sm:$0xff]   ;;  %2429 = vmatmul.mubr.bf16.gmra.mrb[36].mxu1 %v8406_v9  ;;  %v1546_v32 = vshll.u32 %v8409_v18, 16  ;;  %317 = vst [vmem:[#allocation2 + $0xa8] sm:$0x1] %v316_v39  ;;  %v1544_v34 = vor.u32 %v1543_v28, %v1539_v3  ;;  %v7363_v53 = vld [vmem:[#allocation7 + $0x1d8] sm:$0xff]   ;;  %v858_v11 = vshrl.u32 %v6120_v20, 16 }
  0xf3   : > { %2436 = vmatprep.mubr.bf16.mxu1 %v8395_v63  ;;  %v1553_v41 = vshll.u32 %v8417_v55, 16  ;;  %v1551_v48 = vshrl.u32 %v8417_v55, 16  ;;  %6500 = vmatprep.subr.bf16.mxu1 %v7363_v53  ;;  %v855_v2 = vor.u32 %v853_v50, %v852_v42  ;;  %v856_v43 = vrot.slane %v852_v42, 4  ;;  %v527_v51 = vld [vmem:[%s7968_s26 + $0xe8] sm:$0xff]  ;;  %v371_v29 = vld [vmem:[#allocation2 + $0xb0] sm:$0x1] }
  0xf4   : > { %2268 = vmatmul.mubr.bf16.gmra.mrb[36].mxu0 %v8307_v5  ;;  %v848_v5 = vrot.slane %v8387_v49, 4  ;;  %v1548_v46 = vrot.slane %v1546_v32, 1  ;;  %v861_v62 = vshll.u32 %v6120_v20, 16  ;;  %v8444_v7 = vrot.slane %v858_v11, 7  ;;  %v318_v32 = vld [vmem:[#allocation2 + $0xb4] sm:$0x1] }
  0xf5   : > { %2275 = vmatprep.mubr.bf16.mxu0 %v8415_v25  ;;  %v8431_v31 = vld [vmem:[#allocation2 + $0x98] ss:$0 sps:$4 sm:$0x11]   ;;  %v1555_v1 = vrot.slane %v1553_v41, 1  ;;  %v1649_v8 = vrot.slane %v8409_v18, 1  ;;  %v1651_v10 = vrot.slane %v8417_v55, 1  ;;  %v6122_v23 = vpack.c.bf16 %v527_v51, %v527_v51 }
  0xf6   : > { %v1558_v49 = vshll.u32 %v8431_v31, 16  ;;  %v8440_v60 = vsel %vm1405_vm7, %v1544_v34, %v1548_v46  ;;  %v1652_v40 = vrot.slane %v8431_v31, 1  ;;  %v863_v13 = vor.u32 %v861_v62, %v8444_v7  ;;  %v7366_v38 = vld [vmem:[#allocation7 + $0x198] sm:$0xff]   ;;  %v7369_v44 = vld [vmem:[#allocation7 + $0x1e0] sm:$0xff]  }
  0xf7   : > { %v8442_v52 = vld [vmem:[#allocation2 + $0x9c] sm:$0xff]   ;;  %v1556_v18 = vor.u32 %v1555_v1, %v1551_v48  ;;  %v372_v34 = vsel %vm7983_vm3, 0, %v371_v29  ;;  %v7367_v46 = vld [vmem:[#allocation7 + $0x178] sm:$0xff]   ;;  %v867_v42 = vshrl.u32 %v6121_v16, 16  ;;  %v870_v50 = vshll.u32 %v6121_v16, 16  ;;  %6501 = vmatpush3.bf16.msra.mxu1 %v7366_v38 }
  0xf8   : > { %v1039_v19 = vld [vmem:[#allocation2 + $0xa4] sm:$0x1]  ;;  %v1560_v28 = vrot.slane %v1558_v49, 1  ;;  %v1563_v39 = vshrl.u32 %v8442_v52, 16  ;;  %v1565_v41 = vshll.u32 %v8442_v52, 16  ;;  %v864_v35 = vsel %vm8009_vm8, %v856_v43, %v863_v13  ;;  %6396 = vmatprep.subr.bf16.mxu0 %v7367_v46  ;;  %v7368_v1 = vld [vmem:[#allocation7 + $0x138] sm:$0xff]   ;;  %6502 = vmatprep.subr.bf16.mxu1 %v7369_v44 }
  0xf9   : > { %v1042_v3 = vld [vmem:[#allocation2 + $0xa8] sm:$0xf]  ;;  %1045 = vst [vmem:[#allocation2 + $0xac] sm:$0xf] %v864_v35  ;;  %373 = vst [vmem:[#allocation2 + $0xb0] sm:$0x1] %v372_v34  ;;  %v8470_v11 = vsel %vm1614_vm9, %v1648_v33, %v1649_v8  ;;  %6397 = vmatpush3.bf16.msra.mxu0 %v7368_v1 }
  0xfa   : > { %2437 = vmatmul.mubr.bf16.gmra.mrb[40].mxu1 %v8435_v0  ;;  %v1043_v20 = vsel %vm8018_vm10, %v855_v2, %v1042_v3  ;;  %v875_v53 = vshrl.u32 %v6122_v23, 16  ;;  %v878_v48 = vshll.u32 %v6122_v23, 16  ;;  %v869_v49 = vrot.slane %v867_v42, 7  ;;  %v7371_v13 = vld [vmem:[#allocation7 + $0x1e8] sm:$0xff]   ;;  %v529_v1 = vld [vmem:[%s7968_s26 + $0xf8] sm:$0xff] }
  0xfb   : > { %2444 = vmatprep.mubr.bf16.mxu1 %v8417_v55  ;;  %1044 = vst [vmem:[#allocation2 + $0xa8] sm:$0xf] %v1043_v20  ;;  %v8475_v43 = vsel %vm1405_vm7, %v1556_v18, %v1560_v28  ;;  %v1567_v62 = vrot.slane %v1565_v41, 1  ;;  %v865_v33 = vrot.slane %v8444_v7, 4  ;;  %v528_v18 = vld [vmem:[%s7968_s26 + $0xf0] sm:$0xff]  ;;  %v1654_v7 = vrot.slane %v8442_v52, 1 }
  0xfc   : > { %2276 = vmatmul.mubr.bf16.gmra.mrb[40].mxu0 %v8361_v17  ;;  %v1040_v17 = vsel %vm7988_vm4, %v848_v5, %v1039_v19  ;;  %v319_v5 = vsel %vm7988_vm4, 0, %v318_v32  ;;  %v8472_v2 = vrot.slane %v875_v53, 7  ;;  %v873_v51 = vrot.slane %v869_v49, 4  ;;  %v7370_v19 = vld [vmem:[#allocation7 + $0x1a0] sm:$0xff]   ;;  %v374_v46 = vld [vmem:[#allocation2 + $0xbc] sm:$0x1] }
  0xfd   : > { %2283 = vmatprep.mubr.bf16.mxu0 %v8440_v60  ;;  %1041 = vst [vmem:[#allocation2 + $0xa4] sm:$0x1] %v1040_v17  ;;  %320 = vst [vmem:[#allocation2 + $0xb4] sm:$0x1] %v319_v5  ;;  %v872_v8 = vor.u32 %v870_v50, %v869_v49  ;;  %v6123_v17 = vpack.c.bf16 %v528_v18, %v528_v18  ;;  %v1568_v20 = vor.u32 %v1567_v62, %v1563_v39  ;;  %v321_v39 = vld [vmem:[#allocation2 + $0xc0] sm:$0x1] }
  0xfe   : > { %v880_v16 = vor.u32 %v878_v48, %v8472_v2  ;;  %6503 = vmatpush3.bf16.msra.mxu1 %v7370_v19  ;;  %v882_v5 = vrot.slane %v8472_v2, 4  ;;  %v8500_v42 = vsel %vm1614_vm9, %v1651_v10, %v1652_v40  ;;  %v375_v48 = vsel %vm7983_vm3, 0, %v374_v46  ;;  %v7374_v44 = vld [vmem:[#allocation7 + $0x1a8] sm:$0xff]   ;;  %v7377_v18 = vld [vmem:[#allocation7 + $0x1f8] sm:$0xff]  }
  0xff   : > { %6504 = vmatprep.subr.bf16.mxu1 %v7371_v13  ;;  %376 = vst [vmem:[#allocation2 + $0xbc] sm:$0x1] %v375_v48  ;;  %v322_v2 = vsel %vm7988_vm4, 0, %v321_v39  ;;  %v6124_v31 = vpack.c.bf16 %v529_v1, %v529_v1  ;;  %v884_v62 = vshrl.u32 %v6123_v17, 16  ;;  %v887_v40 = vshll.u32 %v6123_v17, 16  ;;  %v7379_v48 = vld [vmem:[#allocation7 + $0x200] sm:$0xff]  }
 0x100   : > { %v881_v23 = vsel %vm8009_vm8, %v873_v51, %v880_v16  ;;  %v1046_v32 = vld [vmem:[#allocation2 + $0xb0] sm:$0x1]  ;;  %323 = vst [vmem:[#allocation2 + $0xc0] sm:$0x1] %v322_v2  ;;  %v7375_v51 = vld [vmem:[#allocation7 + $0x1f0] sm:$0xff]   ;;  %7102 = vmatprep.subr.bf16.mxu0 %v7379_v48 }
 0x101   : > { %1052 = vst [vmem:[#allocation2 + $0xb8] sm:$0xf] %v881_v23  ;;  %v1047_v41 = vsel %vm7988_vm4, %v865_v33, %v1046_v32  ;;  %v886_v19 = vrot.slane %v884_v62, 7  ;;  %v892_v33 = vshrl.u32 %v6124_v31, 16  ;;  %v7376_v23 = vld [vmem:[#allocation7 + $0x1b0] sm:$0xff]  }
 0x102   : > { %2445 = vmatmul.mubr.bf16.gmra.mrb[44].mxu1 %v8470_v11  ;;  %v8486_v28 = vld [vmem:[#allocation2 + $0xa8] sm:$0xff]   ;;  %1048 = vst [vmem:[#allocation2 + $0xb0] sm:$0x1] %v1047_v41 }
 0x103   : > { %2452 = vmatprep.mubr.bf16.mxu1 %v8442_v52  ;;  %v1577_v35 = vshll.u32 %v8486_v28, 16  ;;  %v1575_v49 = vshrl.u32 %v8486_v28, 16  ;;  %v890_v13 = vrot.slane %v886_v19, 4  ;;  %6505 = vmatpush3.bf16.msra.mxu1 %v7374_v44  ;;  %v889_v17 = vor.u32 %v887_v40, %v886_v19 }
 0x104   : > { %2284 = vmatmul.mubr.bf16.gmra.mrb[44].mxu0 %v8395_v63  ;;  %v7358_v3 = vld [vmem:[#allocation2 + $0xa4] ss:$0 sps:$4 sm:$0x11]   ;;  %v1049_v38 = vld [vmem:[#allocation2 + $0xb4] sm:$0xf]  ;;  %6506 = vmatprep.subr.bf16.mxu1 %v7375_v51 }
 0x105   : > { %2291 = vmatprep.mubr.bf16.mxu0 %v8475_v43  ;;  %v1570_v29 = vshll.u32 %v7358_v3, 16  ;;  %v1050_v34 = vsel %vm8018_vm10, %v872_v8, %v1049_v38  ;;  %v1655_v53 = vrot.slane %v7358_v3, 1  ;;  %v1579_v16 = vrot.slane %v1577_v35, 1 }
 0x106   : > { %1051 = vst [vmem:[#allocation2 + $0xb4] sm:$0xf] %v1050_v34  ;;  %v895_v8 = vshll.u32 %v6124_v31, 16  ;;  %v8515_v3 = vrot.slane %v892_v33, 7  ;;  %v1053_v41 = vld [vmem:[#allocation2 + $0xbc] sm:$0x1] }
 0x107   : > { %v1572_v50 = vrot.slane %v1570_v29, 1  ;;  %v8521_v38 = vsel %vm1614_vm9, %v1654_v7, %v1655_v53  ;;  %v1580_v35 = vor.u32 %v1579_v16, %v1575_v49  ;;  %v1054_v46 = vsel %vm7988_vm4, %v882_v5, %v1053_v41  ;;  %v1056_v39 = vld [vmem:[#allocation2 + $0xc0] sm:$0xf]  ;;  %6507 = vmatpush3.bf16.msra.mxu1 %v7376_v23  ;;  %v380_v41 = vld [vmem:[#allocation2 + $0xd4] sm:$0x1] }
 0x108   : > { %v897_v32 = vor.u32 %v895_v8, %v8515_v3  ;;  %1055 = vst [vmem:[#allocation2 + $0xbc] sm:$0x1] %v1054_v46  ;;  %v1057_v2 = vsel %vm8018_vm10, %v889_v17, %v1056_v39  ;;  %6508 = vmatprep.subr.bf16.mxu1 %v7377_v18  ;;  %v1657_v5 = vrot.slane %v8486_v28, 1  ;;  %v377_v8 = vld [vmem:[#allocation2 + $0xc8] sm:$0x1]  ;;  %v899_v46 = vrot.slane %v8515_v3, 4 }
 0x109   : > { %v8509_v10 = vsel %vm1405_vm7, %v1568_v20, %v1572_v50  ;;  %v7364_v20 = vld [vmem:[#allocation2 + $0xb0] ss:$0 sps:$4 sm:$0x11]   ;;  %v7378_v50 = vld [vmem:[#allocation7 + $0x1b8] sm:$0xff]   ;;  %1058 = vst [vmem:[#allocation2 + $0xc0] sm:$0xf] %v1057_v2 }
 0x10a   : > { %2453 = vmatmul.mubr.bf16.gmra.mrb[48].mxu1 %v8500_v42  ;;  %v1582_v34 = vshll.u32 %v7364_v20, 16  ;;  %v898_v1 = vsel %vm8009_vm8, %v890_v13, %v897_v32  ;;  %v1658_v49 = vrot.slane %v7364_v20, 1  ;;  %v378_v18 = vsel %vm7983_vm3, 0, %v377_v8  ;;  %v324_v17 = vld [vmem:[#allocation2 + $0xcc] sm:$0x1]  ;;  %v7380_v3 = vld [vmem:[#allocation7 + $0x208] sm:$0xff]  }
 0x10b   : > { %2460 = vmatprep.mubr.bf16.mxu1 %v8486_v28  ;;  %1059 = vst [vmem:[#allocation2 + $0xc4] sm:$0xf] %v898_v1  ;;  %6509 = vmatpush3.bf16.msra.mxu1 %v7378_v50  ;;  %379 = vst [vmem:[#allocation2 + $0xc8] sm:$0x1] %v378_v18  ;;  %v325_v32 = vsel %vm7988_vm4, 0, %v324_v17  ;;  %v7498_v2 = vld [vmem:[#allocation2 + $0x18] sm:$0xff]  }
 0x10c   : > { %2292 = vmatmul.mubr.bf16.gmra.mrb[48].mxu0 %v8417_v55  ;;  %v1584_v7 = vrot.slane %v1582_v34, 1  ;;  %v8540_v40 = vsel %vm1614_vm9, %v1657_v5, %v1658_v49  ;;  %326 = vst [vmem:[#allocation2 + $0xcc] sm:$0x1] %v325_v32  ;;  %v7500_v5 = vld [vmem:[#allocation2 + $0x30] sm:$0xff]   ;;  %v7386_v49 = vld [vmem:[#allocation7 + $0x238] sm:$0xff]  }
 0x10d   : > { %2299 = vmatprep.mubr.bf16.mxu0 %v8509_v10  ;;  %v8517_v29 = vld [vmem:[#allocation2 + $0xb4] sm:$0xff]  }
 0x10e   : > { %v1589_v53 = vshll.u32 %v8517_v29, 16  ;;  %v8535_v31 = vsel %vm1405_vm7, %v1580_v35, %v1584_v7  ;;  %v1587_v62 = vshrl.u32 %v8517_v29, 16  ;;  %v1660_v13 = vrot.slane %v8517_v29, 1  ;;  %v7381_v7 = vld [vmem:[#allocation7 + $0x210] sm:$0xff]  }
 0x10f   : > { %v7372_v51 = vld [vmem:[#allocation2 + $0xbc] ss:$0 sps:$4 sm:$0x11]   ;;  %v381_v35 = vsel %vm7983_vm3, 0, %v380_v41 }
 0x110   : > { %v1591_v44 = vrot.slane %v1589_v53, 1  ;;  %v1594_v33 = vshll.u32 %v7372_v51, 16  ;;  %v1661_v23 = vrot.slane %v7372_v51, 1  ;;  %382 = vst [vmem:[#allocation2 + $0xd4] sm:$0x1] %v381_v35  ;;  %v7499_v53 = vld [vmem:[#allocation2 + $0x24] sm:$0xff]  }
 0x112   : > { %2461 = vmatmul.mubr.bf16.gmra.mrb[52].mxu1 %v8521_v38  ;;  %v8542_v16 = vld [vmem:[#allocation2 + $0xc0] sm:$0xff]   ;;  %v1592_v19 = vor.u32 %v1591_v44, %v1587_v62  ;;  %v1596_v20 = vrot.slane %v1594_v33, 1  ;;  %v8560_v39 = vsel %vm1614_vm9, %v1660_v13, %v1661_v23  ;;  %v1060_v50 = vld [vmem:[#allocation2 + $0xc8] sm:$0x1] }
 0x113   : > { %2468 = vmatprep.mubr.bf16.mxu1 %v8517_v29  ;;  %v1061_v1 = vsel %vm7988_vm4, %v899_v46, %v1060_v50  ;;  %v7501_v62 = vld [vmem:[#allocation2 + $0x3c] sm:$0xff]  }
 0x114   : > { %2300 = vmatmul.mubr.bf16.gmra.mrb[52].mxu0 %v8442_v52  ;;  %v8555_v34 = vsel %vm1405_vm7, %v1592_v19, %v1596_v20  ;;  %1062 = vst [vmem:[#allocation2 + $0xc8] sm:$0x1] %v1061_v1  ;;  %v7504_v44 = vld [vmem:[#allocation2 + $0x60] sm:$0xff]   ;;  %v1691_v20 = vshll.u32 %v8542_v16, 16 }
 0x115   : > { %2307 = vmatprep.mubr.bf16.mxu0 %v8535_v31 }
 0x11a   : > { %2469 = vmatmul.mubr.bf16.gmra.mrb[56].mxu1 %v8540_v40 }
 0x11b   : > { %2476 = vmatprep.mubr.bf16.mxu1 %v8542_v16 }
 0x11c   : > { %2308 = vmatmul.mubr.bf16.gmra.mrb[56].mxu0 %v8486_v28 }
 0x11d   : > { %2315 = vmatprep.mubr.bf16.mxu0 %v8555_v34 }
 0x122   : > { %2477 = vmatmul.mubr.bf16.gmra.mrb[60].mxu1 %v8560_v39 }
 0x123   : > { %2678 = vmatprep.mubr.bf16.mxu1 %v8114_v21 }
 0x124   : > { %2316 = vmatmul.mubr.bf16.gmra.mrb[60].mxu0 %v8517_v29 }
 0x125   : > { %2517 = vmatprep.mubr.bf16.mxu0 %v8070_v37  ;;  %v7382_v37 = vld [vmem:[#allocation7 + $0x218] sm:$0xff]  }
 0x12a   : > { %2679 = vmatmul.mubr.bf16.vlgmr.msra.gmra.mrb[64].mxu1 %v7498_v2 }
 0x12b   : > { %2686 = vmatprep.mubr.bf16.mxu1 %v8142_v54 }
 0x12c   : > { %2518 = vmatmul.mubr.bf16.vlgmr.msra.gmra.mrb[64].mxu0 %v8081_v47  ;;  %v7383_v47 = vld [vmem:[#allocation7 + $0x220] sm:$0xff]  }
 0x12d   : > { %7103 = vmatpush3.bf16.msra.mxu0 %v7379_v48  ;;  %2525 = vmatprep.mubr.bf16.mxu0 %v8117_v22  ;;  %v7384_v48 = vld [vmem:[#allocation7 + $0x228] sm:$0xff]  }
 0x12e   : > { %7104 = vmatprep.subr.bf16.mxu0 %v7380_v3 }
 0x131   : > { %7105 = vmatpush3.bf16.msra.mxu0 %v7380_v3 }
 0x132   : > { %7106 = vmatprep.subr.bf16.mxu0 %v7381_v7  ;;  %2687 = vmatmul.mubr.bf16.gmra.mrb[68].mxu1 %v7499_v53 }
 0x133   : > { %2694 = vmatprep.mubr.bf16.mxu1 %v8166_v15 }
 0x134   : > { %2526 = vmatmul.mubr.bf16.gmra.mrb[68].mxu0 %v8114_v21  ;;  %v7385_v21 = vld [vmem:[#allocation7 + $0x230] sm:$0xff]  }
 0x135   : > { %2533 = vmatprep.mubr.bf16.mxu0 %v8148_v58  ;;  %7107 = vmatpush3.bf16.msra.mxu0 %v7381_v7  ;;  %v1689_v7 = vshrl.u32 %v8542_v16, 16 }
 0x136   : > { %7108 = vmatprep.subr.bf16.mxu0 %v7382_v37 }
 0x139   : > { %7109 = vmatpush3.bf16.msra.mxu0 %v7382_v37  ;;  %v1693_v37 = vrot.slane %v1691_v20, 1 }
 0x13a   : > { %7110 = vmatprep.subr.bf16.mxu0 %v7383_v47  ;;  %2695 = vmatmul.mubr.bf16.gmra.mrb[72].mxu1 %v7500_v5 }
 0x13b   : > { %2702 = vmatprep.mubr.bf16.mxu1 %v8225_v59 }
 0x13c   : > { %2534 = vmatmul.mubr.bf16.gmra.mrb[72].mxu0 %v8142_v54  ;;  %v7502_v54 = vld [vmem:[#allocation2 + $0x48] sm:$0xff]  }
 0x13d   : > { %2541 = vmatprep.mubr.bf16.mxu0 %v8198_v56  ;;  %7111 = vmatpush3.bf16.msra.mxu0 %v7383_v47  ;;  %v8616_v47 = vld [vmem:[#allocation2 + $0xcc] sm:$0xff]  }
 0x13e   : > { %7112 = vmatprep.subr.bf16.mxu0 %v7384_v48 }
 0x141   : > { %7113 = vmatpush3.bf16.msra.mxu0 %v7384_v48 }
 0x142   : > { %7114 = vmatprep.subr.bf16.mxu0 %v7385_v21  ;;  %2703 = vmatmul.mubr.bf16.gmra.mrb[76].mxu1 %v7501_v62  ;;  %v1694_v62 = vor.u32 %v1693_v37, %v1689_v7 }
 0x143   : > { %2710 = vmatprep.mubr.bf16.mxu1 %v8265_v14 }
 0x144   : > { %2542 = vmatmul.mubr.bf16.gmra.mrb[76].mxu0 %v8166_v15  ;;  %v7503_v15 = vld [vmem:[#allocation2 + $0x54] sm:$0xff]  }
 0x145   : > { %2549 = vmatprep.mubr.bf16.mxu0 %v8233_v45  ;;  %7115 = vmatpush3.bf16.msra.mxu0 %v7385_v21 }
 0x146   : > { %7116 = vmatprep.subr.bf16.mxu0 %v7386_v49 }
 0x149   : > { %7117 = vmatpush3.bf16.msra.mxu0 %v7386_v49 }
 0x14a   : > { %2711 = vmatmul.mubr.bf16.gmra.mrb[80].mxu1 %v7502_v54 }
 0x14b   : > { %2718 = vmatprep.mubr.bf16.mxu1 %v8295_v57 }
 0x14c   : > { %2550 = vmatmul.mubr.bf16.gmra.mrb[80].mxu0 %v8225_v59  ;;  %v7505_v59 = vld [vmem:[#allocation2 + $0x6c] sm:$0xff]  }
 0x14d   : > { %2557 = vmatprep.mubr.bf16.mxu0 %v8277_v30 }
 0x152   : > { %2719 = vmatmul.mubr.bf16.gmra.mrb[84].mxu1 %v7503_v15  ;;  %v8626_v15 = vld [vmem:[#allocation2 + $0xd4] ss:$0 sps:$4 sm:$0x11]  }
 0x153   : > { %2726 = vmatprep.mubr.bf16.mxu1 %v8320_v12 }
 0x154   : > { %2558 = vmatmul.mubr.bf16.gmra.mrb[84].mxu0 %v8265_v14  ;;  %v7506_v14 = vld [vmem:[#allocation2 + $0x78] sm:$0xff]  }
 0x155   : > { %2565 = vmatprep.mubr.bf16.mxu0 %v8315_v6 }
 0x15a   : > { %2727 = vmatmul.mubr.bf16.gmra.mrb[88].mxu1 %v7504_v44  ;;  %v1717_v44 = vshll.u32 %v8616_v47, 16 }
 0x15b   : > { %2734 = vmatprep.mubr.bf16.mxu1 %v8376_v36 }
 0x15c   : > { %2566 = vmatmul.mubr.bf16.gmra.mrb[88].mxu0 %v8295_v57 }
 0x15d   : > { %2573 = vmatprep.mubr.bf16.mxu0 %v8373_v27 }
 0x162   : > { %2735 = vmatmul.mubr.bf16.gmra.mrb[92].mxu1 %v7505_v59 }
 0x163   : > { %2742 = vmatprep.mubr.bf16.mxu1 %v8415_v25 }
 0x164   : > { %2574 = vmatmul.mubr.bf16.gmra.mrb[92].mxu0 %v8320_v12 }
 0x165   : > { %2581 = vmatprep.mubr.bf16.mxu0 %v8406_v9 }
 0x16a   : > { %2743 = vmatmul.mubr.bf16.gmra.mrb[96].mxu1 %v7506_v14 }
 0x16b   : > { %2750 = vmatprep.mubr.bf16.mxu1 %v8440_v60 }
 0x16c   : > { %2582 = vmatmul.mubr.bf16.gmra.mrb[96].mxu0 %v8376_v36 }
 0x16d   : > { %2589 = vmatprep.mubr.bf16.mxu0 %v8435_v0 }
 0x172   : > { %2751 = vmatmul.mubr.bf16.gmra.mrb[100].mxu1 %v8395_v63 }
 0x173   : > { %2758 = vmatprep.mubr.bf16.mxu1 %v8475_v43 }
 0x174   : > { %2590 = vmatmul.mubr.bf16.gmra.mrb[100].mxu0 %v8415_v25 }
 0x175   : > { %2597 = vmatprep.mubr.bf16.mxu0 %v8470_v11 }
 0x17a   : > { %2759 = vmatmul.mubr.bf16.gmra.mrb[104].mxu1 %v8417_v55 }
 0x17b   : > { %v6174_v57 = vpop.f32.mrb[0].mxu0  ;;  %2766 = vmatprep.mubr.bf16.mxu1 %v8509_v10 }
 0x17c   : > { %2598 = vmatmul.mubr.bf16.gmra.mrb[104].mxu0 %v8440_v60  ;;  %v6175_v12 = vpop.f32.mrb[1].mxu0  ;;  %v8611_v60 = vld [vmem:[#allocation2 + $0xc8] ss:$0 sps:$4 sm:$0x11]  }
 0x17d   : > { %2605 = vmatprep.mubr.bf16.mxu0 %v8500_v42  ;;  %v6176_v36 = vadd.f32 %v6175_v12, %v6174_v57  ;;  %v6177_v51 = vpop.f32.mrb[2].mxu0  ;;  %v6286_v19 = vpop.f32.mrb[0].mxu1  ;;  %v1696_v53 = vshll.u32 %v8611_v60, 16 }
 0x17e   : > { %v6178_v25 = vpop.f32.mrb[3].mxu0  ;;  %v6287_v33 = vpop.f32.mrb[1].mxu1 }
 0x17f   : > { %v6179_v63 = vadd.f32 %v6178_v25, %v6177_v51  ;;  %v6288_v8 = vadd.f32 %v6287_v33, %v6286_v19  ;;  %v6289_v13 = vpop.f32.mrb[2].mxu1  ;;  %v1698_v54 = vrot.slane %v1696_v53, 1 }
 0x180   : > { %v6290_v23 = vpop.f32.mrb[3].mxu1 }
 0x181   : > { %v6291_v18 = vadd.f32 %v6290_v23, %v6289_v13  ;;  %v8603_v17 = vadd.f32 %v6288_v8, %v6176_v36  ;;  %v1699_v33 = vsel %vm1405_vm7, %v1694_v62, %v1698_v54  ;;  %v1719_v8 = vrot.slane %v1717_v44, 1 }
 0x182   : > { %2767 = vmatmul.mubr.bf16.gmra.mrb[108].mxu1 %v8442_v52  ;;  %v1722_v13 = vshll.u32 %v8626_v15, 16 }
 0x183   : > { %2774 = vmatprep.mubr.bf16.mxu1 %v8535_v31  ;;  %v8609_v55 = vadd.f32 %v6291_v18, %v6179_v63  ;;  %v1715_v63 = vshrl.u32 %v8616_v47, 16 }
 0x184   : > { %2606 = vmatmul.mubr.bf16.gmra.mrb[108].mxu0 %v8475_v43 }
 0x185   : > { %2613 = vmatprep.mubr.bf16.mxu0 %v8521_v38  ;;  %v6292_v41 = vpop.f32.mrb[4].mxu1 }
 0x186   : > { %v6293_v46 = vpop.f32.mrb[5].mxu1 }
 0x187   : > { %v6180_v32 = vpop.f32.mrb[4].mxu0  ;;  %v6294_v1 = vadd.f32 %v6293_v46, %v6292_v41  ;;  %v6295_v43 = vpop.f32.mrb[6].mxu1  ;;  %v1701_v41 = vrot.slane %v8542_v16, 1  ;;  %v1720_v46 = vor.u32 %v1719_v8, %v1715_v63 }
 0x188   : > { %v6181_v35 = vpop.f32.mrb[5].mxu0  ;;  %v6296_v52 = vpop.f32.mrb[7].mxu1 }
 0x189   : > { %v6182_v50 = vadd.f32 %v6181_v35, %v6180_v32  ;;  %v6183_v3 = vpop.f32.mrb[6].mxu0  ;;  %v6297_v5 = vadd.f32 %v6296_v52, %v6295_v43  ;;  %v1702_v35 = vrot.slane %v8611_v60, 1 }
 0x18a   : > { %v6184_v2 = vpop.f32.mrb[7].mxu0  ;;  %2775 = vmatmul.mubr.bf16.gmra.mrb[112].mxu1 %v8486_v28 }
 0x18b   : > { %v6185_v48 = vadd.f32 %v6184_v2, %v6183_v3  ;;  %v8618_v21 = vadd.f32 %v6294_v1, %v6182_v50  ;;  %2782 = vmatprep.mubr.bf16.mxu1 %v8555_v34  ;;  %v1724_v50 = vrot.slane %v1722_v13, 1 }
 0x18c   : > { %2614 = vmatmul.mubr.bf16.gmra.mrb[112].mxu0 %v8509_v10 }
 0x18d   : > { %2621 = vmatprep.mubr.bf16.mxu0 %v8540_v40  ;;  %v8624_v49 = vadd.f32 %v6297_v5, %v6185_v48  ;;  %v6298_v14 = vpop.f32.mrb[8].mxu1  ;;  %v8642_v48 = vsel %vm1614_vm9, %v1701_v41, %v1702_v35  ;;  %v1725_v5 = vsel %vm1405_vm7, %v1720_v46, %v1724_v50 }
 0x18e   : > { %v6299_v12 = vpop.f32.mrb[9].mxu1 }
 0x18f   : > { %v6186_v59 = vpop.f32.mrb[8].mxu0  ;;  %v6300_v10 = vadd.f32 %v6299_v12, %v6298_v14  ;;  %v6301_v28 = vpop.f32.mrb[10].mxu1  ;;  %v7391_v12 = vld [vmem:[#allocation9] sm:$0xff]  }
 0x190   : > { %v6187_v57 = vpop.f32.mrb[9].mxu0  ;;  %v6302_v25 = vpop.f32.mrb[11].mxu1 }
 0x191   : > { %v6188_v36 = vadd.f32 %v6187_v57, %v6186_v59  ;;  %v6189_v51 = vpop.f32.mrb[10].mxu0  ;;  %v6303_v18 = vadd.f32 %v6302_v25, %v6301_v28  ;;  %v7390_v59 = vld [vmem:[#allocation9 + $0x40] sm:$0xff]  }
 0x192   : > { %v6190_v19 = vpop.f32.mrb[11].mxu0  ;;  %2783 = vmatmul.mubr.bf16.gmra.mrb[116].mxu1 %v8517_v29  ;;  %6630 = vmatprep.subr.bf16.mxu1 %v7390_v59 }
 0x193   : > { %v6191_v23 = vadd.f32 %v6190_v19, %v6189_v51  ;;  %v8632_v20 = vadd.f32 %v6300_v10, %v6188_v36  ;;  %2790 = vmatprep.mubr.bf16.mxu1 %v1699_v33  ;;  %6631 = vmatpush3.bf16.msra.mxu1 %v7391_v12 }
 0x194   : > { %2622 = vmatmul.mubr.bf16.gmra.mrb[116].mxu0 %v8535_v31 }
 0x195   : > { %2629 = vmatprep.mubr.bf16.mxu0 %v8560_v39  ;;  %v8637_v32 = vadd.f32 %v6303_v18, %v6191_v23  ;;  %v6304_v3 = vpop.f32.mrb[12].mxu1 }
 0x196   : > { %v6305_v2 = vpop.f32.mrb[13].mxu1 }
 0x197   : > { %v6192_v1 = vpop.f32.mrb[12].mxu0  ;;  %v6306_v7 = vadd.f32 %v6305_v2, %v6304_v3  ;;  %v6307_v37 = vpop.f32.mrb[14].mxu1 }
 0x198   : > { %v6193_v43 = vpop.f32.mrb[13].mxu0  ;;  %v6308_v53 = vpop.f32.mrb[15].mxu1 }
 0x199   : > { %v6194_v52 = vadd.f32 %v6193_v43, %v6192_v1  ;;  %v6195_v31 = vpop.f32.mrb[14].mxu0  ;;  %v6309_v54 = vadd.f32 %v6308_v53, %v6307_v37 }
 0x19a   : > { %v6196_v29 = vpop.f32.mrb[15].mxu0  ;;  %2791 = vmatmul.mubr.bf16.gmra.mrb[120].mxu1 %v8542_v16 }
 0x19b   : > { %v6197_v62 = vadd.f32 %v6196_v29, %v6195_v31  ;;  %v8645_v60 = vadd.f32 %v6306_v7, %v6194_v52  ;;  %2798 = vmatprep.mubr.bf16.mxu1 %v1725_v5  ;;  %v7393_v5 = vld [vmem:[#allocation9 + $0x8] sm:$0xff]  }
 0x19c   : > { %2630 = vmatmul.mubr.bf16.gmra.mrb[120].mxu0 %v8555_v34 }
 0x19d   : > { %2637 = vmatprep.mubr.bf16.mxu0 %v8642_v48  ;;  %v8650_v44 = vadd.f32 %v6309_v54, %v6197_v62  ;;  %v6310_v57 = vpop.f32.mrb[16].mxu1 }
 0x19e   : > { %v6311_v10 = vpop.f32.mrb[17].mxu1 }
 0x19f   : > { %v6198_v14 = vpop.f32.mrb[16].mxu0  ;;  %v6312_v28 = vadd.f32 %v6311_v10, %v6310_v57  ;;  %v6313_v25 = vpop.f32.mrb[18].mxu1 }
 0x1a0   : > { %v6199_v36 = vpop.f32.mrb[17].mxu0  ;;  %v6314_v63 = vpop.f32.mrb[19].mxu1 }
 0x1a1   : > { %v6200_v51 = vadd.f32 %v6199_v36, %v6198_v14  ;;  %v6201_v19 = vpop.f32.mrb[18].mxu0  ;;  %v6315_v8 = vadd.f32 %v6314_v63, %v6313_v25 }
 0x1a2   : > { %v6202_v34 = vpop.f32.mrb[19].mxu0  ;;  %2799 = vmatmul.mubr.bf16.gmra.mrb[124].mxu1 %v8616_v47 }
 0x1a3   : > { %v6203_v16 = vadd.f32 %v6202_v34, %v6201_v19  ;;  %v8652_v13 = vadd.f32 %v6312_v28, %v6200_v51 }
 0x1a4   : > { %2638 = vmatmul.mubr.bf16.gmra.mrb[124].mxu0 %v1699_v33  ;;  %v7392_v33 = vld [vmem:[#allocation9 + $0x48] sm:$0xff]  }
 0x1a5   : > { %7118 = vmatprep.mubr.bf16.mxu0 %v8117_v22  ;;  %v8656_v23 = vadd.f32 %v6315_v8, %v6203_v16  ;;  %v6316_v41 = vpop.f32.mrb[20].mxu1  ;;  %6632 = vmatprep.subr.bf16.mxu1 %v7392_v33 }
 0x1a6   : > { %v6317_v46 = vpop.f32.mrb[21].mxu1  ;;  %6633 = vmatpush3.bf16.msra.mxu1 %v7393_v5 }
 0x1a7   : > { %v6204_v18 = vpop.f32.mrb[20].mxu0  ;;  %v6318_v1 = vadd.f32 %v6317_v46, %v6316_v41  ;;  %v6319_v43 = vpop.f32.mrb[22].mxu1 }
 0x1a8   : > { %v6205_v35 = vpop.f32.mrb[21].mxu0  ;;  %v6320_v52 = vpop.f32.mrb[23].mxu1 }
 0x1a9   : > { %v6206_v50 = vadd.f32 %v6205_v35, %v6204_v18  ;;  %v6207_v3 = vpop.f32.mrb[22].mxu0  ;;  %v6321_v31 = vadd.f32 %v6320_v52, %v6319_v43  ;;  %v7395_v52 = vld [vmem:[#allocation9 + $0x10] sm:$0xff]  }
 0x1aa   : > { %v6208_v2 = vpop.f32.mrb[23].mxu0 }
 0x1ab   : > { %v6209_v7 = vadd.f32 %v6208_v2, %v6207_v3  ;;  %v8658_v37 = vadd.f32 %v6318_v1, %v6206_v50 }
 0x1ac   : > { %7119 = vmatmul.mubr.bf16.vlgmr.msra.gmra.mrb[128].mxu0 %v8148_v58 }
 0x1ad   : > { %7122 = vmatprep.mubr.bf16.mxu0 %v8198_v56  ;;  %v8662_v22 = vadd.f32 %v6321_v31, %v6209_v7  ;;  %v6322_v53 = vpop.f32.mrb[24].mxu1 }
 0x1ae   : > { %v6323_v54 = vpop.f32.mrb[25].mxu1 }
 0x1af   : > { %v6210_v29 = vpop.f32.mrb[24].mxu0  ;;  %v6324_v14 = vadd.f32 %v6323_v54, %v6322_v53  ;;  %v6325_v12 = vpop.f32.mrb[26].mxu1 }
 0x1b0   : > { %v6211_v62 = vpop.f32.mrb[25].mxu0  ;;  %v6326_v10 = vpop.f32.mrb[27].mxu1 }
 0x1b1   : > { %v6212_v59 = vadd.f32 %v6211_v62, %v6210_v29  ;;  %v6213_v57 = vpop.f32.mrb[26].mxu0  ;;  %v6327_v58 = vadd.f32 %v6326_v10, %v6325_v12 }
 0x1b2   : > { %v6214_v36 = vpop.f32.mrb[27].mxu0 }
 0x1b3   : > { %v6215_v51 = vadd.f32 %v6214_v36, %v6213_v57  ;;  %v8664_v28 = vadd.f32 %v6324_v14, %v6212_v59 }
 0x1b4   : > { %7123 = vmatmul.mubr.bf16.gmra.mrb[132].mxu0 %v8233_v45 }
 0x1b5   : > { %7126 = vmatprep.mubr.bf16.mxu0 %v8277_v30  ;;  %v8668_v56 = vadd.f32 %v6327_v58, %v6215_v51  ;;  %v6328_v25 = vpop.f32.mrb[28].mxu1  ;;  %v7394_v30 = vld [vmem:[#allocation9 + $0x50] sm:$0xff]  }
 0x1b6   : > { %v6329_v63 = vpop.f32.mrb[29].mxu1  ;;  %6634 = vmatprep.subr.bf16.mxu1 %v7394_v30 }
 0x1b7   : > { %v6216_v19 = vpop.f32.mrb[28].mxu0  ;;  %v6330_v8 = vadd.f32 %v6329_v63, %v6328_v25  ;;  %v6331_v41 = vpop.f32.mrb[30].mxu1  ;;  %6635 = vmatpush3.bf16.msra.mxu1 %v7395_v52 }
 0x1b8   : > { %v6217_v34 = vpop.f32.mrb[29].mxu0  ;;  %v6332_v46 = vpop.f32.mrb[31].mxu1 }
 0x1b9   : > { %v6218_v16 = vadd.f32 %v6217_v34, %v6216_v19  ;;  %v6219_v18 = vpop.f32.mrb[30].mxu0  ;;  %v6333_v1 = vadd.f32 %v6332_v46, %v6331_v41  ;;  %v7397_v46 = vld [vmem:[#allocation9 + $0x18] sm:$0xff]  }
 0x1ba   : > { %v6220_v35 = vpop.f32.mrb[31].mxu0 }
 0x1bb   : > { %v6221_v50 = vadd.f32 %v6220_v35, %v6219_v18  ;;  %v8670_v3 = vadd.f32 %v6330_v8, %v6218_v16 }
 0x1bc   : > { %7127 = vmatmul.mubr.bf16.gmra.mrb[136].mxu0 %v8315_v6 }
 0x1bd   : > { %7130 = vmatprep.mubr.bf16.mxu0 %v8373_v27  ;;  %v8674_v45 = vadd.f32 %v6333_v1, %v6221_v50  ;;  %v6334_v2 = vpop.f32.mrb[32].mxu1 }
 0x1be   : > { %v6335_v31 = vpop.f32.mrb[33].mxu1 }
 0x1bf   : > { %v6222_v43 = vpop.f32.mrb[32].mxu0  ;;  %v6336_v29 = vadd.f32 %v6335_v31, %v6334_v2  ;;  %v6337_v5 = vpop.f32.mrb[34].mxu1 }
 0x1c0   : > { %v6223_v7 = vpop.f32.mrb[33].mxu0  ;;  %v6338_v54 = vpop.f32.mrb[35].mxu1 }
 0x1c1   : > { %v6224_v33 = vadd.f32 %v6223_v7, %v6222_v43  ;;  %v6225_v53 = vpop.f32.mrb[34].mxu0  ;;  %v6339_v27 = vadd.f32 %v6338_v54, %v6337_v5 }
 0x1c2   : > { %v6226_v62 = vpop.f32.mrb[35].mxu0 }
 0x1c3   : > { %v8676_v59 = vadd.f32 %v6336_v29, %v6224_v33  ;;  %v6227_v6 = vadd.f32 %v6226_v62, %v6225_v53 }
 0x1c4   : > { %7131 = vmatmul.mubr.bf16.gmra.mrb[140].mxu0 %v8406_v9 }
 0x1c5   : > { %v8679_v14 = vadd.f32 %v6339_v27, %v6227_v6  ;;  %7134 = vmatprep.mubr.bf16.mxu0 %v8435_v0  ;;  %v6340_v12 = vpop.f32.mrb[36].mxu1  ;;  %v7396_v0 = vld [vmem:[#allocation9 + $0x58] sm:$0xff]  }
 0x1c6   : > { %v6341_v10 = vpop.f32.mrb[37].mxu1  ;;  %6636 = vmatprep.subr.bf16.mxu1 %v7396_v0 }
 0x1c7   : > { %v6228_v57 = vpop.f32.mrb[36].mxu0  ;;  %v6342_v58 = vadd.f32 %v6341_v10, %v6340_v12  ;;  %v6343_v25 = vpop.f32.mrb[38].mxu1  ;;  %6637 = vmatpush3.bf16.msra.mxu1 %v7397_v46 }
 0x1c8   : > { %v6229_v36 = vpop.f32.mrb[37].mxu0  ;;  %v6344_v63 = vpop.f32.mrb[39].mxu1 }
 0x1c9   : > { %v6230_v51 = vadd.f32 %v6229_v36, %v6228_v57  ;;  %v6231_v19 = vpop.f32.mrb[38].mxu0  ;;  %v6345_v18 = vadd.f32 %v6344_v63, %v6343_v25  ;;  %v1728_v25 = vrot.slane %v8626_v15, 1 }
 0x1ca   : > { %v6232_v34 = vpop.f32.mrb[39].mxu0 }
 0x1cb   : > { %v8682_v16 = vadd.f32 %v6342_v58, %v6230_v51  ;;  %v6233_v8 = vadd.f32 %v6232_v34, %v6231_v19  ;;  %v7398_v34 = vld [vmem:[#allocation9 + $0x60] sm:$0xff]  }
 0x1cc   : > { %7135 = vmatmul.mubr.bf16.gmra.mrb[144].mxu0 %v8470_v11  ;;  %6638 = vmatprep.subr.bf16.mxu1 %v7398_v34 }
 0x1cd   : > { %v8685_v9 = vadd.f32 %v6345_v18, %v6233_v8  ;;  %7138 = vmatprep.mubr.bf16.mxu0 %v8500_v42  ;;  %v6346_v35 = vpop.f32.mrb[40].mxu1  ;;  %v7399_v18 = vld [vmem:[#allocation9 + $0x20] sm:$0xff]  }
 0x1ce   : > { %v6347_v1 = vpop.f32.mrb[41].mxu1  ;;  %6639 = vmatpush3.bf16.msra.mxu1 %v7399_v18 }
 0x1cf   : > { %v6234_v41 = vpop.f32.mrb[40].mxu0  ;;  %v6348_v43 = vadd.f32 %v6347_v1, %v6346_v35  ;;  %v6349_v52 = vpop.f32.mrb[42].mxu1 }
 0x1d0   : > { %v6235_v50 = vpop.f32.mrb[41].mxu0  ;;  %v6350_v31 = vpop.f32.mrb[43].mxu1 }
 0x1d1   : > { %v6236_v30 = vadd.f32 %v6235_v50, %v6234_v41  ;;  %v6237_v2 = vpop.f32.mrb[42].mxu0  ;;  %v6351_v29 = vadd.f32 %v6350_v31, %v6349_v52 }
 0x1d2   : > { %v6238_v7 = vpop.f32.mrb[43].mxu0 }
 0x1d3   : > { %v8688_v33 = vadd.f32 %v6348_v43, %v6236_v30  ;;  %v6239_v11 = vadd.f32 %v6238_v7, %v6237_v2 }
 0x1d4   : > { %7139 = vmatmul.mubr.bf16.gmra.mrb[148].mxu0 %v8521_v38 }
 0x1d5   : > { %v8691_v42 = vadd.f32 %v6351_v29, %v6239_v11  ;;  %7142 = vmatprep.mubr.bf16.mxu0 %v8540_v40  ;;  %v6352_v5 = vpop.f32.mrb[44].mxu1  ;;  %v1727_v40 = vrot.slane %v8616_v47, 1 }
 0x1d6   : > { %v6353_v54 = vpop.f32.mrb[45].mxu1 }
 0x1d7   : > { %v6240_v53 = vpop.f32.mrb[44].mxu0  ;;  %v6354_v27 = vadd.f32 %v6353_v54, %v6352_v5  ;;  %v6355_v12 = vpop.f32.mrb[46].mxu1 }
 0x1d8   : > { %v6241_v62 = vpop.f32.mrb[45].mxu0  ;;  %v6356_v10 = vpop.f32.mrb[47].mxu1 }
 0x1d9   : > { %v6242_v6 = vadd.f32 %v6241_v62, %v6240_v53  ;;  %v6243_v57 = vpop.f32.mrb[46].mxu0  ;;  %v6357_v19 = vadd.f32 %v6356_v10, %v6355_v12  ;;  %v7400_v10 = vld [vmem:[#allocation9 + $0x68] sm:$0xff]  }
 0x1da   : > { %v6244_v36 = vpop.f32.mrb[47].mxu0  ;;  %6640 = vmatprep.subr.bf16.mxu1 %v7400_v10  ;;  %v396_v10 = vld [vmem:[#allocation3 + $0x18] sm:$0x1] }
 0x1db   : > { %v8694_v51 = vadd.f32 %v6354_v27, %v6242_v6  ;;  %v6245_v58 = vadd.f32 %v6244_v36, %v6243_v57 }
 0x1dc   : > { %7143 = vmatmul.mubr.bf16.gmra.mrb[152].mxu0 %v8560_v39  ;;  %v1729_v39 = vsel %vm1614_vm9, %v1727_v40, %v1728_v25  ;;  %v7401_v40 = vld [vmem:[#allocation9 + $0x28] sm:$0xff]  }
 0x1dd   : > { %v8697_v38 = vadd.f32 %v6357_v19, %v6245_v58  ;;  %7146 = vmatprep.mubr.bf16.mxu0 %v8642_v48  ;;  %v6358_v8 = vpop.f32.mrb[48].mxu1  ;;  %6641 = vmatpush3.bf16.msra.mxu1 %v7401_v40 }
 0x1de   : > { %v6359_v41 = vpop.f32.mrb[49].mxu1 }
 0x1df   : > { %v6246_v63 = vpop.f32.mrb[48].mxu0  ;;  %v6360_v46 = vadd.f32 %v6359_v41, %v6358_v8  ;;  %v6361_v1 = vpop.f32.mrb[50].mxu1 }
 0x1e0   : > { %v6247_v0 = vpop.f32.mrb[49].mxu0  ;;  %v6362_v48 = vpop.f32.mrb[51].mxu1 }
 0x1e1   : > { %v6248_v35 = vadd.f32 %v6247_v0, %v6246_v63  ;;  %v6249_v50 = vpop.f32.mrb[50].mxu0  ;;  %v6363_v15 = vadd.f32 %v6362_v48, %v6361_v1 }
 0x1e2   : > { %v6250_v30 = vpop.f32.mrb[51].mxu0 }
 0x1e3   : > { %v8703_v43 = vadd.f32 %v6360_v46, %v6248_v35  ;;  %v6251_v47 = vadd.f32 %v6250_v30, %v6249_v50 }
 0x1e4   : > { %7147 = vmatmul.mubr.bf16.gmra.mrb[156].mxu0 %v1729_v39 }
 0x1e5   : > { %v8705_v2 = vadd.f32 %v6363_v15, %v6251_v47  ;;  %v6364_v7 = vpop.f32.mrb[52].mxu1 }
 0x1e6   : > { %v6365_v11 = vpop.f32.mrb[53].mxu1 }
 0x1e7   : > { %v6252_v52 = vpop.f32.mrb[52].mxu0  ;;  %v6366_v53 = vadd.f32 %v6365_v11, %v6364_v7  ;;  %v6367_v62 = vpop.f32.mrb[54].mxu1 }
 0x1e8   : > { %v6253_v31 = vpop.f32.mrb[53].mxu0  ;;  %v6368_v6 = vpop.f32.mrb[55].mxu1 }
 0x1e9   : > { %v6254_v29 = vadd.f32 %v6253_v31, %v6252_v52  ;;  %v6255_v5 = vpop.f32.mrb[54].mxu0  ;;  %v6369_v12 = vadd.f32 %v6368_v6, %v6367_v62  ;;  %v7404_v6 = vld [vmem:[#allocation9 + $0xc0] sm:$0xff]  }
 0x1ea   : > { %v6256_v54 = vpop.f32.mrb[55].mxu0  ;;  %6742 = vmatprep.subr.bf16.mxu0 %v7404_v6 }
 0x1eb   : > { %v8707_v27 = vadd.f32 %v6366_v53, %v6254_v29  ;;  %v6257_v57 = vadd.f32 %v6256_v54, %v6255_v5 }
 0x1ed   : > { %v8709_v36 = vadd.f32 %v6369_v12, %v6257_v57  ;;  %v6370_v19 = vpop.f32.mrb[56].mxu1  ;;  %v7402_v12 = vld [vmem:[#allocation9 + $0x70] sm:$0xff]  }
 0x1ee   : > { %v6371_v34 = vpop.f32.mrb[57].mxu1  ;;  %6642 = vmatprep.subr.bf16.mxu1 %v7402_v12 }
 0x1ef   : > { %v6258_v58 = vpop.f32.mrb[56].mxu0  ;;  %v6372_v8 = vadd.f32 %v6371_v34, %v6370_v19  ;;  %v6373_v0 = vpop.f32.mrb[58].mxu1 }
 0x1f0   : > { %v6259_v25 = vpop.f32.mrb[57].mxu0  ;;  %v6374_v35 = vpop.f32.mrb[59].mxu1 }
 0x1f1   : > { %v6260_v63 = vadd.f32 %v6259_v25, %v6258_v58  ;;  %v6261_v18 = vpop.f32.mrb[58].mxu0  ;;  %v6375_v1 = vadd.f32 %v6374_v35, %v6373_v0  ;;  %v7405_v58 = vld [vmem:[#allocation9 + $0x80] sm:$0xff]   ;;  %v397_v25 = vsel %vm7988_vm4, 0, %v396_v10  ;;  %v450_v10 = vld [vmem:[#allocation3 + $0x20] sm:$0x1] }
 0x1f2   : > { %v6262_v41 = vpop.f32.mrb[59].mxu0  ;;  %398 = vst [vmem:[#allocation3 + $0x18] sm:$0x1] %v397_v25  ;;  %6743 = vmatpush3.bf16.msra.mxu0 %v7405_v58  ;;  %v451_v25 = vsel %vm7983_vm3, 0, %v450_v10 }
 0x1f3   : > { %v8711_v46 = vadd.f32 %v6372_v8, %v6260_v63  ;;  %v6263_v50 = vadd.f32 %v6262_v41, %v6261_v18  ;;  %v7406_v8 = vld [vmem:[#allocation9 + $0xc8] sm:$0xff]   ;;  %452 = vst [vmem:[#allocation3 + $0x20] sm:$0x1] %v451_v25 }
 0x1f4   : > { %6744 = vmatprep.subr.bf16.mxu0 %v7406_v8 }
 0x1f5   : > { %v8713_v39 = vadd.f32 %v6375_v1, %v6263_v50  ;;  %v6376_v48 = vpop.f32.mrb[60].mxu1  ;;  %v7407_v50 = vld [vmem:[#allocation9 + $0x88] sm:$0xff]  }
 0x1f6   : > { %v6377_v15 = vpop.f32.mrb[61].mxu1  ;;  %6745 = vmatpush3.bf16.msra.mxu0 %v7407_v50 }
 0x1f7   : > { %v6264_v30 = vpop.f32.mrb[60].mxu0  ;;  %v6378_v7 = vadd.f32 %v6377_v15, %v6376_v48  ;;  %v6379_v11 = vpop.f32.mrb[62].mxu1 }
 0x1f8   : > { %v6265_v47 = vpop.f32.mrb[61].mxu0  ;;  %v6380_v53 = vpop.f32.mrb[63].mxu1 }
 0x1f9   : > { %v6266_v52 = vadd.f32 %v6265_v47, %v6264_v30  ;;  %v6267_v31 = vpop.f32.mrb[62].mxu0  ;;  %v6381_v54 = vadd.f32 %v6380_v53, %v6379_v11  ;;  %v7409_v11 = vld [vmem:[#allocation9 + $0x90] sm:$0xff]  }
 0x1fa   : > { %v6268_v29 = vpop.f32.mrb[63].mxu0 }
 0x1fb   : > { %v8715_v5 = vadd.f32 %v6378_v7, %v6266_v52  ;;  %v6269_v62 = vadd.f32 %v6268_v29, %v6267_v31  ;;  %v7408_v52 = vld [vmem:[#allocation9 + $0xd0] sm:$0xff]  }
 0x1fc   : > { %6746 = vmatprep.subr.bf16.mxu0 %v7408_v52 }
 0x1fd   : > { %v8717_v57 = vadd.f32 %v6381_v54, %v6269_v62  ;;  %v6510_v40 = vpop.f32.mrb[64].mxu1  ;;  %v393_v62 = vld [vmem:[#allocation3 + $0xc] sm:$0x1]  ;;  %6747 = vmatpush3.bf16.msra.mxu0 %v7409_v11 }
 0x1fe   : > { %v6511_v63 = vpop.f32.mrb[65].mxu1 }
 0x1ff   : > { %v6398_v19 = vpop.f32.mrb[64].mxu0  ;;  %v6512_v41 = vadd.f32 %v6511_v63, %v6510_v40  ;;  %v6513_v35 = vpop.f32.mrb[66].mxu1 }
 0x200   : > { %v6399_v34 = vpop.f32.mrb[65].mxu0  ;;  %v6514_v30 = vpop.f32.mrb[67].mxu1 }
 0x201   : > { %v6400_v18 = vadd.f32 %v6399_v34, %v6398_v19  ;;  %v6401_v0 = vpop.f32.mrb[66].mxu0  ;;  %v6515_v15 = vadd.f32 %v6514_v30, %v6513_v35  ;;  %v447_v34 = vld [vmem:[#allocation3 + $0x14] sm:$0x1]  ;;  %v402_v30 = vld [vmem:[#allocation3 + $0x30] sm:$0x1] }
 0x202   : > { %v6402_v1 = vpop.f32.mrb[67].mxu0  ;;  %v403_v52 = vsel %vm7988_vm4, 0, %v402_v30 }
 0x203   : > { %v2520_v48 = vadd.f32 %v6400_v18, %v8603_v17  ;;  %v6403_v47 = vadd.f32 %v6402_v1, %v6401_v0  ;;  %v394_v17 = vsel %vm7988_vm4, 0, %v393_v62  ;;  %v448_v18 = vsel %vm7983_vm3, 0, %v447_v34  ;;  %404 = vst [vmem:[#allocation3 + $0x30] sm:$0x1] %v403_v52  ;;  %v7410_v34 = vld [vmem:[#allocation9 + $0xd8] sm:$0xff]  }
 0x204   : > { %395 = vst [vmem:[#allocation3 + $0xc] sm:$0x1] %v394_v17  ;;  %449 = vst [vmem:[#allocation3 + $0x14] sm:$0x1] %v448_v18  ;;  %6748 = vmatprep.subr.bf16.mxu0 %v7410_v34  ;;  %v7412_v34 = vld [vmem:[#allocation9 + $0x78] sm:$0xff]  }
 0x205   : > { %v2523_v7 = vadd.f32 %v6403_v47, %v8609_v55  ;;  %v8723_v31 = vadd.f32 %v6512_v41, %v2520_v48  ;;  %v6516_v53 = vpop.f32.mrb[68].mxu1 }
 0x206   : > { %v6517_v12 = vpop.f32.mrb[69].mxu1 }
 0x207   : > { %v6404_v29 = vpop.f32.mrb[68].mxu0  ;;  %v8725_v54 = vadd.f32 %v6515_v15, %v2523_v7  ;;  %v6518_v40 = vadd.f32 %v6517_v12, %v6516_v53  ;;  %v6519_v55 = vpop.f32.mrb[70].mxu1  ;;  %v399_v7 = vld [vmem:[#allocation3 + $0x24] sm:$0x1]  ;;  %v7403_v12 = vld [vmem:[#allocation9 + $0x30] sm:$0xff]  }
 0x208   : > { %v6405_v6 = vpop.f32.mrb[69].mxu0  ;;  %v6520_v8 = vpop.f32.mrb[71].mxu1  ;;  %6643 = vmatpush3.bf16.msra.mxu1 %v7403_v12 }
 0x209   : > { %v6406_v58 = vadd.f32 %v6405_v6, %v6404_v29  ;;  %v6407_v19 = vpop.f32.mrb[70].mxu0  ;;  %v6521_v35 = vadd.f32 %v6520_v8, %v6519_v55  ;;  %6644 = vmatprep.subr.bf16.mxu1 %v7412_v34 }
 0x20a   : > { %v6408_v63 = vpop.f32.mrb[71].mxu0 }
 0x20b   : > { %v2528_v0 = vadd.f32 %v6406_v58, %v8618_v21  ;;  %v6409_v41 = vadd.f32 %v6408_v63, %v6407_v19  ;;  %v400_v21 = vsel %vm7988_vm4, 0, %v399_v7  ;;  %v456_v58 = vld [vmem:[#allocation3 + $0x38] sm:$0x1]  ;;  %v7411_v63 = vld [vmem:[#allocation9 + $0x98] sm:$0xff]   ;;  %v444_v7 = vld [vmem:[#allocation3 + $0x8] sm:$0x1] }
 0x20c   : > { %401 = vst [vmem:[#allocation3 + $0x24] sm:$0x1] %v400_v21  ;;  %v457_v25 = vsel %vm7983_vm3, 0, %v456_v58  ;;  %6749 = vmatpush3.bf16.msra.mxu0 %v7411_v63  ;;  %v453_v58 = vld [vmem:[#allocation3 + $0x2c] sm:$0x1] }
 0x20d   : > { %v2531_v50 = vadd.f32 %v6409_v41, %v8624_v49  ;;  %v8735_v1 = vadd.f32 %v6518_v40, %v2528_v0  ;;  %v6522_v47 = vpop.f32.mrb[72].mxu1  ;;  %458 = vst [vmem:[#allocation3 + $0x38] sm:$0x1] %v457_v25  ;;  %v390_v0 = vld [vmem:[#allocation3] sm:$0x1]  ;;  %v7414_v41 = vld [vmem:[#allocation9 + $0xe0] sm:$0xff]  }
 0x20e   : > { %v6523_v29 = vpop.f32.mrb[73].mxu1  ;;  %6750 = vmatprep.subr.bf16.mxu0 %v7414_v41  ;;  %v7418_v63 = vld [vmem:[#allocation9 + $0xf0] sm:$0xff]  }
 0x20f   : > { %v6410_v48 = vpop.f32.mrb[72].mxu0  ;;  %v8737_v15 = vadd.f32 %v6521_v35, %v2531_v50  ;;  %v6524_v49 = vadd.f32 %v6523_v29, %v6522_v47  ;;  %v6525_v6 = vpop.f32.mrb[74].mxu1 }
 0x210   : > { %v6411_v11 = vpop.f32.mrb[73].mxu0  ;;  %v6526_v10 = vpop.f32.mrb[75].mxu1 }
 0x211   : > { %v6412_v53 = vadd.f32 %v6411_v11, %v6410_v48  ;;  %v6413_v62 = vpop.f32.mrb[74].mxu0  ;;  %v6527_v55 = vadd.f32 %v6526_v10, %v6525_v6  ;;  %v7415_v48 = vld [vmem:[#allocation9 + $0xa0] sm:$0xff]   ;;  %v7416_v6 = vld [vmem:[#allocation9 + $0xe8] sm:$0xff]  }
 0x212   : > { %v6414_v17 = vpop.f32.mrb[75].mxu0  ;;  %6751 = vmatpush3.bf16.msra.mxu0 %v7415_v48 }
 0x213   : > { %v2536_v19 = vadd.f32 %v6412_v53, %v8632_v20  ;;  %v6415_v40 = vadd.f32 %v6414_v17, %v6413_v62  ;;  %v391_v20 = vsel %vm7988_vm4, 0, %v390_v0  ;;  %v445_v53 = vsel %vm7983_vm3, 0, %v444_v7  ;;  %6752 = vmatprep.subr.bf16.mxu0 %v7416_v6  ;;  %v462_v6 = vld [vmem:[#allocation3 + $0x50] sm:$0x1] }
 0x214   : > { %392 = vst [vmem:[#allocation3] sm:$0x1] %v391_v20  ;;  %446 = vst [vmem:[#allocation3 + $0x8] sm:$0x1] %v445_v53  ;;  %v7419_v20 = vld [vmem:[#allocation9 + $0xb0] sm:$0xff]  }
 0x215   : > { %v2539_v8 = vadd.f32 %v6415_v40, %v8637_v32  ;;  %v8747_v18 = vadd.f32 %v6524_v49, %v2536_v19  ;;  %v6528_v50 = vpop.f32.mrb[76].mxu1  ;;  %v7417_v19 = vld [vmem:[#allocation9 + $0xa8] sm:$0xff]   ;;  %v454_v40 = vsel %vm7983_vm3, 0, %v453_v58  ;;  %v463_v58 = vsel %vm7983_vm3, 0, %v462_v6 }
 0x216   : > { %v6529_v52 = vpop.f32.mrb[77].mxu1  ;;  %455 = vst [vmem:[#allocation3 + $0x2c] sm:$0x1] %v454_v40  ;;  %6753 = vmatpush3.bf16.msra.mxu0 %v7417_v19  ;;  %v459_v19 = vld [vmem:[#allocation3 + $0x44] sm:$0x1] }
 0x217   : > { %v6416_v35 = vpop.f32.mrb[76].mxu0  ;;  %v8751_v30 = vadd.f32 %v6527_v55, %v2539_v8  ;;  %v6530_v29 = vadd.f32 %v6529_v52, %v6528_v50  ;;  %v6531_v21 = vpop.f32.mrb[78].mxu1  ;;  %6754 = vmatprep.subr.bf16.mxu0 %v7418_v63  ;;  %464 = vst [vmem:[#allocation3 + $0x50] sm:$0x1] %v463_v58  ;;  %v460_v40 = vsel %vm7983_vm3, 0, %v459_v19 }
 0x218   : > { %v6417_v47 = vpop.f32.mrb[77].mxu0  ;;  %v6532_v49 = vpop.f32.mrb[79].mxu1  ;;  %461 = vst [vmem:[#allocation3 + $0x44] sm:$0x1] %v460_v40  ;;  %v468_v40 = vld [vmem:[#allocation3 + $0x68] sm:$0x1] }
 0x219   : > { %v6418_v32 = vadd.f32 %v6417_v47, %v6416_v35  ;;  %v6419_v11 = vpop.f32.mrb[78].mxu0  ;;  %v6533_v10 = vadd.f32 %v6532_v49, %v6531_v21  ;;  %v408_v47 = vld [vmem:[#allocation3 + $0x48] sm:$0x1] }
 0x21a   : > { %v6420_v62 = vpop.f32.mrb[79].mxu0  ;;  %6755 = vmatpush3.bf16.msra.mxu0 %v7419_v20 }
 0x21b   : > { %v2544_v12 = vadd.f32 %v6418_v32, %v8645_v60  ;;  %v6421_v17 = vadd.f32 %v6420_v62, %v6419_v11  ;;  %v7413_v60 = vld [vmem:[#allocation9 + $0x38] sm:$0xff]   ;;  %v8763_v35 = vld [vmem:[#allocation3] sm:$0xff]   ;;  %v409_v11 = vsel %vm7988_vm4, 0, %v408_v47 }
 0x21c   : > { %6645 = vmatpush3.bf16.msra.mxu1 %v7413_v60  ;;  %v3946_v21 = vshll.u32 %v8763_v35, 16  ;;  %410 = vst [vmem:[#allocation3 + $0x48] sm:$0x1] %v409_v11  ;;  %v7423_v47 = vld [vmem:[#allocation9 + $0xb8] sm:$0xff]  }
 0x21d   : > { %v2547_v55 = vadd.f32 %v6421_v17, %v8650_v44  ;;  %v8759_v25 = vadd.f32 %v6530_v29, %v2544_v12  ;;  %v6534_v0 = vpop.f32.mrb[80].mxu1  ;;  %v405_v29 = vld [vmem:[#allocation3 + $0x3c] sm:$0x1] }
 0x21e   : > { %v6535_v48 = vpop.f32.mrb[81].mxu1  ;;  %v406_v49 = vsel %vm7988_vm4, 0, %v405_v29  ;;  %v3948_v34 = vrot.slane %v3946_v21, 1 }
 0x21f   : > { %v6422_v8 = vpop.f32.mrb[80].mxu0  ;;  %v8761_v41 = vadd.f32 %v6533_v10, %v2547_v55  ;;  %v6536_v7 = vadd.f32 %v6535_v48, %v6534_v0  ;;  %v6537_v32 = vpop.f32.mrb[82].mxu1  ;;  %407 = vst [vmem:[#allocation3 + $0x3c] sm:$0x1] %v406_v49  ;;  %v3944_v55 = vshrl.u32 %v8763_v35, 16  ;;  %v7422_v0 = vld [vmem:[#allocation9 + $0xf8] sm:$0xff]  }
 0x220   : > { %v6423_v50 = vpop.f32.mrb[81].mxu0  ;;  %v6538_v62 = vpop.f32.mrb[83].mxu1  ;;  %6756 = vmatprep.subr.bf16.mxu0 %v7422_v0 }
 0x221   : > { %v6424_v44 = vadd.f32 %v6423_v50, %v6422_v8  ;;  %v6425_v52 = vpop.f32.mrb[82].mxu0  ;;  %v6539_v10 = vadd.f32 %v6538_v62, %v6537_v32  ;;  %v414_v32 = vld [vmem:[#allocation3 + $0x60] sm:$0x1]  ;;  %v3949_v11 = vor.u32 %v3948_v34, %v3944_v55  ;;  %6757 = vmatpush3.bf16.msra.mxu0 %v7423_v47  ;;  %v469_v55 = vsel %vm7983_vm3, 0, %v468_v40 }
 0x222   : > { %v6426_v53 = vpop.f32.mrb[83].mxu0  ;;  %470 = vst [vmem:[#allocation3 + $0x68] sm:$0x1] %v469_v55  ;;  %v474_v40 = vld [vmem:[#allocation3 + $0x80] sm:$0x1] }
 0x223   : > { %v2552_v12 = vadd.f32 %v6424_v44, %v8652_v13  ;;  %v6427_v17 = vadd.f32 %v6426_v53, %v6425_v52  ;;  %v7421_v13 = vld [vmem:[#allocation3 + $0x8] ss:$0 sps:$4 sm:$0x11]  }
 0x224   : > { %v3951_v48 = vshll.u32 %v7421_v13, 16  ;;  %v4152_v0 = vrot.slane %v7421_v13, 1 }
 0x225   : > { %v2555_v63 = vadd.f32 %v6427_v17, %v8656_v23  ;;  %v8777_v8 = vadd.f32 %v6536_v7, %v2552_v12  ;;  %v6540_v20 = vpop.f32.mrb[84].mxu1  ;;  %v415_v7 = vsel %vm7988_vm4, 0, %v414_v32  ;;  %v411_v12 = vld [vmem:[#allocation3 + $0x54] sm:$0x1] }
 0x226   : > { %v6541_v52 = vpop.f32.mrb[85].mxu1  ;;  %v3953_v62 = vrot.slane %v3951_v48, 1  ;;  %416 = vst [vmem:[#allocation3 + $0x60] sm:$0x1] %v415_v7  ;;  %v412_v19 = vsel %vm7988_vm4, 0, %v411_v12 }
 0x227   : > { %v6428_v60 = vpop.f32.mrb[84].mxu0  ;;  %v8779_v50 = vadd.f32 %v6539_v10, %v2555_v63  ;;  %v6542_v53 = vadd.f32 %v6541_v52, %v6540_v20  ;;  %v6543_v23 = vpop.f32.mrb[86].mxu1  ;;  %413 = vst [vmem:[#allocation3 + $0x54] sm:$0x1] %v412_v19  ;;  %v4151_v63 = vrot.slane %v8763_v35, 1 }
 0x228   : > { %v6429_v44 = vpop.f32.mrb[85].mxu0  ;;  %v6544_v6 = vpop.f32.mrb[87].mxu1  ;;  %v3954_v34 = vsel %vm1405_vm7, %v3949_v11, %v3953_v62  ;;  %v465_v52 = vld [vmem:[#allocation3 + $0x5c] sm:$0x1] }
 0x229   : > { %v6430_v29 = vadd.f32 %v6429_v44, %v6428_v60  ;;  %v6431_v21 = vpop.f32.mrb[86].mxu0  ;;  %v6545_v58 = vadd.f32 %v6544_v6, %v6543_v23  ;;  %4731 = vmatprep.mubr.bf16.mxu1 %v3954_v34  ;;  %v466_v13 = vsel %vm7983_vm3, 0, %v465_v52  ;;  %v420_v6 = vld [vmem:[#allocation3 + $0x78] sm:$0x1] }
 0x22a   : > { %v6432_v49 = vpop.f32.mrb[87].mxu0  ;;  %4732 = vmatmul.mubr.bf16.vlgmr.msra.gmra.mrb[128].mxu1 %v8763_v35  ;;  %467 = vst [vmem:[#allocation3 + $0x5c] sm:$0x1] %v466_v13 }
 0x22b   : > { %v2560_v17 = vadd.f32 %v6430_v29, %v8658_v37  ;;  %v6433_v10 = vadd.f32 %v6432_v49, %v6431_v21  ;;  %v8795_v37 = vsel %vm1614_vm9, %v4151_v63, %v4152_v0 }
 0x22d   : > { %v2563_v60 = vadd.f32 %v6433_v10, %v8662_v22  ;;  %v8791_v20 = vadd.f32 %v6542_v53, %v2560_v17  ;;  %v6546_v47 = vpop.f32.mrb[88].mxu1  ;;  %v421_v10 = vsel %vm7988_vm4, 0, %v420_v6 }
 0x22e   : > { %v6547_v11 = vpop.f32.mrb[89].mxu1  ;;  %422 = vst [vmem:[#allocation3 + $0x78] sm:$0x1] %v421_v10 }
 0x22f   : > { %v6434_v48 = vpop.f32.mrb[88].mxu0  ;;  %v8797_v44 = vadd.f32 %v6545_v58, %v2563_v60  ;;  %v6548_v21 = vadd.f32 %v6547_v11, %v6546_v47  ;;  %v6549_v53 = vpop.f32.mrb[90].mxu1  ;;  %v417_v58 = vld [vmem:[#allocation3 + $0x6c] sm:$0x1]  ;;  %v471_v60 = vld [vmem:[#allocation3 + $0x74] sm:$0x1] }
 0x230   : > { %v6435_v32 = vpop.f32.mrb[89].mxu0  ;;  %v6550_v35 = vpop.f32.mrb[91].mxu1  ;;  %v418_v19 = vsel %vm7988_vm4, 0, %v417_v58  ;;  %v472_v11 = vsel %vm7983_vm3, 0, %v471_v60 }
 0x231   : > { %v6436_v22 = vadd.f32 %v6435_v32, %v6434_v48  ;;  %v6437_v29 = vpop.f32.mrb[90].mxu0  ;;  %v6551_v49 = vadd.f32 %v6550_v35, %v6549_v53  ;;  %419 = vst [vmem:[#allocation3 + $0x6c] sm:$0x1] %v418_v19  ;;  %473 = vst [vmem:[#allocation3 + $0x74] sm:$0x1] %v472_v11  ;;  %v7426_v35 = vld [vmem:[#allocation9 + $0x100] sm:$0xff]  }
 0x232   : > { %v6438_v23 = vpop.f32.mrb[91].mxu0 }
 0x233   : > { %v2568_v7 = vadd.f32 %v6436_v22, %v8664_v28  ;;  %v6439_v62 = vadd.f32 %v6438_v23, %v6437_v29  ;;  %v475_v28 = vsel %vm7983_vm3, 0, %v474_v40  ;;  %v7425_v29 = vld [vmem:[#allocation9 + $0x140] sm:$0xff]  }
 0x234   : > { %476 = vst [vmem:[#allocation3 + $0x80] sm:$0x1] %v475_v28  ;;  %6854 = vmatprep.subr.bf16.mxu1 %v7425_v29 }
 0x235   : > { %v2571_v12 = vadd.f32 %v6439_v62, %v8668_v56  ;;  %v8803_v17 = vadd.f32 %v6548_v21, %v2568_v7  ;;  %v6552_v34 = vpop.f32.mrb[92].mxu1  ;;  %6855 = vmatpush3.bf16.msra.mxu1 %v7426_v35 }
 0x236   : > { %v6553_v0 = vpop.f32.mrb[93].mxu1 }
 0x237   : > { %v6440_v55 = vpop.f32.mrb[92].mxu0  ;;  %v8809_v63 = vadd.f32 %v6551_v49, %v2571_v12  ;;  %v6554_v52 = vadd.f32 %v6553_v0, %v6552_v34  ;;  %v6555_v32 = vpop.f32.mrb[94].mxu1 }
 0x238   : > { %v6441_v56 = vpop.f32.mrb[93].mxu0  ;;  %v6556_v22 = vpop.f32.mrb[95].mxu1 }
 0x239   : > { %v6442_v48 = vadd.f32 %v6441_v56, %v6440_v55  ;;  %v6443_v47 = vpop.f32.mrb[94].mxu0  ;;  %v6557_v23 = vadd.f32 %v6556_v22, %v6555_v32 }
 0x23a   : > { %v6444_v13 = vpop.f32.mrb[95].mxu0 }
 0x23b   : > { %v2576_v21 = vadd.f32 %v6442_v48, %v8670_v3  ;;  %v6445_v53 = vadd.f32 %v6444_v13, %v6443_v47 }
 0x23d   : > { %v2579_v7 = vadd.f32 %v6445_v53, %v8674_v45  ;;  %v8817_v62 = vadd.f32 %v6554_v52, %v2576_v21  ;;  %v6558_v6 = vpop.f32.mrb[96].mxu1  ;;  %v426_v45 = vld [vmem:[#allocation3 + $0x90] sm:$0x1] }
 0x23e   : > { %v6559_v58 = vpop.f32.mrb[97].mxu1  ;;  %v427_v52 = vsel %vm7988_vm4, 0, %v426_v45 }
 0x23f   : > { %v6446_v49 = vpop.f32.mrb[96].mxu0  ;;  %v8819_v12 = vadd.f32 %v6557_v23, %v2579_v7  ;;  %v6560_v55 = vadd.f32 %v6559_v58, %v6558_v6  ;;  %v6561_v34 = vpop.f32.mrb[98].mxu1  ;;  %428 = vst [vmem:[#allocation3 + $0x90] sm:$0x1] %v427_v52 }
 0x240   : > { %v6447_v10 = vpop.f32.mrb[97].mxu0  ;;  %v6562_v28 = vpop.f32.mrb[99].mxu1 }
 0x241   : > { %v6448_v19 = vadd.f32 %v6447_v10, %v6446_v49  ;;  %v6449_v40 = vpop.f32.mrb[98].mxu0  ;;  %v6563_v60 = vadd.f32 %v6562_v28, %v6561_v34 }
 0x242   : > { %v6450_v3 = vpop.f32.mrb[99].mxu0 }
 0x243   : > { %v2584_v56 = vadd.f32 %v6448_v19, %v8676_v59  ;;  %v6451_v0 = vadd.f32 %v6450_v3, %v6449_v40  ;;  %v423_v19 = vld [vmem:[#allocation3 + $0x84] sm:$0x1] }
 0x244   : > { %v424_v40 = vsel %vm7988_vm4, 0, %v423_v19  ;;  %v429_v19 = vld [vmem:[#allocation3 + $0x9c] sm:$0x1] }
 0x245   : > { %v2587_v48 = vadd.f32 %v6451_v0, %v8679_v14  ;;  %v8823_v47 = vadd.f32 %v6560_v55, %v2584_v56  ;;  %v6564_v11 = vpop.f32.mrb[100].mxu1  ;;  %425 = vst [vmem:[#allocation3 + $0x84] sm:$0x1] %v424_v40 }
 0x246   : > { %v6565_v29 = vpop.f32.mrb[101].mxu1 }
 0x247   : > { %v6452_v32 = vpop.f32.mrb[100].mxu0  ;;  %v8827_v13 = vadd.f32 %v6563_v60, %v2587_v48  ;;  %v6566_v59 = vadd.f32 %v6565_v29, %v6564_v11  ;;  %v6567_v23 = vpop.f32.mrb[102].mxu1 }
 0x248   : > { %v6453_v22 = vpop.f32.mrb[101].mxu0  ;;  %v6568_v7 = vpop.f32.mrb[103].mxu1 }
 0x249   : > { %v6454_v21 = vadd.f32 %v6453_v22, %v6452_v32  ;;  %v6455_v53 = vpop.f32.mrb[102].mxu0  ;;  %v6569_v6 = vadd.f32 %v6568_v7, %v6567_v23  ;;  %v480_v22 = vld [vmem:[#allocation3 + $0x98] sm:$0x1] }
 0x24a   : > { %v6456_v35 = vpop.f32.mrb[103].mxu0  ;;  %v481_v29 = vsel %vm7983_vm3, 0, %v480_v22 }
 0x24b   : > { %v2592_v14 = vadd.f32 %v6454_v21, %v8682_v16  ;;  %v6457_v49 = vadd.f32 %v6456_v35, %v6455_v53  ;;  %v477_v21 = vld [vmem:[#allocation3 + $0x8c] sm:$0x1]  ;;  %v7431_v53 = vld [vmem:[#allocation9 + $0x148] sm:$0xff]   ;;  %482 = vst [vmem:[#allocation3 + $0x98] sm:$0x1] %v481_v29 }
 0x24c   : > { %v478_v7 = vsel %vm7983_vm3, 0, %v477_v21  ;;  %6856 = vmatprep.subr.bf16.mxu1 %v7431_v53 }
 0x24d   : > { %v2595_v10 = vadd.f32 %v6457_v49, %v8685_v9  ;;  %v8831_v58 = vadd.f32 %v6566_v59, %v2592_v14  ;;  %v6570_v34 = vpop.f32.mrb[104].mxu1  ;;  %v432_v59 = vld [vmem:[#allocation3 + $0xa8] sm:$0x1]  ;;  %479 = vst [vmem:[#allocation3 + $0x8c] sm:$0x1] %v478_v7 }
 0x24e   : > { %v6571_v56 = vpop.f32.mrb[105].mxu1 }
 0x24f   : > { %v6458_v55 = vpop.f32.mrb[104].mxu0  ;;  %v8835_v3 = vadd.f32 %v6569_v6, %v2595_v10  ;;  %v6572_v16 = vadd.f32 %v6571_v56, %v6570_v34  ;;  %v6573_v45 = vpop.f32.mrb[106].mxu1  ;;  %v7433_v10 = vld [vmem:[#allocation9 + $0x108] sm:$0xff]  }
 0x250   : > { %v6459_v28 = vpop.f32.mrb[105].mxu0  ;;  %v6574_v52 = vpop.f32.mrb[107].mxu1  ;;  %6857 = vmatpush3.bf16.msra.mxu1 %v7433_v10 }
 0x251   : > { %v6460_v0 = vadd.f32 %v6459_v28, %v6458_v55  ;;  %v6461_v60 = vpop.f32.mrb[106].mxu0  ;;  %v6575_v11 = vadd.f32 %v6574_v52, %v6573_v45  ;;  %v430_v55 = vsel %vm7988_vm4, 0, %v429_v19 }
 0x252   : > { %v6462_v48 = vpop.f32.mrb[107].mxu0  ;;  %431 = vst [vmem:[#allocation3 + $0x9c] sm:$0x1] %v430_v55 }
 0x253   : > { %v2600_v9 = vadd.f32 %v6460_v0, %v8688_v33  ;;  %v6463_v32 = vadd.f32 %v6462_v48, %v6461_v60  ;;  %v433_v33 = vsel %vm7988_vm4, 0, %v432_v59 }
 0x254   : > { %434 = vst [vmem:[#allocation3 + $0xa8] sm:$0x1] %v433_v33 }
 0x255   : > { %v2603_v23 = vadd.f32 %v6463_v32, %v8691_v42  ;;  %v8841_v35 = vadd.f32 %v6572_v16, %v2600_v9  ;;  %v6576_v49 = vpop.f32.mrb[108].mxu1 }
 0x256   : > { %v6577_v42 = vpop.f32.mrb[109].mxu1 }
 0x257   : > { %v6464_v14 = vpop.f32.mrb[108].mxu0  ;;  %v8847_v6 = vadd.f32 %v6575_v11, %v2603_v23  ;;  %v6578_v56 = vadd.f32 %v6577_v42, %v6576_v49  ;;  %v6579_v0 = vpop.f32.mrb[110].mxu1  ;;  %v483_v49 = vld [vmem:[#allocation3 + $0xa4] sm:$0x1] }
 0x258   : > { %v6465_v40 = vpop.f32.mrb[109].mxu0  ;;  %v6580_v16 = vpop.f32.mrb[111].mxu1 }
 0x259   : > { %v6466_v34 = vadd.f32 %v6465_v40, %v6464_v14  ;;  %v6467_v28 = vpop.f32.mrb[110].mxu0  ;;  %v6581_v52 = vadd.f32 %v6580_v16, %v6579_v0  ;;  %v486_v14 = vld [vmem:[#allocation3 + $0xb0] sm:$0x1] }
 0x25a   : > { %v6468_v60 = vpop.f32.mrb[111].mxu0  ;;  %v487_v19 = vsel %vm7983_vm3, 0, %v486_v14 }
 0x25b   : > { %v2608_v45 = vadd.f32 %v6466_v34, %v8694_v51  ;;  %v6469_v48 = vadd.f32 %v6468_v60, %v6467_v28  ;;  %488 = vst [vmem:[#allocation3 + $0xb0] sm:$0x1] %v487_v19  ;;  %v438_v34 = vld [vmem:[#allocation3 + $0xc0] sm:$0x1]  ;;  %v435_v60 = vld [vmem:[#allocation3 + $0xb4] sm:$0x1] }
 0x25c   : > { %v439_v0 = vsel %vm7988_vm4, 0, %v438_v34 }
 0x25d   : > { %v2611_v9 = vadd.f32 %v6469_v48, %v8697_v38  ;;  %v8853_v32 = vadd.f32 %v6578_v56, %v2608_v45  ;;  %v6582_v22 = vpop.f32.mrb[112].mxu1  ;;  %v484_v38 = vsel %vm7983_vm3, 0, %v483_v49  ;;  %440 = vst [vmem:[#allocation3 + $0xc0] sm:$0x1] %v439_v0 }
 0x25e   : > { %v6583_v53 = vpop.f32.mrb[113].mxu1  ;;  %485 = vst [vmem:[#allocation3 + $0xa4] sm:$0x1] %v484_v38 }
 0x25f   : > { %v6470_v11 = vpop.f32.mrb[112].mxu0  ;;  %v8855_v29 = vadd.f32 %v6581_v52, %v2611_v9  ;;  %v6584_v7 = vadd.f32 %v6583_v53, %v6582_v22  ;;  %v6585_v33 = vpop.f32.mrb[114].mxu1 }
 0x260   : > { %v6471_v21 = vpop.f32.mrb[113].mxu0  ;;  %v6586_v51 = vpop.f32.mrb[115].mxu1 }
 0x261   : > { %v6472_v59 = vadd.f32 %v6471_v21, %v6470_v11  ;;  %v6473_v23 = vpop.f32.mrb[114].mxu0  ;;  %v6587_v55 = vadd.f32 %v6586_v51, %v6585_v33 }
 0x262   : > { %v6474_v10 = vpop.f32.mrb[115].mxu0 }
 0x263   : > { %v2616_v40 = vadd.f32 %v6472_v59, %v8703_v43  ;;  %v6475_v42 = vadd.f32 %v6474_v10, %v6473_v23  ;;  %v436_v43 = vsel %vm7988_vm4, 0, %v435_v60  ;;  %v492_v10 = vld [vmem:[#allocation3 + $0xc8] sm:$0x1] }
 0x264   : > { %437 = vst [vmem:[#allocation3 + $0xb4] sm:$0x1] %v436_v43  ;;  %v493_v51 = vsel %vm7983_vm3, 0, %v492_v10  ;;  %v7445_v10 = vld [vmem:[#allocation9 + $0x118] sm:$0xff]  }
 0x265   : > { %v2619_v28 = vadd.f32 %v6475_v42, %v8705_v2  ;;  %v8863_v56 = vadd.f32 %v6584_v7, %v2616_v40  ;;  %v6588_v45 = vpop.f32.mrb[116].mxu1  ;;  %494 = vst [vmem:[#allocation3 + $0xc8] sm:$0x1] %v493_v51  ;;  %v489_v42 = vld [vmem:[#allocation3 + $0xbc] sm:$0x1] }
 0x266   : > { %v6589_v9 = vpop.f32.mrb[117].mxu1 }
 0x267   : > { %v6476_v16 = vpop.f32.mrb[116].mxu0  ;;  %v8867_v48 = vadd.f32 %v6587_v55, %v2619_v28  ;;  %v6590_v2 = vadd.f32 %v6589_v9, %v6588_v45  ;;  %v6591_v21 = vpop.f32.mrb[118].mxu1  ;;  %v7439_v45 = vld [vmem:[#allocation9 + $0x110] sm:$0xff]  }
 0x268   : > { %v6477_v52 = vpop.f32.mrb[117].mxu0  ;;  %v6592_v59 = vpop.f32.mrb[119].mxu1 }
 0x269   : > { %v6478_v11 = vadd.f32 %v6477_v52, %v6476_v16  ;;  %v6479_v22 = vpop.f32.mrb[118].mxu0  ;;  %v6593_v33 = vadd.f32 %v6592_v59, %v6591_v21  ;;  %v7437_v16 = vld [vmem:[#allocation9 + $0x150] sm:$0xff]  }
 0x26a   : > { %v6480_v53 = vpop.f32.mrb[119].mxu0  ;;  %6858 = vmatprep.subr.bf16.mxu1 %v7437_v16 }
 0x26b   : > { %v2624_v23 = vadd.f32 %v6478_v11, %v8707_v27  ;;  %v6481_v7 = vadd.f32 %v6480_v53, %v6479_v22  ;;  %v490_v27 = vsel %vm7983_vm3, 0, %v489_v42  ;;  %6859 = vmatpush3.bf16.msra.mxu1 %v7439_v45 }
 0x26c   : > { %491 = vst [vmem:[#allocation3 + $0xbc] sm:$0x1] %v490_v27 }
 0x26d   : > { %v2627_v14 = vadd.f32 %v6481_v7, %v8709_v36  ;;  %v8873_v49 = vadd.f32 %v6590_v2, %v2624_v23  ;;  %v6594_v38 = vpop.f32.mrb[120].mxu1  ;;  %v7443_v2 = vld [vmem:[#allocation9 + $0x158] sm:$0xff]  }
 0x26e   : > { %v6595_v34 = vpop.f32.mrb[121].mxu1  ;;  %6860 = vmatprep.subr.bf16.mxu1 %v7443_v2 }
 0x26f   : > { %v6482_v19 = vpop.f32.mrb[120].mxu0  ;;  %v8877_v40 = vadd.f32 %v6593_v33, %v2627_v14  ;;  %v6596_v36 = vadd.f32 %v6595_v34, %v6594_v38  ;;  %v6597_v60 = vpop.f32.mrb[122].mxu1  ;;  %6861 = vmatpush3.bf16.msra.mxu1 %v7445_v10 }
 0x270   : > { %v6483_v55 = vpop.f32.mrb[121].mxu0  ;;  %v6598_v52 = vpop.f32.mrb[123].mxu1 }
 0x271   : > { %v6484_v28 = vadd.f32 %v6483_v55, %v6482_v19  ;;  %v6485_v0 = vpop.f32.mrb[122].mxu0  ;;  %v6599_v22 = vadd.f32 %v6598_v52, %v6597_v60  ;;  %v8896_v52 = vld [vmem:[#allocation10 + $0x1] ss:$0 sm:$0xff] }
 0x272   : > { %v6486_v43 = vpop.f32.mrb[123].mxu0 }
 0x273   : > { %v2632_v9 = vadd.f32 %v6484_v28, %v8711_v46  ;;  %v6487_v11 = vadd.f32 %v6486_v43, %v6485_v0 }
 0x275   : > { %v2635_v21 = vadd.f32 %v6487_v11, %v8713_v39  ;;  %v8883_v53 = vadd.f32 %v6596_v36, %v2632_v9  ;;  %v6600_v23 = vpop.f32.mrb[124].mxu1  ;;  %v8891_v36 = vld [vmem:[#allocation10] ss:$0 sm:$0xff] }
 0x276   : > { %v6601_v14 = vpop.f32.mrb[125].mxu1 }
 0x277   : > { %v6488_v59 = vpop.f32.mrb[124].mxu0  ;;  %v8885_v7 = vadd.f32 %v6599_v22, %v2635_v21  ;;  %v6602_v46 = vadd.f32 %v6601_v14, %v6600_v23  ;;  %v6603_v38 = vpop.f32.mrb[126].mxu1  ;;  %v7451_v23 = vld [vmem:[#allocation9 + $0x160] sm:$0xff]  }
 0x278   : > { %v6489_v33 = vpop.f32.mrb[125].mxu0  ;;  %v6604_v55 = vpop.f32.mrb[127].mxu1  ;;  %6862 = vmatprep.subr.bf16.mxu1 %v7451_v23 }
 0x279   : > { %v6490_v51 = vadd.f32 %v6489_v33, %v6488_v59  ;;  %v6491_v19 = vpop.f32.mrb[126].mxu0  ;;  %v6605_v27 = vadd.f32 %v6604_v55, %v6603_v38 }
 0x27a   : > { %v6492_v42 = vpop.f32.mrb[127].mxu0 }
 0x27b   : > { %v2640_v34 = vadd.f32 %v6490_v51, %v8715_v5  ;;  %v6493_v39 = vadd.f32 %v6492_v42, %v6491_v19  ;;  %v7449_v5 = vld [vmem:[#allocation9 + $0x1c0] sm:$0xff]  }
 0x27c   : > { %6966 = vmatprep.subr.bf16.mxu0 %v7449_v5 }
 0x27d   : > { %v2643_v28 = vadd.f32 %v6493_v39, %v8717_v57  ;;  %v8889_v0 = vadd.f32 %v6602_v46, %v2640_v34  ;;  %v7453_v34 = vld [vmem:[#allocation9 + $0x120] sm:$0xff]  }
 0x27e   : > { %6863 = vmatpush3.bf16.msra.mxu1 %v7453_v34 }
 0x27f   : > { %v7120_v60 = vpop.f32.mrb[128].mxu0  ;;  %v8893_v16 = vadd.f32 %v6605_v27, %v2643_v28 }
 0x280   : > { %v2850_v45 = vadd.f32 %v7120_v60, %v8735_v1  ;;  %v2841_v43 = vpop.f32.mrb[129].mxu0 }
 0x281   : > { %v2842_v9 = vadd.f32 %v2841_v43, %v8723_v31  ;;  %v7121_v11 = vpop.f32.mrb[130].mxu0 }
 0x282   : > { %v2974_v22 = vmul.f32 %v8891_v36, %v2850_v45  ;;  %v2853_v57 = vadd.f32 %v7121_v11, %v8737_v15  ;;  %v2844_v2 = vpop.f32.mrb[131].mxu0 }
 0x283   : > { %v2972_v21 = vmul.f32 %v8891_v36, %v2842_v9  ;;  %v2845_v59 = vadd.f32 %v2844_v2, %v8725_v54 }
 0x284   : > { %v3010_v1 = vadd.f32 %v8896_v52, %v2974_v22  ;;  %v2975_v33 = vmul.f32 %v8891_v36, %v2853_v57 }
 0x285   : > { %v3008_v14 = vadd.f32 %v8896_v52, %v2972_v21  ;;  %v2973_v31 = vmul.f32 %v8891_v36, %v2845_v59 }
 0x286   : > { %v3042_v10 = vmax.f32 %v3010_v1, 0.0  ;;  %v3011_v51 = vadd.f32 %v8896_v52, %v2975_v33  ;;  %v3496_v33 = vld [vmem:[#allocation3 + $0x18] sm:$0xf] }
 0x287   : > { %v3040_v15 = vmax.f32 %v3008_v14, 0.0  ;;  %v3009_v19 = vadd.f32 %v8896_v52, %v2973_v31  ;;  %v7124_v46 = vpop.f32.mrb[132].mxu0 }
 0x288   : > { %v6127_v38 = vpack.c.bf16 %v3042_v10, %v3042_v10  ;;  %v3043_v54 = vmax.f32 %v3011_v51, 0.0  ;;  %v2866_v42 = vadd.f32 %v7124_v46, %v8759_v25  ;;  %v2857_v55 = vpop.f32.mrb[133].mxu0 }
 0x289   : > { %v6125_v39 = vpack.c.bf16 %v3040_v15, %v3040_v15  ;;  %v3041_v27 = vmax.f32 %v3009_v19, 0.0  ;;  %v2858_v28 = vadd.f32 %v2857_v55, %v8747_v18  ;;  %v7125_v60 = vpop.f32.mrb[134].mxu0  ;;  %v3489_v19 = vld [vmem:[#allocation3 + $0xc] sm:$0xf]  ;;  %v3500_v55 = vld [vmem:[#allocation3 + $0x20] sm:$0x1] }
 0x28a   : > { %v3186_v45 = vshrl.u32 %v6127_v38, 16  ;;  %v3189_v43 = vshll.u32 %v6127_v38, 16  ;;  %v6128_v9 = vpack.c.bf16 %v3043_v54, %v3043_v54  ;;  %v2978_v11 = vmul.f32 %v8891_v36, %v2866_v42  ;;  %v2860_v5 = vpop.f32.mrb[135].mxu0 }
 0x28b   : > { %v3169_v22 = vshrl.u32 %v6125_v39, 16  ;;  %v3172_v57 = vshll.u32 %v6125_v39, 16  ;;  %v6126_v2 = vpack.c.bf16 %v3041_v27, %v3041_v27  ;;  %v2976_v21 = vmul.f32 %v8891_v36, %v2858_v28 }
 0x28c   : > { %v3188_v25 = vrot.slane %v3186_v45, 7  ;;  %v3194_v59 = vshrl.u32 %v6128_v9, 16  ;;  %v3197_v23 = vshll.u32 %v6128_v9, 16  ;;  %v3014_v1 = vadd.f32 %v8896_v52, %v2978_v11  ;;  %v3493_v11 = vld [vmem:[#allocation3 + $0x14] sm:$0x1] }
 0x28d   : > { %v3171_v18 = vrot.slane %v3169_v22, 7  ;;  %v3177_v14 = vshrl.u32 %v6126_v2, 16  ;;  %v3180_v31 = vshll.u32 %v6126_v2, 16  ;;  %v3012_v10 = vadd.f32 %v8896_v52, %v2976_v21 }
 0x28e   : > { %v3191_v51 = vor.u32 %v3189_v43, %v3188_v25  ;;  %v3192_v15 = vrot.slane %v3188_v25, 4  ;;  %v3196_v46 = vrot.slane %v3194_v59, 7  ;;  %v3046_v38 = vmax.f32 %v3014_v1, 0.0 }
 0x28f   : > { %v3174_v54 = vor.u32 %v3172_v57, %v3171_v18  ;;  %v3175_v42 = vrot.slane %v3171_v18, 4  ;;  %v3179_v34 = vrot.slane %v3177_v14, 7  ;;  %v3044_v39 = vmax.f32 %v3012_v10, 0.0  ;;  %v7128_v27 = vpop.f32.mrb[136].mxu0 }
 0x290   : > { %v3497_v28 = vsel %vm8018_vm10, %v3191_v51, %v3496_v33  ;;  %v3199_v45 = vor.u32 %v3197_v23, %v3196_v46  ;;  %v3201_v9 = vrot.slane %v3196_v46, 4  ;;  %v6131_v22 = vpack.c.bf16 %v3046_v38, %v3046_v38  ;;  %v2873_v2 = vpop.f32.mrb[137].mxu0  ;;  %v7459_v46 = vld [vmem:[#allocation9 + $0x168] sm:$0xff]  }
 0x291   : > { %3498 = vst [vmem:[#allocation3 + $0x18] sm:$0xf] %v3497_v28  ;;  %v3490_v43 = vsel %vm8018_vm10, %v3174_v54, %v3489_v19  ;;  %v3182_v21 = vor.u32 %v3180_v31, %v3179_v34  ;;  %v3184_v25 = vrot.slane %v3179_v34, 4  ;;  %v6129_v57 = vpack.c.bf16 %v3044_v39, %v3044_v39  ;;  %v7129_v59 = vpop.f32.mrb[138].mxu0  ;;  %v3510_v34 = vld [vmem:[#allocation3 + $0x30] sm:$0xf]  ;;  %6864 = vmatprep.subr.bf16.mxu1 %v7459_v46 }
 0x292   : > { %3491 = vst [vmem:[#allocation3 + $0xc] sm:$0xf] %v3490_v43  ;;  %v3200_v1 = vsel %vm8009_vm8, %v3192_v15, %v3199_v45  ;;  %v3501_v33 = vsel %vm7988_vm4, %v3201_v9, %v3500_v55  ;;  %v3220_v23 = vshrl.u32 %v6131_v22, 16  ;;  %v3223_v18 = vshll.u32 %v6131_v22, 16  ;;  %v2876_v14 = vpop.f32.mrb[139].mxu0 }
 0x293   : > { %3499 = vst [vmem:[#allocation3 + $0x1c] sm:$0xf] %v3200_v1  ;;  %3502 = vst [vmem:[#allocation3 + $0x20] sm:$0x1] %v3501_v33  ;;  %v3183_v10 = vsel %vm8009_vm8, %v3175_v42, %v3182_v21  ;;  %v3494_v31 = vsel %vm7988_vm4, %v3184_v25, %v3493_v11  ;;  %v3203_v51 = vshrl.u32 %v6129_v57, 16  ;;  %v3206_v19 = vshll.u32 %v6129_v57, 16 }
 0x294   : > { %3492 = vst [vmem:[#allocation3 + $0x10] sm:$0xf] %v3183_v10  ;;  %3495 = vst [vmem:[#allocation3 + $0x14] sm:$0x1] %v3494_v31  ;;  %v8927_v15 = vrot.slane %v3220_v23, 7  ;;  %v2869_v38 = vadd.f32 %v7125_v60, %v8761_v41  ;;  %v2861_v54 = vadd.f32 %v2860_v5, %v8751_v30  ;;  %v2882_v55 = vadd.f32 %v7128_v27, %v8791_v20  ;;  %v7461_v25 = vld [vmem:[#allocation9 + $0x128] sm:$0xff]  }
 0x295   : > { %v8932_v39 = vrot.slane %v3203_v51, 7  ;;  %v2874_v42 = vadd.f32 %v2873_v2, %v8777_v8  ;;  %v2885_v28 = vadd.f32 %v7129_v59, %v8797_v44  ;;  %v2877_v45 = vadd.f32 %v2876_v14, %v8779_v50  ;;  %v3503_v22 = vld [vmem:[#allocation3 + $0x24] sm:$0xf]  ;;  %6865 = vmatpush3.bf16.msra.mxu1 %v7461_v25 }
 0x296   : > { %v3225_v9 = vor.u32 %v3223_v18, %v8927_v15  ;;  %v3226_v11 = vrot.slane %v8927_v15, 4  ;;  %v2979_v41 = vmul.f32 %v8891_v36, %v2869_v38  ;;  %v2977_v30 = vmul.f32 %v8891_v36, %v2861_v54 }
 0x297   : > { %v3208_v20 = vor.u32 %v3206_v19, %v8932_v39  ;;  %v3209_v60 = vrot.slane %v8932_v39, 4  ;;  %v2982_v8 = vmul.f32 %v8891_v36, %v2882_v55  ;;  %v2980_v44 = vmul.f32 %v8891_v36, %v2874_v42  ;;  %v7132_v5 = vpop.f32.mrb[140].mxu0 }
 0x298   : > { %v3511_v50 = vsel %vm8018_vm10, %v3225_v9, %v3510_v34  ;;  %v3015_v27 = vadd.f32 %v8896_v52, %v2979_v41  ;;  %v3013_v2 = vadd.f32 %v8896_v52, %v2977_v30  ;;  %v2983_v43 = vmul.f32 %v8891_v36, %v2885_v28  ;;  %v2889_v21 = vpop.f32.mrb[141].mxu0  ;;  %v7450_v34 = vld [vmem:[#allocation9 + $0x180] sm:$0xff]  }
 0x299   : > { %3512 = vst [vmem:[#allocation3 + $0x30] sm:$0xf] %v3511_v50  ;;  %v3504_v57 = vsel %vm8018_vm10, %v3208_v20, %v3503_v22  ;;  %v3018_v59 = vadd.f32 %v8896_v52, %v2982_v8  ;;  %v3016_v1 = vadd.f32 %v8896_v52, %v2980_v44  ;;  %v2981_v33 = vmul.f32 %v8891_v36, %v2877_v45  ;;  %v8955_v23 = vpop.f32.mrb[142].mxu0  ;;  %v7457_v22 = vld [vmem:[#allocation9 + $0x1c8] sm:$0xff]  }
 0x29a   : > { %3505 = vst [vmem:[#allocation3 + $0x24] sm:$0xf] %v3504_v57  ;;  %v3047_v18 = vmax.f32 %v3015_v27, 0.0  ;;  %v3045_v14 = vmax.f32 %v3013_v2, 0.0  ;;  %v3019_v10 = vadd.f32 %v8896_v52, %v2983_v43  ;;  %v2898_v31 = vadd.f32 %v7132_v5, %v8817_v62  ;;  %v8959_v51 = vpop.f32.mrb[143].mxu0  ;;  %v8968_v8 = vld [vmem:[#allocation3 + $0x18] sm:$0xff]  }
 0x29b   : > { %v3050_v19 = vmax.f32 %v3018_v59, 0.0  ;;  %v3048_v46 = vmax.f32 %v3016_v1, 0.0  ;;  %v3017_v38 = vadd.f32 %v8896_v52, %v2981_v33  ;;  %v2890_v54 = vadd.f32 %v2889_v21, %v8803_v17  ;;  %v8963_v55 = vld [vmem:[#allocation3 + $0xc] sm:$0xff]   ;;  %v3514_v27 = vld [vmem:[#allocation3 + $0x38] sm:$0x1]  ;;  %v7458_v1 = vld [vmem:[#allocation9 + $0x188] sm:$0xff]  }
 0x29c   : > { %v6132_v42 = vpack.c.bf16 %v3047_v18, %v3047_v18  ;;  %v6130_v28 = vpack.c.bf16 %v3045_v14, %v3045_v14  ;;  %v3051_v45 = vmax.f32 %v3019_v10, 0.0  ;;  %v2986_v9 = vmul.f32 %v8891_v36, %v2898_v31  ;;  %4892 = vmatprep.mubr.bf16.mxu0 %v8963_v55  ;;  %v3507_v2 = vld [vmem:[#allocation3 + $0x2c] sm:$0x1]  ;;  %v3524_v14 = vld [vmem:[#allocation3 + $0x48] sm:$0xf] }
 0x29d   : > { %v6135_v41 = vpack.c.bf16 %v3050_v19, %v3050_v19  ;;  %v6133_v62 = vpack.c.bf16 %v3048_v46, %v3048_v46  ;;  %v3049_v30 = vmax.f32 %v3017_v38, 0.0  ;;  %v2984_v20 = vmul.f32 %v8891_v36, %v2890_v54  ;;  %4893 = vmatmul.mubr.bf16.vlgmr.msra.gmra.mrb[160].mxu0 %v8795_v37 }
 0x29e   : > { %v3228_v44 = vshrl.u32 %v6132_v42, 16  ;;  %v3231_v17 = vshll.u32 %v6132_v42, 16  ;;  %v3211_v5 = vshrl.u32 %v6130_v28, 16  ;;  %v3214_v50 = vshll.u32 %v6130_v28, 16  ;;  %4900 = vmatprep.mubr.bf16.mxu0 %v8968_v8  ;;  %6967 = vmatpush3.bf16.msra.mxu0 %v7450_v34  ;;  %v7465_v28 = vld [vmem:[#allocation9 + $0x1d0] sm:$0xff]  }
 0x29f   : > { %v3254_v43 = vshrl.u32 %v6135_v41, 16  ;;  %v3257_v21 = vshll.u32 %v6135_v41, 16  ;;  %v3237_v25 = vshrl.u32 %v6133_v62, 16  ;;  %v3240_v57 = vshll.u32 %v6133_v62, 16  ;;  %v7136_v59 = vpop.f32.mrb[144].mxu0  ;;  %6968 = vmatprep.subr.bf16.mxu0 %v7457_v22 }
 0x2a0   : > { %v3230_v33 = vrot.slane %v3228_v44, 7  ;;  %v3213_v18 = vrot.slane %v3211_v5, 7  ;;  %v6136_v10 = vpack.c.bf16 %v3051_v45, %v3051_v45  ;;  %v6134_v31 = vpack.c.bf16 %v3049_v30, %v3049_v30  ;;  %v2905_v19 = vpop.f32.mrb[145].mxu0  ;;  %v3517_v5 = vld [vmem:[#allocation3 + $0x3c] sm:$0xf] }
 0x2a1   : > { %v8972_v46 = vrot.slane %v3254_v43, 7  ;;  %v8974_v37 = vrot.slane %v3237_v25, 7  ;;  %v3022_v38 = vadd.f32 %v8896_v52, %v2986_v9  ;;  %v3020_v54 = vadd.f32 %v8896_v52, %v2984_v20  ;;  %v8978_v42 = vpop.f32.mrb[146].mxu0  ;;  %v7466_v20 = vld [vmem:[#allocation9 + $0x190] sm:$0xff]  }
 0x2a2   : > { %v3233_v34 = vor.u32 %v3231_v17, %v3230_v33  ;;  %v3235_v41 = vrot.slane %v3230_v33, 4  ;;  %v3216_v62 = vor.u32 %v3214_v50, %v3213_v18  ;;  %v3218_v44 = vrot.slane %v3213_v18, 4  ;;  %v8980_v45 = vpop.f32.mrb[147].mxu0  ;;  %6969 = vmatpush3.bf16.msra.mxu0 %v7458_v1  ;;  %v7467_v25 = vld [vmem:[#allocation9 + $0x170] sm:$0xff]  }
 0x2a3   : > { %v3259_v22 = vor.u32 %v3257_v21, %v8972_v46  ;;  %v3260_v30 = vrot.slane %v8972_v46, 4  ;;  %v3242_v43 = vor.u32 %v3240_v57, %v8974_v37  ;;  %v3243_v9 = vrot.slane %v8974_v37, 4  ;;  %6970 = vmatprep.subr.bf16.mxu0 %v7465_v28  ;;  %6866 = vmatprep.subr.bf16.mxu1 %v7467_v25 }
 0x2a4   : > { %v3234_v17 = vsel %vm8009_vm8, %v3226_v11, %v3233_v34  ;;  %v3515_v50 = vsel %vm7988_vm4, %v3235_v41, %v3514_v27  ;;  %v3217_v21 = vsel %vm8009_vm8, %v3209_v60, %v3216_v62  ;;  %v3508_v57 = vsel %vm7988_vm4, %v3218_v44, %v3507_v2 }
 0x2a5   : > { %3513 = vst [vmem:[#allocation3 + $0x34] sm:$0xf] %v3234_v17  ;;  %3516 = vst [vmem:[#allocation3 + $0x38] sm:$0x1] %v3515_v50  ;;  %v3525_v15 = vsel %vm8018_vm10, %v3259_v22, %v3524_v14  ;;  %v3518_v11 = vsel %vm8018_vm10, %v3242_v43, %v3517_v5  ;;  %v3262_v27 = vshrl.u32 %v6136_v10, 16  ;;  %v3265_v1 = vshll.u32 %v6136_v10, 16 }
 0x2a6   : > { %3506 = vst [vmem:[#allocation3 + $0x28] sm:$0xf] %v3217_v21  ;;  %3509 = vst [vmem:[#allocation3 + $0x2c] sm:$0x1] %v3508_v57  ;;  %v3245_v39 = vshrl.u32 %v6134_v31, 16  ;;  %v3248_v60 = vshll.u32 %v6134_v31, 16  ;;  %v2901_v46 = vadd.f32 %v8955_v23, %v8819_v12  ;;  %v2893_v37 = vadd.f32 %v8959_v51, %v8809_v63  ;;  %6971 = vmatpush3.bf16.msra.mxu0 %v7466_v20 }
 0x2a7   : > { %3526 = vst [vmem:[#allocation3 + $0x48] sm:$0xf] %v3525_v15  ;;  %3519 = vst [vmem:[#allocation3 + $0x3c] sm:$0xf] %v3518_v11  ;;  %v3054_v33 = vmax.f32 %v3022_v38, 0.0  ;;  %v3052_v2 = vmax.f32 %v3020_v54, 0.0  ;;  %v2914_v14 = vadd.f32 %v7136_v59, %v8831_v58  ;;  %v2906_v31 = vadd.f32 %v2905_v19, %v8823_v47 }
 0x2a8   : > { %v3264_v18 = vrot.slane %v3262_v27, 7  ;;  %v9007_v28 = vpop.f32.mrb[148].mxu0  ;;  %v3528_v10 = vld [vmem:[#allocation3 + $0x50] sm:$0x1]  ;;  %v3247_v34 = vrot.slane %v3245_v39, 7  ;;  %v7469_v54 = vld [vmem:[#allocation9 + $0x130] sm:$0xff]   ;;  %v2987_v23 = vmul.f32 %v8891_v36, %v2901_v46  ;;  %v2985_v63 = vmul.f32 %v8891_v36, %v2893_v37 }
 0x2a9   : > { %v6139_v41 = vpack.c.bf16 %v3054_v33, %v3054_v33  ;;  %v6137_v62 = vpack.c.bf16 %v3052_v2, %v3052_v2  ;;  %v9010_v38 = vpop.f32.mrb[149].mxu0  ;;  %v3521_v12 = vld [vmem:[#allocation3 + $0x44] sm:$0x1]  ;;  %6867 = vmatpush3.bf16.msra.mxu1 %v7469_v54  ;;  %v2988_v39 = vmul.f32 %v8891_v36, %v2906_v31  ;;  %v3531_v33 = vld [vmem:[#allocation3 + $0x54] sm:$0xf] }
 0x2aa   : > { %v3267_v44 = vor.u32 %v3265_v1, %v3264_v18  ;;  %v3269_v5 = vrot.slane %v3264_v18, 4  ;;  %v9014_v58 = vpop.f32.mrb[150].mxu0  ;;  %v3250_v51 = vor.u32 %v3248_v60, %v3247_v34  ;;  %v3252_v59 = vrot.slane %v3247_v34, 4 }
 0x2ab   : > { %v3288_v22 = vshrl.u32 %v6139_v41, 16  ;;  %v3291_v43 = vshll.u32 %v6139_v41, 16  ;;  %v9016_v20 = vpop.f32.mrb[151].mxu0  ;;  %v3271_v25 = vshrl.u32 %v6137_v62, 16  ;;  %v3274_v17 = vshll.u32 %v6137_v62, 16 }
 0x2ac   : > { %v3268_v47 = vsel %vm8009_vm8, %v3260_v30, %v3267_v44  ;;  %v3529_v19 = vsel %vm7988_vm4, %v3269_v5, %v3528_v10  ;;  %v3251_v50 = vsel %vm8009_vm8, %v3243_v9, %v3250_v51  ;;  %v3522_v21 = vsel %vm7988_vm4, %v3252_v59, %v3521_v12  ;;  %v3538_v30 = vld [vmem:[#allocation3 + $0x60] sm:$0xf]  ;;  %v7474_v51 = vld [vmem:[#allocation9 + $0x198] sm:$0xff]  }
 0x2ad   : > { %3527 = vst [vmem:[#allocation3 + $0x4c] sm:$0xf] %v3268_v47  ;;  %3530 = vst [vmem:[#allocation3 + $0x50] sm:$0x1] %v3529_v19  ;;  %v9026_v57 = vrot.slane %v3288_v22, 7  ;;  %v3023_v15 = vadd.f32 %v8896_v52, %v2987_v23  ;;  %v9029_v11 = vrot.slane %v3271_v25, 7  ;;  %v3021_v27 = vadd.f32 %v8896_v52, %v2985_v63 }
 0x2ae   : > { %3520 = vst [vmem:[#allocation3 + $0x40] sm:$0xf] %v3251_v50  ;;  %3523 = vst [vmem:[#allocation3 + $0x44] sm:$0x1] %v3522_v21  ;;  %v2990_v1 = vmul.f32 %v8891_v36, %v2914_v14  ;;  %v2917_v18 = vadd.f32 %v8978_v42, %v8835_v3  ;;  %v3024_v31 = vadd.f32 %v8896_v52, %v2988_v39  ;;  %v7473_v63 = vld [vmem:[#allocation9 + $0x1d8] sm:$0xff]  }
 0x2af   : > { %v3293_v9 = vor.u32 %v3291_v43, %v9026_v57  ;;  %v3294_v60 = vrot.slane %v9026_v57, 4  ;;  %v3055_v2 = vmax.f32 %v3023_v15, 0.0  ;;  %v3276_v46 = vor.u32 %v3274_v17, %v9029_v11  ;;  %v9041_v41 = vpop.f32.mrb[152].mxu0  ;;  %v3542_v25 = vld [vmem:[#allocation3 + $0x68] sm:$0x1]  ;;  %6972 = vmatprep.subr.bf16.mxu0 %v7473_v63 }
 0x2b0   : > { %v3277_v37 = vrot.slane %v9029_v11, 4  ;;  %v3053_v10 = vmax.f32 %v3021_v27, 0.0  ;;  %v3026_v34 = vadd.f32 %v8896_v52, %v2990_v1  ;;  %v2991_v54 = vmul.f32 %v8891_v36, %v2917_v18  ;;  %v9047_v44 = vpop.f32.mrb[153].mxu0  ;;  %v3535_v15 = vld [vmem:[#allocation3 + $0x5c] sm:$0x1]  ;;  %6973 = vmatpush3.bf16.msra.mxu0 %v7474_v51 }
 0x2b1   : > { %v3539_v14 = vsel %vm8018_vm10, %v3293_v9, %v3538_v30  ;;  %v6140_v62 = vpack.c.bf16 %v3055_v2, %v3055_v2  ;;  %v3532_v3 = vsel %vm8018_vm10, %v3276_v46, %v3531_v33  ;;  %v2909_v12 = vadd.f32 %v8980_v45, %v8827_v13  ;;  %v9053_v23 = vpop.f32.mrb[154].mxu0  ;;  %v7475_v13 = vld [vmem:[#allocation9 + $0x178] sm:$0xff]   ;;  %v3552_v46 = vld [vmem:[#allocation3 + $0x78] sm:$0xf]  ;;  %v3545_v51 = vld [vmem:[#allocation3 + $0x6c] sm:$0xf] }
 0x2b2   : > { %3540 = vst [vmem:[#allocation3 + $0x60] sm:$0xf] %v3539_v14  ;;  %v6138_v42 = vpack.c.bf16 %v3053_v10, %v3053_v10  ;;  %v3058_v5 = vmax.f32 %v3026_v34, 0.0  ;;  %3533 = vst [vmem:[#allocation3 + $0x54] sm:$0xf] %v3532_v3  ;;  %v3056_v43 = vmax.f32 %v3024_v31, 0.0  ;;  %v3027_v47 = vadd.f32 %v8896_v52, %v2991_v54  ;;  %6868 = vmatprep.subr.bf16.mxu1 %v7475_v13 }
 0x2b3   : > { %v3296_v59 = vshrl.u32 %v6140_v62, 16  ;;  %v3299_v22 = vshll.u32 %v6140_v62, 16  ;;  %v9056_v19 = vpop.f32.mrb[155].mxu0  ;;  %v2989_v57 = vmul.f32 %v8891_v36, %v2909_v12  ;;  %v3956_v27 = vshrl.u32 %v8963_v55, 16 }
 0x2b4   : > { %v3279_v17 = vshrl.u32 %v6138_v42, 16  ;;  %v3282_v50 = vshll.u32 %v6138_v42, 16  ;;  %v6143_v21 = vpack.c.bf16 %v3058_v5, %v3058_v5  ;;  %v6141_v30 = vpack.c.bf16 %v3056_v43, %v3056_v43  ;;  %v9061_v14 = vld [vmem:[#allocation3 + $0x14] ss:$0 sps:$4 sm:$0x11]  }
 0x2b5   : > { %v3298_v45 = vrot.slane %v3296_v59, 7  ;;  %v3059_v11 = vmax.f32 %v3027_v47, 0.0  ;;  %v3025_v33 = vadd.f32 %v8896_v52, %v2989_v57 }
 0x2b6   : > { %v3281_v1 = vrot.slane %v3279_v17, 7  ;;  %v3322_v39 = vshrl.u32 %v6143_v21, 16  ;;  %v3325_v9 = vshll.u32 %v6143_v21, 16  ;;  %v3305_v10 = vshrl.u32 %v6141_v30, 16 }
 0x2b7   : > { %v3301_v2 = vor.u32 %v3299_v22, %v3298_v45  ;;  %v3303_v18 = vrot.slane %v3298_v45, 4  ;;  %v3308_v34 = vshll.u32 %v6141_v30, 16  ;;  %v6144_v3 = vpack.c.bf16 %v3059_v11, %v3059_v11  ;;  %v9063_v42 = vpop.f32.mrb[156].mxu0  ;;  %v7478_v11 = vld [vmem:[#allocation9 + $0x1e0] sm:$0xff]  }
 0x2b8   : > { %v3284_v62 = vor.u32 %v3282_v50, %v3281_v1  ;;  %v3286_v31 = vrot.slane %v3281_v1, 4  ;;  %v3324_v54 = vrot.slane %v3322_v39, 7  ;;  %v9069_v63 = vrot.slane %v3305_v10, 7  ;;  %v9071_v22 = vpop.f32.mrb[157].mxu0  ;;  %6974 = vmatprep.subr.bf16.mxu0 %v7478_v11 }
 0x2b9   : > { %v3302_v5 = vsel %vm8009_vm8, %v3294_v60, %v3301_v2  ;;  %v3543_v12 = vsel %vm7988_vm4, %v3303_v18, %v3542_v25  ;;  %v3057_v59 = vmax.f32 %v3025_v33, 0.0  ;;  %v9077_v60 = vld [vmem:[#allocation3 + $0x20] ss:$0 sps:$4 sm:$0x11]   ;;  %v9079_v21 = vpop.f32.mrb[158].mxu0  ;;  %v3330_v13 = vshrl.u32 %v6144_v3, 16 }
 0x2ba   : > { %3541 = vst [vmem:[#allocation3 + $0x64] sm:$0xf] %v3302_v5  ;;  %3544 = vst [vmem:[#allocation3 + $0x68] sm:$0x1] %v3543_v12  ;;  %v3285_v43 = vsel %vm8009_vm8, %v3277_v37, %v3284_v62  ;;  %v3536_v47 = vsel %vm7988_vm4, %v3286_v31, %v3535_v15  ;;  %v3327_v17 = vor.u32 %v3325_v9, %v3324_v54  ;;  %v3328_v50 = vrot.slane %v3324_v54, 4  ;;  %v9083_v30 = vpop.f32.mrb[159].mxu0 }
 0x2bb   : > { %3534 = vst [vmem:[#allocation3 + $0x58] sm:$0xf] %v3285_v43  ;;  %3537 = vst [vmem:[#allocation3 + $0x5c] sm:$0x1] %v3536_v47  ;;  %v3310_v25 = vor.u32 %v3308_v34, %v9069_v63  ;;  %v3311_v57 = vrot.slane %v9069_v63, 4  ;;  %v3333_v45 = vshll.u32 %v6144_v3, 16  ;;  %v6142_v1 = vpack.c.bf16 %v3057_v59, %v3057_v59 }
 0x2bc   : > { %v7477_v37 = vld [vmem:[#allocation9 + $0x138] sm:$0xff]   ;;  %v3553_v15 = vsel %vm8018_vm10, %v3327_v17, %v3552_v46  ;;  %v3958_v39 = vshll.u32 %v8963_v55, 16  ;;  %v3963_v9 = vshll.u32 %v9061_v14, 16  ;;  %v7480_v33 = vld [vmem:[#allocation9 + $0x1a0] sm:$0xff]   ;;  %v7481_v2 = vld [vmem:[#allocation9 + $0x1e8] sm:$0xff]   ;;  %v3332_v10 = vrot.slane %v3330_v13, 7 }
 0x2bd   : > { %3554 = vst [vmem:[#allocation3 + $0x78] sm:$0xf] %v3553_v15  ;;  %v3546_v18 = vsel %vm8018_vm10, %v3310_v25, %v3545_v51  ;;  %v3556_v34 = vld [vmem:[#allocation3 + $0x80] sm:$0x1]  ;;  %v2930_v62 = vadd.f32 %v9007_v28, %v8853_v32  ;;  %v3968_v31 = vshrl.u32 %v8968_v8, 16  ;;  %6869 = vmatpush3.bf16.msra.mxu1 %v7477_v37  ;;  %v3313_v46 = vshrl.u32 %v6142_v1, 16  ;;  %6975 = vmatpush3.bf16.msra.mxu0 %v7480_v33 }
 0x2be   : > { %3547 = vst [vmem:[#allocation3 + $0x6c] sm:$0xf] %v3546_v18  ;;  %v3316_v54 = vshll.u32 %v6142_v1, 16  ;;  %v3960_v3 = vrot.slane %v3958_v39, 1  ;;  %v3965_v5 = vrot.slane %v3963_v9, 1  ;;  %v7482_v12 = vld [vmem:[#allocation9 + $0x1a8] sm:$0xff]   ;;  %v3335_v63 = vor.u32 %v3333_v45, %v3332_v10  ;;  %6976 = vmatprep.subr.bf16.mxu0 %v7481_v2 }
 0x2bf   : > { %v3337_v59 = vrot.slane %v3332_v10, 4  ;;  %v2994_v51 = vmul.f32 %v8891_v36, %v2930_v62  ;;  %v3970_v43 = vshll.u32 %v8968_v8, 16  ;;  %v3315_v47 = vrot.slane %v3313_v46, 7  ;;  %v3549_v32 = vld [vmem:[#allocation3 + $0x74] sm:$0x1]  ;;  %v9108_v9 = vld [vmem:[#allocation3 + $0x24] sm:$0xff]  }
 0x2c0   : > { %v3961_v28 = vor.u32 %v3960_v3, %v3956_v27  ;;  %v3975_v17 = vshll.u32 %v9077_v60, 16  ;;  %v4154_v25 = vrot.slane %v8963_v55, 1  ;;  %v3336_v13 = vsel %vm8009_vm8, %v3328_v50, %v3335_v63  ;;  %v7483_v33 = vld [vmem:[#allocation9 + $0x1f0] sm:$0xff]  }
 0x2c1   : > { %v3557_v45 = vsel %vm7988_vm4, %v3337_v59, %v3556_v34  ;;  %v3030_v37 = vadd.f32 %v8896_v52, %v2994_v51  ;;  %v3972_v11 = vrot.slane %v3970_v43, 1  ;;  %3555 = vst [vmem:[#allocation3 + $0x7c] sm:$0xf] %v3336_v13  ;;  %v3318_v15 = vor.u32 %v3316_v54, %v3315_v47  ;;  %6977 = vmatpush3.bf16.msra.mxu0 %v7482_v12  ;;  %v7484_v34 = vld [vmem:[#allocation9 + $0x1b0] sm:$0xff]   ;;  %v7486_v43 = vld [vmem:[#allocation9 + $0x1b8] sm:$0xff]  }
 0x2c2   : > { %3558 = vst [vmem:[#allocation3 + $0x80] sm:$0x1] %v3557_v45  ;;  %v3320_v1 = vrot.slane %v3315_v47, 4  ;;  %v9106_v39 = vsel %vm1405_vm7, %v3961_v28, %v3965_v5  ;;  %v3977_v27 = vrot.slane %v3975_v17, 1  ;;  %v4155_v18 = vrot.slane %v9061_v14, 1  ;;  %v7485_v14 = vld [vmem:[#allocation9 + $0x1f8] sm:$0xff]   ;;  %6978 = vmatprep.subr.bf16.mxu0 %v7483_v33 }
 0x2c3   : > { %4739 = vmatprep.mubr.bf16.mxu1 %v9106_v39  ;;  %v3062_v50 = vmax.f32 %v3030_v37, 0.0  ;;  %v3973_v2 = vor.u32 %v3972_v11, %v3968_v31  ;;  %v2922_v10 = vadd.f32 %v9010_v38, %v8841_v35  ;;  %v3319_v62 = vsel %vm8009_vm8, %v3311_v57, %v3318_v15  ;;  %v9123_v3 = vld [vmem:[#allocation3 + $0x2c] ss:$0 sps:$4 sm:$0x11]   ;;  %v9139_v5 = vld [vmem:[#allocation9 + $0x200] sm:$0xff]  }
 0x2c4   : > { %v3550_v46 = vsel %vm7988_vm4, %v3320_v1, %v3549_v32  ;;  %4740 = vmatmul.mubr.bf16.gmra.mrb[132].mxu1 %v8963_v55  ;;  %v2933_v54 = vadd.f32 %v9014_v58, %v8855_v29  ;;  %v2925_v31 = vadd.f32 %v9016_v20, %v8847_v6  ;;  %3548 = vst [vmem:[#allocation3 + $0x70] sm:$0xf] %v3319_v62  ;;  %v3980_v20 = vshrl.u32 %v9108_v9, 16  ;;  %v3566_v47 = vld [vmem:[#allocation3 + $0x90] sm:$0xf] }
 0x2c5   : > { %3551 = vst [vmem:[#allocation3 + $0x74] sm:$0x1] %v3550_v46  ;;  %v6147_v35 = vpack.c.bf16 %v3062_v50, %v3062_v50  ;;  %v9126_v38 = vsel %vm1405_vm7, %v3973_v2, %v3977_v27  ;;  %v9129_v57 = vsel %vm1614_vm9, %v4154_v25, %v4155_v18  ;;  %v2992_v55 = vmul.f32 %v8891_v36, %v2922_v10 }
 0x2c6   : > { %4747 = vmatprep.mubr.bf16.mxu1 %v9126_v38  ;;  %4901 = vmatmul.mubr.bf16.gmra.mrb[164].mxu0 %v9129_v57  ;;  %v2995_v6 = vmul.f32 %v8891_v36, %v2933_v54  ;;  %v2993_v29 = vmul.f32 %v8891_v36, %v2925_v31  ;;  %v2946_v58 = vadd.f32 %v9041_v41, %v8873_v49  ;;  %v3982_v51 = vshll.u32 %v9108_v9, 16 }
 0x2c7   : > { %v3356_v12 = vshrl.u32 %v6147_v35, 16  ;;  %v3359_v63 = vshll.u32 %v6147_v35, 16  ;;  %v3028_v59 = vadd.f32 %v8896_v52, %v2992_v55  ;;  %4908 = vmatprep.mubr.bf16.mxu0 %v9108_v9  ;;  %6979 = vmatpush3.bf16.msra.mxu0 %v7484_v34  ;;  %v3987_v41 = vshll.u32 %v9123_v3, 16 }
 0x2c8   : > { %v3031_v32 = vadd.f32 %v8896_v52, %v2995_v6  ;;  %v3029_v28 = vadd.f32 %v8896_v52, %v2993_v29  ;;  %v2998_v49 = vmul.f32 %v8891_v36, %v2946_v58  ;;  %6980 = vmatprep.subr.bf16.mxu0 %v7485_v14  ;;  %7150 = vmatprep.subr.bf16.mxu1 %v9139_v5  ;;  %v3984_v13 = vrot.slane %v3982_v51, 1  ;;  %v3570_v51 = vld [vmem:[#allocation3 + $0x98] sm:$0x1] }
 0x2c9   : > { %v3358_v17 = vrot.slane %v3356_v12, 7  ;;  %v3060_v25 = vmax.f32 %v3028_v59, 0.0  ;;  %v4157_v45 = vrot.slane %v8968_v8, 1  ;;  %v3989_v1 = vrot.slane %v3987_v41, 1  ;;  %v9164_v12 = vld [vmem:[#allocation3 + $0x30] sm:$0xff]  }
 0x2ca   : > { %v3063_v37 = vmax.f32 %v3031_v32, 0.0  ;;  %v3061_v11 = vmax.f32 %v3029_v28, 0.0  ;;  %v3034_v15 = vadd.f32 %v8896_v52, %v2998_v49  ;;  %v3985_v2 = vor.u32 %v3984_v13, %v3980_v20  ;;  %v3563_v41 = vld [vmem:[#allocation3 + $0x8c] sm:$0x1] }
 0x2cb   : > { %v3361_v27 = vor.u32 %v3359_v63, %v3358_v17  ;;  %v3362_v33 = vrot.slane %v3358_v17, 4  ;;  %v6145_v50 = vpack.c.bf16 %v3060_v25, %v3060_v25  ;;  %6981 = vmatpush3.bf16.msra.mxu0 %v7486_v43  ;;  %v4158_v62 = vrot.slane %v9077_v60, 1  ;;  %v3559_v63 = vld [vmem:[#allocation3 + $0x84] sm:$0xf] }
 0x2cc   : > { %v6148_v18 = vpack.c.bf16 %v3063_v37, %v3063_v37  ;;  %v6146_v10 = vpack.c.bf16 %v3061_v11, %v3061_v11  ;;  %4748 = vmatmul.mubr.bf16.gmra.mrb[136].mxu1 %v8968_v8  ;;  %v3066_v34 = vmax.f32 %v3034_v15, 0.0  ;;  %v9156_v14 = vsel %vm1405_vm7, %v3985_v2, %v3989_v1 }
 0x2cd   : > { %v3567_v46 = vsel %vm8018_vm10, %v3361_v27, %v3566_v47  ;;  %v3339_v54 = vshrl.u32 %v6145_v50, 16  ;;  %v3342_v31 = vshll.u32 %v6145_v50, 16  ;;  %4755 = vmatprep.mubr.bf16.mxu1 %v9156_v14  ;;  %v9160_v20 = vsel %vm1614_vm9, %v4157_v45, %v4158_v62  ;;  %v3580_v50 = vld [vmem:[#allocation3 + $0xa8] sm:$0xf] }
 0x2ce   : > { %3568 = vst [vmem:[#allocation3 + $0x90] sm:$0xf] %v3567_v46  ;;  %v3364_v35 = vshrl.u32 %v6148_v18, 16  ;;  %v3367_v55 = vshll.u32 %v6148_v18, 16  ;;  %v3347_v6 = vshrl.u32 %v6146_v10, 16  ;;  %v3350_v29 = vshll.u32 %v6146_v10, 16  ;;  %4909 = vmatmul.mubr.bf16.gmra.mrb[168].mxu0 %v9160_v20 }
 0x2cf   : > { %v3341_v58 = vrot.slane %v3339_v54, 7  ;;  %v6151_v8 = vpack.c.bf16 %v3066_v34, %v3066_v34  ;;  %v2938_v60 = vadd.f32 %v9047_v44, %v8863_v56  ;;  %v2949_v47 = vadd.f32 %v9053_v23, %v8877_v40  ;;  %4916 = vmatprep.mubr.bf16.mxu0 %v9164_v12  ;;  %v9178_v23 = vld [vmem:[#allocation3 + $0x38] ss:$0 sps:$4 sm:$0x11]  }
 0x2d0   : > { %v3366_v59 = vrot.slane %v3364_v35, 7  ;;  %v3349_v43 = vrot.slane %v3347_v6, 7  ;;  %v2941_v32 = vadd.f32 %v9056_v19, %v8867_v48  ;;  %v9193_v10 = vld [vmem:[#allocation10] ss:$0 sm:$0xff]  ;;  %v2962_v62 = vadd.f32 %v9063_v42, %v8889_v0 }
 0x2d1   : > { %v3344_v28 = vor.u32 %v3342_v31, %v3341_v58  ;;  %v3345_v49 = vrot.slane %v3341_v58, 4  ;;  %v3390_v17 = vshrl.u32 %v6151_v8, 16  ;;  %v3393_v25 = vshll.u32 %v6151_v8, 16 }
 0x2d2   : > { %v3369_v56 = vor.u32 %v3367_v55, %v3366_v59  ;;  %v3371_v44 = vrot.slane %v3366_v59, 4  ;;  %v3352_v13 = vor.u32 %v3350_v29, %v3349_v43  ;;  %v3354_v45 = vrot.slane %v3349_v43, 4 }
 0x2d3   : > { %v3560_v37 = vsel %vm8018_vm10, %v3344_v28, %v3559_v63  ;;  %v9174_v11 = vrot.slane %v3390_v17, 7  ;;  %v2996_v40 = vmul.f32 %v8891_v36, %v2938_v60  ;;  %v2999_v48 = vmul.f32 %v8891_v36, %v2949_v47 }
 0x2d4   : > { %3561 = vst [vmem:[#allocation3 + $0x84] sm:$0xf] %v3560_v37  ;;  %v3370_v19 = vsel %vm8009_vm8, %v3362_v33, %v3369_v56  ;;  %v3571_v15 = vsel %vm7988_vm4, %v3371_v44, %v3570_v51  ;;  %v3353_v1 = vsel %vm8009_vm8, %v3345_v49, %v3352_v13  ;;  %v3564_v27 = vsel %vm7988_vm4, %v3354_v45, %v3563_v41  ;;  %v3573_v37 = vld [vmem:[#allocation3 + $0x9c] sm:$0xf] }
 0x2d5   : > { %4756 = vmatmul.mubr.bf16.gmra.mrb[140].mxu1 %v9108_v9  ;;  %3569 = vst [vmem:[#allocation3 + $0x94] sm:$0xf] %v3370_v19  ;;  %3572 = vst [vmem:[#allocation3 + $0x98] sm:$0x1] %v3571_v15  ;;  %v3395_v36 = vor.u32 %v3393_v25, %v9174_v11  ;;  %v3396_v33 = vrot.slane %v9174_v11, 4  ;;  %v3032_v2 = vadd.f32 %v8896_v52, %v2996_v40  ;;  %v3992_v46 = vshrl.u32 %v9164_v12, 16 }
 0x2d6   : > { %3562 = vst [vmem:[#allocation3 + $0x88] sm:$0xf] %v3353_v1  ;;  %3565 = vst [vmem:[#allocation3 + $0x8c] sm:$0x1] %v3564_v27  ;;  %v3035_v18 = vadd.f32 %v8896_v52, %v2999_v48  ;;  %v2997_v34 = vmul.f32 %v9193_v10, %v2941_v32  ;;  %v3994_v54 = vshll.u32 %v9164_v12, 16  ;;  %v3999_v6 = vshll.u32 %v9178_v23, 16 }
 0x2d7   : > { %v3581_v31 = vsel %vm8018_vm10, %v3395_v36, %v3580_v50  ;;  %v3064_v35 = vmax.f32 %v3032_v2, 0.0  ;;  %v9203_v52 = vld [vmem:[#allocation10 + $0x1] ss:$0 sm:$0xff]  ;;  %v3002_v58 = vmul.f32 %v9193_v10, %v2962_v62  ;;  %v4160_v0 = vrot.slane %v9108_v9, 1  ;;  %v3584_v40 = vld [vmem:[#allocation3 + $0xb0] sm:$0x1] }
 0x2d8   : > { %v3067_v55 = vmax.f32 %v3035_v18, 0.0  ;;  %3582 = vst [vmem:[#allocation3 + $0xa8] sm:$0xf] %v3581_v31  ;;  %v3033_v29 = vadd.f32 %v9203_v52, %v2997_v34  ;;  %v3996_v8 = vrot.slane %v3994_v54, 1  ;;  %v4001_v63 = vrot.slane %v3999_v6, 1 }
 0x2d9   : > { %v6149_v42 = vpack.c.bf16 %v3064_v35, %v3064_v35  ;;  %v4161_v59 = vrot.slane %v9123_v3, 1  ;;  %v3038_v43 = vadd.f32 %v9203_v52, %v3002_v58  ;;  %v2954_v32 = vadd.f32 %v9071_v22, %v8883_v53  ;;  %v9218_v3 = vld [vmem:[#allocation3 + $0x3c] sm:$0xff]  }
 0x2da   : > { %v6152_v60 = vpack.c.bf16 %v3067_v55, %v3067_v55  ;;  %v3065_v51 = vmax.f32 %v3033_v29, 0.0  ;;  %v3997_v47 = vor.u32 %v3996_v8, %v3992_v46  ;;  %v2965_v22 = vadd.f32 %v9079_v21, %v8893_v16  ;;  %v9239_v29 = vld [vmem:[#allocation3 + $0x44] ss:$0 sps:$4 sm:$0x11]   ;;  %v3594_v58 = vld [vmem:[#allocation3 + $0xc0] sm:$0xf] }
 0x2db   : > { %v3373_v28 = vshrl.u32 %v6149_v42, 16  ;;  %v3376_v49 = vshll.u32 %v6149_v42, 16  ;;  %v3070_v56 = vmax.f32 %v3038_v43, 0.0  ;;  %v9216_v13 = vsel %vm1614_vm9, %v4160_v0, %v4161_v59 }
 0x2dc   : > { %v3398_v41 = vshrl.u32 %v6152_v60, 16  ;;  %v3401_v17 = vshll.u32 %v6152_v60, 16  ;;  %v6150_v25 = vpack.c.bf16 %v3065_v51, %v3065_v51  ;;  %v9213_v44 = vsel %vm1405_vm7, %v3997_v47, %v4001_v63  ;;  %4917 = vmatmul.mubr.bf16.gmra.mrb[172].mxu0 %v9216_v13 }
 0x2dd   : > { %v3375_v45 = vrot.slane %v3373_v28, 7  ;;  %4763 = vmatprep.mubr.bf16.mxu1 %v9213_v44  ;;  %v3000_v53 = vmul.f32 %v9193_v10, %v2954_v32  ;;  %v6155_v15 = vpack.c.bf16 %v3070_v56, %v3070_v56  ;;  %4924 = vmatprep.mubr.bf16.mxu0 %v9218_v3  ;;  %v2957_v1 = vadd.f32 %v9083_v30, %v8885_v7  ;;  %v3577_v30 = vld [vmem:[#allocation3 + $0xa4] sm:$0x1] }
 0x2de   : > { %v3400_v11 = vrot.slane %v3398_v41, 7  ;;  %v3381_v48 = vshrl.u32 %v6150_v25, 16  ;;  %v3384_v19 = vshll.u32 %v6150_v25, 16  ;;  %4764 = vmatmul.mubr.bf16.gmra.mrb[144].mxu1 %v9164_v12  ;;  %v3003_v54 = vmul.f32 %v9193_v10, %v2965_v22  ;;  %v9258_v25 = vld [vmem:[#allocation3 + $0x50] ss:$0 sps:$4 sm:$0x11]  }
 0x2df   : > { %v3378_v27 = vor.u32 %v3376_v49, %v3375_v45  ;;  %v3379_v50 = vrot.slane %v3375_v45, 4  ;;  %v3424_v34 = vshrl.u32 %v6155_v15, 16  ;;  %v3427_v62 = vshll.u32 %v6155_v15, 16 }
 0x2e0   : > { %v3403_v36 = vor.u32 %v3401_v17, %v3400_v11  ;;  %v3405_v2 = vrot.slane %v3400_v11, 4  ;;  %v3383_v18 = vrot.slane %v3381_v48, 7  ;;  %v3036_v46 = vadd.f32 %v9203_v52, %v3000_v53 }
 0x2e1   : > { %v3574_v16 = vsel %vm8018_vm10, %v3378_v27, %v3573_v37  ;;  %v9237_v55 = vrot.slane %v3424_v34, 7  ;;  %v3039_v8 = vadd.f32 %v9203_v52, %v3003_v54  ;;  %v4006_v0 = vshll.u32 %v9218_v3, 16  ;;  %v3598_v27 = vld [vmem:[#allocation3 + $0xc8] sm:$0x1]  ;;  %v9273_v34 = vld [vmem:[#allocation3 + $0x54] sm:$0xff]  }
 0x2e2   : > { %v3404_v21 = vsel %vm8009_vm8, %v3396_v33, %v3403_v36  ;;  %v3585_v7 = vsel %vm7988_vm4, %v3405_v2, %v3584_v40  ;;  %3575 = vst [vmem:[#allocation3 + $0x9c] sm:$0xf] %v3574_v16  ;;  %v3386_v31 = vor.u32 %v3384_v19, %v3383_v18  ;;  %v3388_v35 = vrot.slane %v3383_v18, 4  ;;  %v3587_v40 = vld [vmem:[#allocation3 + $0xb4] sm:$0xf] }
 0x2e3   : > { %3583 = vst [vmem:[#allocation3 + $0xac] sm:$0xf] %v3404_v21  ;;  %3586 = vst [vmem:[#allocation3 + $0xb0] sm:$0x1] %v3585_v7  ;;  %v3068_v6 = vmax.f32 %v3036_v46, 0.0  ;;  %v3001_v33 = vmul.f32 %v9193_v10, %v2957_v1  ;;  %v3429_v63 = vor.u32 %v3427_v62, %v9237_v55  ;;  %v4004_v59 = vshrl.u32 %v9218_v3, 16 }
 0x2e4   : > { %v3387_v42 = vsel %vm8009_vm8, %v3379_v50, %v3386_v31  ;;  %v3578_v60 = vsel %vm7988_vm4, %v3388_v35, %v3577_v30  ;;  %v3071_v43 = vmax.f32 %v3039_v8, 0.0  ;;  %v4008_v32 = vrot.slane %v4006_v0, 1  ;;  %v9251_v10 = vld [vmem:[#allocation3 + $0x48] sm:$0xff]   ;;  %v9275_v62 = vld [vmem:[#allocation3 + $0x5c] ss:$0 sps:$4 sm:$0x11]  }
 0x2e5   : > { %3576 = vst [vmem:[#allocation3 + $0xa0] sm:$0xf] %v3387_v42  ;;  %3579 = vst [vmem:[#allocation3 + $0xa4] sm:$0x1] %v3578_v60  ;;  %v6153_v51 = vpack.c.bf16 %v3068_v6, %v3068_v6  ;;  %v3037_v47 = vadd.f32 %v9203_v52, %v3001_v33  ;;  %v3595_v28 = vsel %vm8018_vm10, %v3429_v63, %v3594_v58  ;;  %v4011_v49 = vshll.u32 %v9239_v29, 16 }
 0x2e6   : > { %v4163_v41 = vrot.slane %v9164_v12, 1  ;;  %v4164_v17 = vrot.slane %v9178_v23, 1  ;;  %v3430_v56 = vrot.slane %v9237_v55, 4  ;;  %3596 = vst [vmem:[#allocation3 + $0xc0] sm:$0xf] %v3595_v28  ;;  %v6156_v37 = vpack.c.bf16 %v3071_v43, %v3071_v43 }
 0x2e7   : > { %v3407_v45 = vshrl.u32 %v6153_v51, 16  ;;  %v3069_v52 = vmax.f32 %v3037_v47, 0.0  ;;  %v3410_v11 = vshll.u32 %v6153_v51, 16  ;;  %v4009_v53 = vor.u32 %v4008_v32, %v4004_v59  ;;  %v3591_v33 = vld [vmem:[#allocation3 + $0xbc] sm:$0x1]  ;;  %v9286_v59 = vld [vmem:[#allocation3 + $0x60] sm:$0xff]  }
 0x2e8   : > { %v4013_v22 = vrot.slane %v4011_v49, 1  ;;  %v9262_v48 = vsel %vm1614_vm9, %v4163_v41, %v4164_v17  ;;  %v3432_v15 = vshrl.u32 %v6156_v37, 16  ;;  %v4016_v23 = vshrl.u32 %v9251_v10, 16 }
 0x2e9   : > { %v3409_v19 = vrot.slane %v3407_v45, 7  ;;  %v6154_v1 = vpack.c.bf16 %v3069_v52, %v3069_v52  ;;  %4925 = vmatmul.mubr.bf16.gmra.mrb[176].mxu0 %v9262_v48  ;;  %v4018_v36 = vshll.u32 %v9251_v10, 16  ;;  %v4023_v2 = vshll.u32 %v9258_v25, 16 }
 0x2ea   : > { %v9267_v50 = vsel %vm1405_vm7, %v4009_v53, %v4013_v22  ;;  %4932 = vmatprep.mubr.bf16.mxu0 %v9251_v10  ;;  %v4166_v18 = vrot.slane %v9218_v3, 1  ;;  %v3434_v16 = vrot.slane %v3432_v15, 7  ;;  %v3435_v21 = vshll.u32 %v6156_v37, 16  ;;  %v7447_v37 = vld [vmem:[#allocation3 + $0x68] ss:$0 sps:$4 sm:$0x11]  }
 0x2eb   : > { %v3412_v46 = vor.u32 %v3410_v11, %v3409_v19  ;;  %v3415_v7 = vshrl.u32 %v6154_v1, 16  ;;  %4771 = vmatprep.mubr.bf16.mxu1 %v9267_v50  ;;  %v3413_v30 = vrot.slane %v3409_v19, 4  ;;  %v3418_v54 = vshll.u32 %v6154_v1, 16  ;;  %v9311_v22 = vld [vmem:[#allocation3 + $0x6c] sm:$0xff]  }
 0x2ec   : > { %4772 = vmatmul.mubr.bf16.gmra.mrb[148].mxu1 %v9218_v3  ;;  %v4020_v31 = vrot.slane %v4018_v36, 1  ;;  %v4167_v35 = vrot.slane %v9239_v29, 1  ;;  %v3437_v6 = vor.u32 %v3435_v21, %v3434_v16  ;;  %v3439_v58 = vrot.slane %v3434_v16, 4  ;;  %v9327_v21 = vld [vmem:[#allocation3 + $0x78] sm:$0xff]  }
 0x2ed   : > { %v3588_v55 = vsel %vm8018_vm10, %v3412_v46, %v3587_v40  ;;  %v3417_v8 = vrot.slane %v3415_v7, 7  ;;  %v4025_v42 = vrot.slane %v4023_v2, 1  ;;  %v4030_v63 = vshll.u32 %v9273_v34, 16 }
 0x2ee   : > { %3589 = vst [vmem:[#allocation3 + $0xb4] sm:$0xf] %v3588_v55  ;;  %v4021_v0 = vor.u32 %v4020_v31, %v4016_v23  ;;  %v9283_v60 = vsel %vm1614_vm9, %v4166_v18, %v4167_v35  ;;  %v3438_v29 = vsel %vm8009_vm8, %v3430_v56, %v3437_v6  ;;  %v3599_v4 = vsel %vm7988_vm4, %v3439_v58, %v3598_v27 }
 0x2ef   : > { %v3420_v51 = vor.u32 %v3418_v54, %v3417_v8  ;;  %v3422_v43 = vrot.slane %v3417_v8, 4  ;;  %3597 = vst [vmem:[#allocation3 + $0xc4] sm:$0xf] %v3438_v29  ;;  %3600 = vst [vmem:[#allocation3 + $0xc8] sm:$0x1] %v3599_v4  ;;  %v4028_v32 = vshrl.u32 %v9273_v34, 16 }
 0x2f0   : > { %v9293_v47 = vsel %vm1405_vm7, %v4021_v0, %v4025_v42  ;;  %v4032_v28 = vrot.slane %v4030_v63, 1  ;;  %v4035_v49 = vshll.u32 %v9275_v62, 16  ;;  %v4042_v52 = vshll.u32 %v9286_v59, 16  ;;  %v9342_v0 = vld [vmem:[#allocation3 + $0x84] sm:$0xff]  }
 0x2f1   : > { %v3421_v41 = vsel %vm8009_vm8, %v3413_v30, %v3420_v51  ;;  %v3592_v17 = vsel %vm7988_vm4, %v3422_v43, %v3591_v33  ;;  %4779 = vmatprep.mubr.bf16.mxu1 %v9293_v47  ;;  %4933 = vmatmul.mubr.bf16.gmra.mrb[180].mxu0 %v9283_v60  ;;  %v4169_v11 = vrot.slane %v9251_v10, 1  ;;  %v4170_v40 = vrot.slane %v9258_v25, 1  ;;  %v7452_v25 = vld [vmem:[#allocation3 + $0x74] ss:$0 sps:$4 sm:$0x11]  }
 0x2f2   : > { %3590 = vst [vmem:[#allocation3 + $0xb8] sm:$0xf] %v3421_v41  ;;  %3593 = vst [vmem:[#allocation3 + $0xbc] sm:$0x1] %v3592_v17  ;;  %4940 = vmatprep.mubr.bf16.mxu0 %v9273_v34  ;;  %v4033_v56 = vor.u32 %v4032_v28, %v4028_v32  ;;  %v4037_v45 = vrot.slane %v4035_v49, 1  ;;  %v4044_v53 = vrot.slane %v4042_v52, 1 }
 0x2f3   : > { %v4040_v19 = vshrl.u32 %v9286_v59, 16  ;;  %v4047_v15 = vshll.u32 %v7447_v37, 16  ;;  %v9316_v1 = vsel %vm1614_vm9, %v4169_v11, %v4170_v40  ;;  %v4054_v27 = vshll.u32 %v9311_v22, 16  ;;  %v7460_v32 = vld [vmem:[#allocation3 + $0x8c] ss:$0 sps:$4 sm:$0x11]  }
 0x2f4   : > { %4780 = vmatmul.mubr.bf16.gmra.mrb[152].mxu1 %v9251_v10  ;;  %v9307_v61 = vsel %vm1405_vm7, %v4033_v56, %v4037_v45  ;;  %v4172_v18 = vrot.slane %v9273_v34, 1  ;;  %v4173_v46 = vrot.slane %v9275_v62, 1  ;;  %v4052_v7 = vshrl.u32 %v9311_v22, 16  ;;  %v7455_v62 = vld [vmem:[#allocation3 + $0x80] ss:$0 sps:$4 sm:$0x11]  }
 0x2f5   : > { %4787 = vmatprep.mubr.bf16.mxu1 %v9307_v61  ;;  %v4045_v23 = vor.u32 %v4044_v53, %v4040_v19  ;;  %v4049_v36 = vrot.slane %v4047_v15, 1  ;;  %v4056_v16 = vrot.slane %v4054_v27, 1  ;;  %v4059_v30 = vshll.u32 %v7452_v25, 16  ;;  %v9357_v56 = vld [vmem:[#allocation3 + $0x90] sm:$0xff]  }
 0x2f6   : > { %v9332_v54 = vsel %vm1614_vm9, %v4172_v18, %v4173_v46  ;;  %v4066_v35 = vshll.u32 %v9327_v21, 16  ;;  %v4175_v58 = vrot.slane %v9286_v59, 1  ;;  %v4176_v8 = vrot.slane %v7447_v37, 1  ;;  %v7463_v19 = vld [vmem:[#allocation3 + $0x98] ss:$0 sps:$4 sm:$0x11]  }
 0x2f7   : > { %v9323_v2 = vsel %vm1405_vm7, %v4045_v23, %v4049_v36  ;;  %v4057_v31 = vor.u32 %v4056_v16, %v4052_v7  ;;  %v4061_v55 = vrot.slane %v4059_v30, 1  ;;  %v4064_v42 = vshrl.u32 %v9327_v21, 16 }
 0x2f8   : > { %v4068_v33 = vrot.slane %v4066_v35, 1  ;;  %v4071_v63 = vshll.u32 %v7455_v62, 16  ;;  %v9347_v29 = vsel %vm1614_vm9, %v4175_v58, %v4176_v8  ;;  %v4078_v51 = vshll.u32 %v9342_v0, 16 }
 0x2f9   : > { %4941 = vmatmul.mubr.bf16.gmra.mrb[184].mxu0 %v9316_v1  ;;  %v9339_v6 = vsel %vm1405_vm7, %v4057_v31, %v4061_v55  ;;  %v4178_v49 = vrot.slane %v9311_v22, 1  ;;  %v4179_v41 = vrot.slane %v7452_v25, 1  ;;  %v4076_v45 = vshrl.u32 %v9342_v0, 16  ;;  %v9372_v25 = vld [vmem:[#allocation3 + $0x9c] sm:$0xff]  }
 0x2fa   : > { %4948 = vmatprep.mubr.bf16.mxu0 %v9286_v59  ;;  %v4069_v4 = vor.u32 %v4068_v33, %v4064_v42  ;;  %v4073_v43 = vrot.slane %v4071_v63, 1  ;;  %v4080_v17 = vrot.slane %v4078_v51, 1  ;;  %v4083_v37 = vshll.u32 %v7460_v32, 16 }
 0x2fb   : > { %v9362_v52 = vsel %vm1614_vm9, %v4178_v49, %v4179_v41  ;;  %v4090_v40 = vshll.u32 %v9357_v56, 16  ;;  %v4181_v23 = vrot.slane %v9327_v21, 1  ;;  %v4182_v27 = vrot.slane %v7455_v62, 1  ;;  %v7468_v62 = vld [vmem:[#allocation3 + $0xa4] ss:$0 sps:$4 sm:$0x11]  }
 0x2fc   : > { %4788 = vmatmul.mubr.bf16.gmra.mrb[156].mxu1 %v9273_v34  ;;  %v9354_v28 = vsel %vm1405_vm7, %v4069_v4, %v4073_v43  ;;  %v4081_v11 = vor.u32 %v4080_v17, %v4076_v45  ;;  %v4085_v53 = vrot.slane %v4083_v37, 1  ;;  %v4088_v46 = vshrl.u32 %v9357_v56, 16  ;;  %v9389_v43 = vld [vmem:[#allocation3 + $0xa8] sm:$0xff]  }
 0x2fd   : > { %4795 = vmatprep.mubr.bf16.mxu1 %v9323_v2  ;;  %v4092_v36 = vrot.slane %v4090_v40, 1  ;;  %v6646_v18 = vpop.f32.mrb[128].mxu1  ;;  %v4095_v16 = vshll.u32 %v7463_v19, 16  ;;  %v9377_v7 = vsel %vm1614_vm9, %v4181_v23, %v4182_v27  ;;  %v4102_v31 = vshll.u32 %v9372_v25, 16 }
 0x2fe   : > { %v9369_v15 = vsel %vm1405_vm7, %v4081_v11, %v4085_v53  ;;  %v6647_v35 = vpop.f32.mrb[129].mxu1  ;;  %v4184_v33 = vrot.slane %v9342_v0, 1  ;;  %v4185_v4 = vrot.slane %v7460_v32, 1  ;;  %v4100_v41 = vshrl.u32 %v9372_v25, 16 }
 0x2ff   : > { %v4093_v30 = vor.u32 %v4092_v36, %v4088_v46  ;;  %v4097_v55 = vrot.slane %v4095_v16, 1  ;;  %v9382_v58 = vadd.f32 %v6647_v35, %v6646_v18  ;;  %v6649_v8 = vpop.f32.mrb[130].mxu1  ;;  %v4104_v51 = vrot.slane %v4102_v31, 1  ;;  %v7471_v40 = vld [vmem:[#allocation3 + $0xb0] ss:$0 sps:$4 sm:$0x11]  }
 0x300   : > { %v6650_v42 = vpop.f32.mrb[131].mxu1  ;;  %v4107_v17 = vshll.u32 %v7468_v62, 16  ;;  %v9396_v45 = vsel %vm1614_vm9, %v4184_v33, %v4185_v4  ;;  %v4114_v11 = vshll.u32 %v9389_v43, 16  ;;  %v4187_v23 = vrot.slane %v9357_v56, 1  ;;  %v9406_v18 = vld [vmem:[#allocation3 + $0xb4] sm:$0xff]  }
 0x301   : > { %4949 = vmatmul.mubr.bf16.gmra.mrb[188].mxu0 %v9332_v54  ;;  %v9387_v63 = vsel %vm1405_vm7, %v4093_v30, %v4097_v55  ;;  %v9391_v49 = vadd.f32 %v6650_v42, %v6649_v8  ;;  %v4105_v37 = vor.u32 %v4104_v51, %v4100_v41  ;;  %v4188_v27 = vrot.slane %v7463_v19, 1  ;;  %v7476_v19 = vld [vmem:[#allocation3 + $0xbc] ss:$0 sps:$4 sm:$0x11]  }
 0x302   : > { %4956 = vmatprep.mubr.bf16.mxu0 %v9311_v22  ;;  %v4109_v32 = vrot.slane %v4107_v17, 1  ;;  %v4116_v36 = vrot.slane %v4114_v11, 1  ;;  %v4112_v46 = vshrl.u32 %v9389_v43, 16  ;;  %v4119_v16 = vshll.u32 %v7471_v40, 16 }
 0x303   : > { %v9411_v30 = vsel %vm1614_vm9, %v4187_v23, %v4188_v27  ;;  %v4126_v35 = vshll.u32 %v9406_v18, 16  ;;  %v4190_v33 = vrot.slane %v9372_v25, 1  ;;  %v4191_v42 = vrot.slane %v7468_v62, 1 }
 0x304   : > { %4796 = vmatmul.mubr.bf16.gmra.mrb[160].mxu1 %v9286_v59  ;;  %v9403_v53 = vsel %vm1405_vm7, %v4105_v37, %v4109_v32  ;;  %v4117_v31 = vor.u32 %v4116_v36, %v4112_v46  ;;  %v4121_v55 = vrot.slane %v4119_v16, 1  ;;  %v4124_v51 = vshrl.u32 %v9406_v18, 16  ;;  %v9437_v36 = vld [vmem:[#allocation3 + $0xc0] sm:$0xff]  }
 0x305   : > { %4803 = vmatprep.mubr.bf16.mxu1 %v9339_v6  ;;  %v4128_v4 = vrot.slane %v4126_v35, 1  ;;  %v4131_v41 = vshll.u32 %v7476_v19, 16  ;;  %v9424_v17 = vsel %vm1614_vm9, %v4190_v33, %v4191_v42  ;;  %v4193_v62 = vrot.slane %v9389_v43, 1  ;;  %v441_v35 = vld [vmem:[#allocation3 + $0xcc] sm:$0x1] }
 0x306   : > { %v9418_v8 = vsel %vm1405_vm7, %v4117_v31, %v4121_v55  ;;  %v4194_v23 = vrot.slane %v7471_v40, 1  ;;  %v4196_v46 = vrot.slane %v9406_v18, 1  ;;  %v4197_v16 = vrot.slane %v7476_v19, 1  ;;  %v7488_v31 = vld [vmem:[#allocation9 + $0x208] sm:$0xff]   ;;  %v495_v55 = vld [vmem:[#allocation3 + $0xd4] sm:$0x1] }
 0x307   : > { %v4129_v37 = vor.u32 %v4128_v4, %v4124_v51  ;;  %v4133_v11 = vrot.slane %v4131_v41, 1  ;;  %v442_v33 = vsel %vm7988_vm4, 0, %v441_v35  ;;  %v496_v42 = vsel %vm7983_vm3, 0, %v495_v55  ;;  %v7509_v19 = vld [vmem:[#allocation3 + $0x18] sm:$0xff]  }
 0x308   : > { %v9435_v27 = vsel %vm1614_vm9, %v4193_v62, %v4194_v23  ;;  %v9445_v40 = vsel %vm1614_vm9, %v4196_v46, %v4197_v16  ;;  %443 = vst [vmem:[#allocation3 + $0xcc] sm:$0x1] %v442_v33  ;;  %497 = vst [vmem:[#allocation3 + $0xd4] sm:$0x1] %v496_v42  ;;  %v4227_v35 = vshll.u32 %v9437_v36, 16 }
 0x309   : > { %4957 = vmatmul.mubr.bf16.gmra.mrb[192].mxu0 %v9347_v29  ;;  %v9430_v32 = vsel %vm1405_vm7, %v4129_v37, %v4133_v11  ;;  %v7494_v42 = vld [vmem:[#allocation3 + $0xc8] ss:$0 sps:$4 sm:$0x11]  }
 0x30a   : > { %4964 = vmatprep.mubr.bf16.mxu0 %v9327_v21 }
 0x30c   : > { %4804 = vmatmul.mubr.bf16.gmra.mrb[164].mxu1 %v9311_v22 }
 0x30d   : > { %4811 = vmatprep.mubr.bf16.mxu1 %v9354_v28 }
 0x311   : > { %4965 = vmatmul.mubr.bf16.gmra.mrb[196].mxu0 %v9362_v52 }
 0x312   : > { %4972 = vmatprep.mubr.bf16.mxu0 %v9342_v0 }
 0x314   : > { %4812 = vmatmul.mubr.bf16.gmra.mrb[168].mxu1 %v9327_v21 }
 0x315   : > { %4819 = vmatprep.mubr.bf16.mxu1 %v9369_v15 }
 0x319   : > { %4973 = vmatmul.mubr.bf16.gmra.mrb[200].mxu0 %v9377_v7 }
 0x31a   : > { %4980 = vmatprep.mubr.bf16.mxu0 %v9357_v56 }
 0x31c   : > { %4820 = vmatmul.mubr.bf16.gmra.mrb[172].mxu1 %v9342_v0 }
 0x31d   : > { %4827 = vmatprep.mubr.bf16.mxu1 %v9387_v63 }
 0x321   : > { %4981 = vmatmul.mubr.bf16.gmra.mrb[204].mxu0 %v9396_v45 }
 0x322   : > { %4988 = vmatprep.mubr.bf16.mxu0 %v9372_v25 }
 0x324   : > { %4828 = vmatmul.mubr.bf16.gmra.mrb[176].mxu1 %v9357_v56 }
 0x325   : > { %4835 = vmatprep.mubr.bf16.mxu1 %v9403_v53 }
 0x329   : > { %4989 = vmatmul.mubr.bf16.gmra.mrb[208].mxu0 %v9411_v30 }
 0x32a   : > { %4996 = vmatprep.mubr.bf16.mxu0 %v9389_v43 }
 0x32c   : > { %4836 = vmatmul.mubr.bf16.gmra.mrb[180].mxu1 %v9372_v25 }
 0x32d   : > { %4843 = vmatprep.mubr.bf16.mxu1 %v9418_v8 }
 0x331   : > { %4997 = vmatmul.mubr.bf16.gmra.mrb[212].mxu0 %v9424_v17 }
 0x332   : > { %5004 = vmatprep.mubr.bf16.mxu0 %v9406_v18 }
 0x334   : > { %4844 = vmatmul.mubr.bf16.gmra.mrb[184].mxu1 %v9389_v43 }
 0x335   : > { %4851 = vmatprep.mubr.bf16.mxu1 %v9430_v32 }
 0x339   : > { %5005 = vmatmul.mubr.bf16.gmra.mrb[216].mxu0 %v9435_v27 }
 0x33a   : > { %5012 = vmatprep.mubr.bf16.mxu0 %v9437_v36 }
 0x33c   : > { %4852 = vmatmul.mubr.bf16.gmra.mrb[188].mxu1 %v9406_v18 }
 0x33d   : > { %5053 = vmatprep.mubr.bf16.mxu1 %v9129_v57  ;;  %v7489_v57 = vld [vmem:[#allocation9 + $0x210] sm:$0xff]  }
 0x341   : > { %5013 = vmatmul.mubr.bf16.gmra.mrb[220].mxu0 %v9445_v40 }
 0x342   : > { %5214 = vmatprep.mubr.bf16.mxu0 %v9126_v38 }
 0x344   : > { %5054 = vmatmul.mubr.bf16.vlgmr.msra.gmra.mrb[192].mxu1 %v9106_v39  ;;  %v7492_v39 = vld [vmem:[#allocation9 + $0x228] sm:$0xff]  }
 0x345   : > { %5061 = vmatprep.mubr.bf16.mxu1 %v9160_v20  ;;  %7151 = vmatpush3.bf16.msra.mxu1 %v9139_v5  ;;  %v7493_v5 = vld [vmem:[#allocation9 + $0x230] sm:$0xff]  }
 0x346   : > { %7152 = vmatprep.subr.bf16.mxu1 %v7488_v31 }
 0x349   : > { %5215 = vmatmul.mubr.bf16.vlgmr.msra.gmra.mrb[224].mxu0 %v7509_v19  ;;  %7153 = vmatpush3.bf16.msra.mxu1 %v7488_v31  ;;  %v9516_v19 = vld [vmem:[#allocation3 + $0xcc] sm:$0xff]  }
 0x34a   : > { %5222 = vmatprep.mubr.bf16.mxu0 %v9156_v14  ;;  %7154 = vmatprep.subr.bf16.mxu1 %v7489_v57 }
 0x34c   : > { %5062 = vmatmul.mubr.bf16.gmra.mrb[196].mxu1 %v9126_v38  ;;  %v7495_v38 = vld [vmem:[#allocation9 + $0x238] sm:$0xff]  }
 0x34d   : > { %5069 = vmatprep.mubr.bf16.mxu1 %v9216_v13  ;;  %7155 = vmatpush3.bf16.msra.mxu1 %v7489_v57 }
 0x34e   : > { %7156 = vmatprep.subr.bf16.mxu1 %v7490_v26 }
 0x351   : > { %5223 = vmatmul.mubr.bf16.gmra.mrb[228].mxu0 %v9108_v9  ;;  %7157 = vmatpush3.bf16.msra.mxu1 %v7490_v26 }
 0x352   : > { %5230 = vmatprep.mubr.bf16.mxu0 %v9213_v44  ;;  %7158 = vmatprep.subr.bf16.mxu1 %v7491_v24 }
 0x354   : > { %5070 = vmatmul.mubr.bf16.gmra.mrb[200].mxu1 %v9156_v14 }
 0x355   : > { %5077 = vmatprep.mubr.bf16.mxu1 %v9262_v48  ;;  %7159 = vmatpush3.bf16.msra.mxu1 %v7491_v24 }
 0x356   : > { %7160 = vmatprep.subr.bf16.mxu1 %v7492_v39 }
 0x359   : > { %5231 = vmatmul.mubr.bf16.gmra.mrb[232].mxu0 %v9164_v12  ;;  %7161 = vmatpush3.bf16.msra.mxu1 %v7492_v39 }
 0x35a   : > { %5238 = vmatprep.mubr.bf16.mxu0 %v9267_v50  ;;  %7162 = vmatprep.subr.bf16.mxu1 %v7493_v5 }
 0x35c   : > { %5078 = vmatmul.mubr.bf16.gmra.mrb[204].mxu1 %v9213_v44 }
 0x35d   : > { %5085 = vmatprep.mubr.bf16.mxu1 %v9283_v60  ;;  %7163 = vmatpush3.bf16.msra.mxu1 %v7493_v5 }
 0x35e   : > { %7164 = vmatprep.subr.bf16.mxu1 %v7495_v38 }
 0x361   : > { %5239 = vmatmul.mubr.bf16.gmra.mrb[236].mxu0 %v9218_v3  ;;  %7165 = vmatpush3.bf16.msra.mxu1 %v7495_v38 }
 0x362   : > { %5246 = vmatprep.mubr.bf16.mxu0 %v9293_v47 }
 0x364   : > { %5086 = vmatmul.mubr.bf16.gmra.mrb[208].mxu1 %v9267_v50 }
 0x365   : > { %5093 = vmatprep.mubr.bf16.mxu1 %v9316_v1 }
 0x369   : > { %5247 = vmatmul.mubr.bf16.gmra.mrb[240].mxu0 %v9251_v10 }
 0x36a   : > { %5254 = vmatprep.mubr.bf16.mxu0 %v9307_v61 }
 0x36c   : > { %5094 = vmatmul.mubr.bf16.gmra.mrb[212].mxu1 %v9293_v47 }
 0x36d   : > { %5101 = vmatprep.mubr.bf16.mxu1 %v9332_v54 }
 0x370   : > { %v6758_v9 = vpop.f32.mrb[160].mxu0 }
 0x371   : > { %5255 = vmatmul.mubr.bf16.gmra.mrb[244].mxu0 %v9273_v34  ;;  %v6759_v14 = vpop.f32.mrb[161].mxu0 }
 0x372   : > { %5262 = vmatprep.mubr.bf16.mxu0 %v9323_v2  ;;  %v6760_v12 = vadd.f32 %v6759_v14, %v6758_v9  ;;  %v6761_v44 = vpop.f32.mrb[162].mxu0  ;;  %v4225_v9 = vshrl.u32 %v9437_v36, 16  ;;  %v4232_v14 = vshll.u32 %v7494_v42, 16 }
 0x373   : > { %v6762_v3 = vpop.f32.mrb[163].mxu0 }
 0x374   : > { %5102 = vmatmul.mubr.bf16.gmra.mrb[216].mxu1 %v9307_v61  ;;  %v9480_v10 = vadd.f32 %v6760_v12, %v9382_v58  ;;  %v6763_v50 = vadd.f32 %v6762_v3, %v6761_v44  ;;  %v9523_v44 = vld [vmem:[#allocation3 + $0xd4] ss:$0 sps:$4 sm:$0x11]   ;;  %v4253_v3 = vshll.u32 %v9516_v19, 16 }
 0x375   : > { %5109 = vmatprep.mubr.bf16.mxu1 %v9347_v29 }
 0x376   : > { %v9483_v47 = vadd.f32 %v6763_v50, %v9391_v49  ;;  %v4234_v50 = vrot.slane %v4232_v14, 1 }
 0x379   : > { %5263 = vmatmul.mubr.bf16.gmra.mrb[248].mxu0 %v9286_v59 }
 0x37a   : > { %5270 = vmatprep.mubr.bf16.mxu0 %v9339_v6 }
 0x37c   : > { %5110 = vmatmul.mubr.bf16.gmra.mrb[220].mxu1 %v9323_v2 }
 0x37d   : > { %5117 = vmatprep.mubr.bf16.mxu1 %v9362_v52 }
 0x381   : > { %5271 = vmatmul.mubr.bf16.gmra.mrb[252].mxu0 %v9311_v22 }
 0x382   : > { %5278 = vmatprep.mubr.bf16.mxu0 %v9354_v28 }
 0x384   : > { %5118 = vmatmul.mubr.bf16.gmra.mrb[224].mxu1 %v9339_v6 }
 0x385   : > { %5125 = vmatprep.mubr.bf16.mxu1 %v9377_v7 }
 0x389   : > { %5279 = vmatmul.mubr.bf16.gmra.mrb[0].mxu0 %v9327_v21 }
 0x38a   : > { %5286 = vmatprep.mubr.bf16.mxu0 %v9369_v15 }
 0x38c   : > { %5126 = vmatmul.mubr.bf16.gmra.mrb[228].mxu1 %v9354_v28 }
 0x38d   : > { %5133 = vmatprep.mubr.bf16.mxu1 %v9396_v45 }
 0x391   : > { %5287 = vmatmul.mubr.bf16.gmra.mrb[4].mxu0 %v9342_v0 }
 0x392   : > { %5294 = vmatprep.mubr.bf16.mxu0 %v9387_v63 }
 0x394   : > { %5134 = vmatmul.mubr.bf16.gmra.mrb[232].mxu1 %v9369_v15 }
 0x395   : > { %5141 = vmatprep.mubr.bf16.mxu1 %v9411_v30 }
 0x397   : > { %v6652_v34 = vpop.f32.mrb[132].mxu1 }
 0x398   : > { %v6653_v59 = vpop.f32.mrb[133].mxu1 }
 0x399   : > { %5295 = vmatmul.mubr.bf16.gmra.mrb[8].mxu0 %v9357_v56  ;;  %v6654_v61 = vadd.f32 %v6653_v59, %v6652_v34  ;;  %v6764_v22 = vpop.f32.mrb[164].mxu0  ;;  %v6655_v2 = vpop.f32.mrb[134].mxu1  ;;  %v4251_v34 = vshrl.u32 %v9516_v19, 16  ;;  %v4255_v59 = vrot.slane %v4253_v3, 1 }
 0x39a   : > { %5302 = vmatprep.mubr.bf16.mxu0 %v9403_v53  ;;  %v6765_v21 = vpop.f32.mrb[165].mxu0  ;;  %v6656_v6 = vpop.f32.mrb[135].mxu1 }
 0x39b   : > { %v6766_v28 = vadd.f32 %v6765_v21, %v6764_v22  ;;  %v6657_v58 = vadd.f32 %v6656_v6, %v6655_v2  ;;  %v6767_v0 = vpop.f32.mrb[166].mxu0  ;;  %v4237_v2 = vrot.slane %v9437_v36, 1  ;;  %v4238_v21 = vrot.slane %v7494_v42, 1 }
 0x39c   : > { %5142 = vmatmul.mubr.bf16.gmra.mrb[236].mxu1 %v9387_v63  ;;  %v6768_v49 = vpop.f32.mrb[167].mxu0 }
 0x39d   : > { %5149 = vmatprep.mubr.bf16.mxu1 %v9424_v17  ;;  %v9505_v15 = vadd.f32 %v6766_v28, %v6654_v61  ;;  %v6769_v4 = vadd.f32 %v6768_v49, %v6767_v0  ;;  %v4258_v61 = vshll.u32 %v9523_v44, 16 }
 0x39f   : > { %v9507_v51 = vadd.f32 %v6769_v4, %v6657_v58  ;;  %v6658_v56 = vpop.f32.mrb[136].mxu1 }
 0x3a0   : > { %v6659_v41 = vpop.f32.mrb[137].mxu1 }
 0x3a1   : > { %5303 = vmatmul.mubr.bf16.gmra.mrb[12].mxu0 %v9372_v25  ;;  %v6660_v37 = vadd.f32 %v6659_v41, %v6658_v56  ;;  %v6661_v11 = vpop.f32.mrb[138].mxu1  ;;  %v6770_v23 = vpop.f32.mrb[168].mxu0 }
 0x3a2   : > { %5310 = vmatprep.mubr.bf16.mxu0 %v9418_v8  ;;  %v6662_v62 = vpop.f32.mrb[139].mxu1  ;;  %v6771_v63 = vpop.f32.mrb[169].mxu0 }
 0x3a3   : > { %v6663_v46 = vadd.f32 %v6662_v62, %v6661_v11  ;;  %v6772_v16 = vadd.f32 %v6771_v63, %v6770_v23  ;;  %v6773_v31 = vpop.f32.mrb[170].mxu0  ;;  %v4260_v11 = vrot.slane %v4258_v61, 1 }
 0x3a4   : > { %5150 = vmatmul.mubr.bf16.gmra.mrb[240].mxu1 %v9403_v53  ;;  %v6774_v55 = vpop.f32.mrb[171].mxu0  ;;  %v4229_v53 = vrot.slane %v4227_v35, 1 }
 0x3a5   : > { %5157 = vmatprep.mubr.bf16.mxu1 %v9435_v27  ;;  %v9514_v33 = vadd.f32 %v6772_v16, %v6660_v37  ;;  %v6775_v25 = vadd.f32 %v6774_v55, %v6773_v31  ;;  %v4256_v37 = vor.u32 %v4255_v59, %v4251_v34 }
 0x3a7   : > { %v9519_v24 = vadd.f32 %v6775_v25, %v6663_v46  ;;  %v4261_v31 = vsel %vm1405_vm7, %v4256_v37, %v4260_v11 }
 0x3a8   : > { %v6664_v57 = vpop.f32.mrb[140].mxu1 }
 0x3a9   : > { %v6665_v26 = vpop.f32.mrb[141].mxu1  ;;  %5311 = vmatmul.mubr.bf16.gmra.mrb[16].mxu0 %v9389_v43  ;;  %v4230_v43 = vor.u32 %v4229_v53, %v4225_v9 }
 0x3aa   : > { %v6666_v39 = vadd.f32 %v6665_v26, %v6664_v57  ;;  %v6667_v5 = vpop.f32.mrb[142].mxu1  ;;  %5318 = vmatprep.mubr.bf16.mxu0 %v9430_v32 }
 0x3ab   : > { %v6668_v38 = vpop.f32.mrb[143].mxu1  ;;  %v4235_v6 = vsel %vm1405_vm7, %v4230_v43, %v4234_v50 }
 0x3ac   : > { %v6669_v12 = vadd.f32 %v6668_v38, %v6667_v5  ;;  %5158 = vmatmul.mubr.bf16.gmra.mrb[244].mxu1 %v9418_v8 }
 0x3ad   : > { %5165 = vmatprep.mubr.bf16.mxu1 %v9445_v40 }
 0x3af   : > { %v6776_v22 = vpop.f32.mrb[172].mxu0 }
 0x3b0   : > { %v6777_v28 = vpop.f32.mrb[173].mxu0 }
 0x3b1   : > { %5319 = vmatmul.mubr.bf16.gmra.mrb[20].mxu0 %v9406_v18  ;;  %v6670_v58 = vpop.f32.mrb[144].mxu1  ;;  %v6778_v8 = vadd.f32 %v6777_v28, %v6776_v22  ;;  %v6779_v0 = vpop.f32.mrb[174].mxu0  ;;  %v9537_v18 = vsel %vm1614_vm9, %v4237_v2, %v4238_v21 }
 0x3b2   : > { %5326 = vmatprep.mubr.bf16.mxu0 %v4235_v6  ;;  %v6671_v49 = vpop.f32.mrb[145].mxu1  ;;  %v6780_v4 = vpop.f32.mrb[175].mxu0 }
 0x3b3   : > { %v6672_v56 = vadd.f32 %v6671_v49, %v6670_v58  ;;  %v6673_v41 = vpop.f32.mrb[146].mxu1  ;;  %v9533_v62 = vadd.f32 %v6778_v8, %v6666_v39  ;;  %v6781_v23 = vadd.f32 %v6780_v4, %v6779_v0 }
 0x3b4   : > { %5166 = vmatmul.mubr.bf16.gmra.mrb[248].mxu1 %v9430_v32  ;;  %v6674_v46 = vpop.f32.mrb[147].mxu1 }
 0x3b5   : > { %5173 = vmatprep.mubr.bf16.mxu1 %v9537_v18  ;;  %v6675_v63 = vadd.f32 %v6674_v46, %v6673_v41  ;;  %v9540_v16 = vadd.f32 %v6781_v23, %v6669_v12 }
 0x3b9   : > { %5327 = vmatmul.mubr.bf16.gmra.mrb[24].mxu0 %v9437_v36 }
 0x3ba   : > { %5334 = vmatprep.mubr.bf16.mxu0 %v4261_v31 }
 0x3bc   : > { %v6782_v35 = vpop.f32.mrb[176].mxu0  ;;  %5174 = vmatmul.mubr.bf16.gmra.mrb[252].mxu1 %v4235_v6 }
 0x3bd   : > { %v6783_v55 = vpop.f32.mrb[177].mxu0  ;;  %7166 = vmatprep.mubr.bf16.mxu1 %v9160_v20 }
 0x3be   : > { %v6784_v32 = vadd.f32 %v6783_v55, %v6782_v35  ;;  %v6785_v25 = vpop.f32.mrb[178].mxu0 }
 0x3bf   : > { %v6786_v42 = vpop.f32.mrb[179].mxu0  ;;  %v6676_v57 = vpop.f32.mrb[148].mxu1 }
 0x3c0   : > { %v9545_v26 = vadd.f32 %v6784_v32, %v6672_v56  ;;  %v6787_v53 = vadd.f32 %v6786_v42, %v6785_v25  ;;  %v6677_v39 = vpop.f32.mrb[149].mxu1 }
 0x3c1   : > { %5335 = vmatmul.mubr.bf16.gmra.mrb[28].mxu0 %v9516_v19  ;;  %v6678_v5 = vadd.f32 %v6677_v39, %v6676_v57  ;;  %v6679_v38 = vpop.f32.mrb[150].mxu1 }
 0x3c2   : > { %v9548_v9 = vadd.f32 %v6787_v53, %v6675_v63  ;;  %v6680_v36 = vpop.f32.mrb[151].mxu1 }
 0x3c3   : > { %v6681_v14 = vadd.f32 %v6680_v36, %v6679_v38 }
 0x3c4   : > { %v6788_v12 = vpop.f32.mrb[180].mxu0  ;;  %7167 = vmatmul.mubr.bf16.vlgmr.msra.gmra.mrb[0].mxu1 %v9216_v13 }
 0x3c5   : > { %v6789_v20 = vpop.f32.mrb[181].mxu0  ;;  %7170 = vmatprep.mubr.bf16.mxu1 %v9262_v48 }
 0x3c6   : > { %v6790_v3 = vadd.f32 %v6789_v20, %v6788_v12  ;;  %v6791_v43 = vpop.f32.mrb[182].mxu0 }
 0x3c7   : > { %v6792_v50 = vpop.f32.mrb[183].mxu0  ;;  %v6682_v34 = vpop.f32.mrb[152].mxu1 }
 0x3c8   : > { %v9552_v59 = vadd.f32 %v6790_v3, %v6678_v5  ;;  %v6793_v61 = vadd.f32 %v6792_v50, %v6791_v43  ;;  %v6683_v22 = vpop.f32.mrb[153].mxu1 }
 0x3c9   : > { %v6684_v2 = vadd.f32 %v6683_v22, %v6682_v34  ;;  %v6685_v21 = vpop.f32.mrb[154].mxu1 }
 0x3ca   : > { %v9554_v6 = vadd.f32 %v6793_v61, %v6681_v14  ;;  %v6686_v28 = vpop.f32.mrb[155].mxu1 }
 0x3cb   : > { %v6687_v58 = vadd.f32 %v6686_v28, %v6685_v21 }
 0x3cc   : > { %v6794_v8 = vpop.f32.mrb[184].mxu0  ;;  %7171 = vmatmul.mubr.bf16.gmra.mrb[4].mxu1 %v9283_v60 }
 0x3cd   : > { %v6795_v13 = vpop.f32.mrb[185].mxu0  ;;  %7174 = vmatprep.mubr.bf16.mxu1 %v9316_v1 }
 0x3ce   : > { %v6796_v48 = vadd.f32 %v6795_v13, %v6794_v8  ;;  %v6797_v0 = vpop.f32.mrb[186].mxu0 }
 0x3cf   : > { %v6798_v49 = vpop.f32.mrb[187].mxu0  ;;  %v6688_v4 = vpop.f32.mrb[156].mxu1 }
 0x3d0   : > { %v9558_v56 = vadd.f32 %v6796_v48, %v6684_v2  ;;  %v6799_v41 = vadd.f32 %v6798_v49, %v6797_v0  ;;  %v6689_v37 = vpop.f32.mrb[157].mxu1 }
 0x3d1   : > { %v6690_v11 = vadd.f32 %v6689_v37, %v6688_v4  ;;  %v6691_v23 = vpop.f32.mrb[158].mxu1 }
 0x3d2   : > { %v9560_v46 = vadd.f32 %v6799_v41, %v6687_v58  ;;  %v6692_v63 = vpop.f32.mrb[159].mxu1 }
 0x3d3   : > { %v6693_v31 = vadd.f32 %v6692_v63, %v6691_v23 }
 0x3d4   : > { %v6800_v35 = vpop.f32.mrb[188].mxu0  ;;  %7175 = vmatmul.mubr.bf16.gmra.mrb[8].mxu1 %v9332_v54 }
 0x3d5   : > { %v6801_v60 = vpop.f32.mrb[189].mxu0  ;;  %7178 = vmatprep.mubr.bf16.mxu1 %v9347_v29 }
 0x3d6   : > { %v6802_v1 = vadd.f32 %v6801_v60, %v6800_v35  ;;  %v6803_v55 = vpop.f32.mrb[190].mxu0 }
 0x3d7   : > { %v6804_v32 = vpop.f32.mrb[191].mxu0  ;;  %v6694_v25 = vpop.f32.mrb[160].mxu1 }
 0x3d8   : > { %v9564_v42 = vadd.f32 %v6802_v1, %v6690_v11  ;;  %v6805_v57 = vadd.f32 %v6804_v32, %v6803_v55  ;;  %v6695_v53 = vpop.f32.mrb[161].mxu1 }
 0x3d9   : > { %v6696_v39 = vadd.f32 %v6695_v53, %v6694_v25  ;;  %v6697_v5 = vpop.f32.mrb[162].mxu1 }
 0x3da   : > { %v9566_v38 = vadd.f32 %v6805_v57, %v6693_v31  ;;  %v6698_v36 = vpop.f32.mrb[163].mxu1 }
 0x3db   : > { %v6699_v14 = vadd.f32 %v6698_v36, %v6697_v5 }
 0x3dc   : > { %v6806_v12 = vpop.f32.mrb[192].mxu0  ;;  %7179 = vmatmul.mubr.bf16.gmra.mrb[12].mxu1 %v9362_v52 }
 0x3dd   : > { %v6807_v54 = vpop.f32.mrb[193].mxu0  ;;  %7182 = vmatprep.mubr.bf16.mxu1 %v9377_v7 }
 0x3de   : > { %v6808_v29 = vadd.f32 %v6807_v54, %v6806_v12  ;;  %v6809_v20 = vpop.f32.mrb[194].mxu0  ;;  %v4263_v54 = vrot.slane %v9516_v19, 1 }
 0x3df   : > { %v6810_v3 = vpop.f32.mrb[195].mxu0  ;;  %v6700_v43 = vpop.f32.mrb[164].mxu1 }
 0x3e0   : > { %v9570_v50 = vadd.f32 %v6808_v29, %v6696_v39  ;;  %v6811_v34 = vadd.f32 %v6810_v3, %v6809_v20  ;;  %v6701_v61 = vpop.f32.mrb[165].mxu1 }
 0x3e1   : > { %v6702_v22 = vadd.f32 %v6701_v61, %v6700_v43  ;;  %v6703_v2 = vpop.f32.mrb[166].mxu1 }
 0x3e2   : > { %v9572_v21 = vadd.f32 %v6811_v34, %v6699_v14  ;;  %v6704_v28 = vpop.f32.mrb[167].mxu1 }
 0x3e3   : > { %v6705_v58 = vadd.f32 %v6704_v28, %v6703_v2 }
 0x3e4   : > { %v6812_v8 = vpop.f32.mrb[196].mxu0  ;;  %7183 = vmatmul.mubr.bf16.gmra.mrb[16].mxu1 %v9396_v45 }
 0x3e5   : > { %v6813_v52 = vpop.f32.mrb[197].mxu0  ;;  %7186 = vmatprep.mubr.bf16.mxu1 %v9411_v30 }
 0x3e6   : > { %v6814_v7 = vadd.f32 %v6813_v52, %v6812_v8  ;;  %v6815_v13 = vpop.f32.mrb[198].mxu0 }
 0x3e7   : > { %v6816_v48 = vpop.f32.mrb[199].mxu0  ;;  %v6706_v0 = vpop.f32.mrb[168].mxu1 }
 0x3e8   : > { %v9576_v49 = vadd.f32 %v6814_v7, %v6702_v22  ;;  %v6817_v4 = vadd.f32 %v6816_v48, %v6815_v13  ;;  %v6707_v41 = vpop.f32.mrb[169].mxu1 }
 0x3e9   : > { %v6708_v37 = vadd.f32 %v6707_v41, %v6706_v0  ;;  %v6709_v11 = vpop.f32.mrb[170].mxu1 }
 0x3ea   : > { %v9578_v23 = vadd.f32 %v6817_v4, %v6705_v58  ;;  %v6710_v63 = vpop.f32.mrb[171].mxu1 }
 0x3eb   : > { %v6711_v31 = vadd.f32 %v6710_v63, %v6709_v11 }
 0x3ec   : > { %v6818_v35 = vpop.f32.mrb[200].mxu0  ;;  %7187 = vmatmul.mubr.bf16.gmra.mrb[20].mxu1 %v9424_v17  ;;  %v4264_v17 = vrot.slane %v9523_v44, 1 }
 0x3ed   : > { %v6819_v45 = vpop.f32.mrb[201].mxu0  ;;  %7190 = vmatprep.mubr.bf16.mxu1 %v9435_v27 }
 0x3ee   : > { %v6820_v30 = vadd.f32 %v6819_v45, %v6818_v35  ;;  %v6821_v60 = vpop.f32.mrb[202].mxu0  ;;  %v4265_v58 = vsel %vm1614_vm9, %v4263_v54, %v4264_v17 }
 0x3ef   : > { %v6822_v1 = vpop.f32.mrb[203].mxu0  ;;  %v6712_v55 = vpop.f32.mrb[172].mxu1 }
 0x3f0   : > { %v9582_v32 = vadd.f32 %v6820_v30, %v6708_v37  ;;  %v6823_v25 = vadd.f32 %v6822_v1, %v6821_v60  ;;  %v6713_v57 = vpop.f32.mrb[173].mxu1 }
 0x3f1   : > { %v6714_v53 = vadd.f32 %v6713_v57, %v6712_v55  ;;  %v6715_v39 = vpop.f32.mrb[174].mxu1 }
 0x3f2   : > { %v9584_v5 = vadd.f32 %v6823_v25, %v6711_v31  ;;  %v6716_v36 = vpop.f32.mrb[175].mxu1 }
 0x3f3   : > { %v6717_v14 = vadd.f32 %v6716_v36, %v6715_v39 }
 0x3f4   : > { %v6824_v12 = vpop.f32.mrb[204].mxu0  ;;  %7191 = vmatmul.mubr.bf16.gmra.mrb[24].mxu1 %v9445_v40 }
 0x3f5   : > { %v6825_v27 = vpop.f32.mrb[205].mxu0  ;;  %7194 = vmatprep.mubr.bf16.mxu1 %v9537_v18 }
 0x3f6   : > { %v6826_v29 = vadd.f32 %v6825_v27, %v6824_v12  ;;  %v6827_v20 = vpop.f32.mrb[206].mxu0 }
 0x3f7   : > { %v6828_v3 = vpop.f32.mrb[207].mxu0  ;;  %v6718_v43 = vpop.f32.mrb[176].mxu1 }
 0x3f8   : > { %v9590_v34 = vadd.f32 %v6826_v29, %v6714_v53  ;;  %v6829_v61 = vadd.f32 %v6828_v3, %v6827_v20  ;;  %v6719_v22 = vpop.f32.mrb[177].mxu1 }
 0x3f9   : > { %v6720_v2 = vadd.f32 %v6719_v22, %v6718_v43  ;;  %v6721_v28 = vpop.f32.mrb[178].mxu1 }
 0x3fa   : > { %v9593_v40 = vadd.f32 %v6829_v61, %v6717_v14  ;;  %v6722_v44 = vpop.f32.mrb[179].mxu1 }
 0x3fb   : > { %v6723_v8 = vadd.f32 %v6722_v44, %v6721_v28 }
 0x3fc   : > { %v6830_v52 = vpop.f32.mrb[208].mxu0  ;;  %7195 = vmatmul.mubr.bf16.gmra.mrb[28].mxu1 %v4265_v58 }
 0x3fd   : > { %v6831_v18 = vpop.f32.mrb[209].mxu0 }
 0x3fe   : > { %v6832_v19 = vadd.f32 %v6831_v18, %v6830_v52  ;;  %v6833_v7 = vpop.f32.mrb[210].mxu0 }
 0x3ff   : > { %v6834_v13 = vpop.f32.mrb[211].mxu0  ;;  %v6724_v48 = vpop.f32.mrb[180].mxu1 }
 0x400   : > { %v9595_v0 = vadd.f32 %v6832_v19, %v6720_v2  ;;  %v6835_v4 = vadd.f32 %v6834_v13, %v6833_v7  ;;  %v6725_v41 = vpop.f32.mrb[181].mxu1 }
 0x401   : > { %v6726_v37 = vadd.f32 %v6725_v41, %v6724_v48  ;;  %v6727_v11 = vpop.f32.mrb[182].mxu1 }
 0x402   : > { %v9597_v63 = vadd.f32 %v6835_v4, %v6723_v8  ;;  %v6728_v31 = vpop.f32.mrb[183].mxu1 }
 0x403   : > { %v6729_v35 = vadd.f32 %v6728_v31, %v6727_v11 }
 0x404   : > { %v6836_v45 = vpop.f32.mrb[212].mxu0 }
 0x405   : > { %v6837_v30 = vpop.f32.mrb[213].mxu0 }
 0x406   : > { %v6838_v60 = vadd.f32 %v6837_v30, %v6836_v45  ;;  %v6839_v1 = vpop.f32.mrb[214].mxu0 }
 0x407   : > { %v6840_v55 = vpop.f32.mrb[215].mxu0  ;;  %v6730_v25 = vpop.f32.mrb[184].mxu1 }
 0x408   : > { %v9599_v57 = vadd.f32 %v6838_v60, %v6726_v37  ;;  %v6841_v53 = vadd.f32 %v6840_v55, %v6839_v1  ;;  %v6731_v39 = vpop.f32.mrb[185].mxu1 }
 0x409   : > { %v6732_v36 = vadd.f32 %v6731_v39, %v6730_v25  ;;  %v6733_v14 = vpop.f32.mrb[186].mxu1 }
 0x40a   : > { %v9601_v12 = vadd.f32 %v6841_v53, %v6729_v35  ;;  %v6734_v17 = vpop.f32.mrb[187].mxu1 }
 0x40b   : > { %v6735_v27 = vadd.f32 %v6734_v17, %v6733_v14 }
 0x40c   : > { %v6842_v54 = vpop.f32.mrb[216].mxu0 }
 0x40d   : > { %v6843_v29 = vpop.f32.mrb[217].mxu0 }
 0x40e   : > { %v6844_v20 = vadd.f32 %v6843_v29, %v6842_v54  ;;  %v6845_v3 = vpop.f32.mrb[218].mxu0 }
 0x40f   : > { %v6846_v43 = vpop.f32.mrb[219].mxu0  ;;  %v6736_v61 = vpop.f32.mrb[188].mxu1 }
 0x410   : > { %v9603_v22 = vadd.f32 %v6844_v20, %v6732_v36  ;;  %v6847_v2 = vadd.f32 %v6846_v43, %v6845_v3  ;;  %v6737_v28 = vpop.f32.mrb[189].mxu1 }
 0x411   : > { %v6738_v58 = vadd.f32 %v6737_v28, %v6736_v61  ;;  %v6739_v44 = vpop.f32.mrb[190].mxu1 }
 0x412   : > { %v9605_v8 = vadd.f32 %v6847_v2, %v6735_v27  ;;  %v6740_v52 = vpop.f32.mrb[191].mxu1 }
 0x413   : > { %v6741_v18 = vadd.f32 %v6740_v52, %v6739_v44 }
 0x414   : > { %v6848_v19 = vpop.f32.mrb[220].mxu0 }
 0x415   : > { %v6849_v7 = vpop.f32.mrb[221].mxu0 }
 0x416   : > { %v6850_v13 = vadd.f32 %v6849_v7, %v6848_v19  ;;  %v6851_v48 = vpop.f32.mrb[222].mxu0 }
 0x417   : > { %v6852_v4 = vpop.f32.mrb[223].mxu0  ;;  %v6870_v41 = vpop.f32.mrb[192].mxu1 }
 0x418   : > { %v9607_v37 = vadd.f32 %v6850_v13, %v6738_v58  ;;  %v6853_v11 = vadd.f32 %v6852_v4, %v6851_v48  ;;  %v6871_v31 = vpop.f32.mrb[193].mxu1 }
 0x419   : > { %v6872_v35 = vadd.f32 %v6871_v31, %v6870_v41  ;;  %v6873_v45 = vpop.f32.mrb[194].mxu1 }
 0x41a   : > { %v9609_v30 = vadd.f32 %v6853_v11, %v6741_v18  ;;  %v6874_v60 = vpop.f32.mrb[195].mxu1 }
 0x41b   : > { %v5056_v1 = vadd.f32 %v6872_v35, %v9480_v10  ;;  %v6875_v55 = vadd.f32 %v6874_v60, %v6873_v45 }
 0x41c   : > { %v6982_v25 = vpop.f32.mrb[224].mxu0 }
 0x41d   : > { %v6983_v53 = vpop.f32.mrb[225].mxu0  ;;  %v5059_v39 = vadd.f32 %v6875_v55, %v9483_v47 }
 0x41e   : > { %v6984_v36 = vadd.f32 %v6983_v53, %v6982_v25  ;;  %v6985_v14 = vpop.f32.mrb[226].mxu0 }
 0x41f   : > { %v6986_v17 = vpop.f32.mrb[227].mxu0  ;;  %v6876_v27 = vpop.f32.mrb[196].mxu1 }
 0x420   : > { %v6987_v54 = vadd.f32 %v6986_v17, %v6985_v14  ;;  %v6877_v29 = vpop.f32.mrb[197].mxu1  ;;  %v9613_v20 = vadd.f32 %v6984_v36, %v5056_v1 }
 0x421   : > { %v6878_v3 = vadd.f32 %v6877_v29, %v6876_v27  ;;  %v6879_v43 = vpop.f32.mrb[198].mxu1 }
 0x422   : > { %v6880_v61 = vpop.f32.mrb[199].mxu1  ;;  %v9615_v2 = vadd.f32 %v6987_v54, %v5059_v39 }
 0x423   : > { %v5064_v10 = vadd.f32 %v6878_v3, %v9505_v15  ;;  %v6881_v28 = vadd.f32 %v6880_v61, %v6879_v43 }
 0x424   : > { %v6988_v58 = vpop.f32.mrb[228].mxu0 }
 0x425   : > { %v6989_v44 = vpop.f32.mrb[229].mxu0  ;;  %v5067_v47 = vadd.f32 %v6881_v28, %v9507_v51 }
 0x426   : > { %v6990_v52 = vadd.f32 %v6989_v44, %v6988_v58  ;;  %v6991_v18 = vpop.f32.mrb[230].mxu0 }
 0x427   : > { %v6992_v19 = vpop.f32.mrb[231].mxu0  ;;  %v6882_v7 = vpop.f32.mrb[200].mxu1 }
 0x428   : > { %v6993_v13 = vadd.f32 %v6992_v19, %v6991_v18  ;;  %v6883_v48 = vpop.f32.mrb[201].mxu1  ;;  %v9619_v4 = vadd.f32 %v6990_v52, %v5064_v10 }
 0x429   : > { %v6884_v41 = vadd.f32 %v6883_v48, %v6882_v7  ;;  %v6885_v11 = vpop.f32.mrb[202].mxu1 }
 0x42a   : > { %v6886_v31 = vpop.f32.mrb[203].mxu1  ;;  %v9621_v35 = vadd.f32 %v6993_v13, %v5067_v47 }
 0x42b   : > { %v5072_v15 = vadd.f32 %v6884_v41, %v9514_v33  ;;  %v6887_v45 = vadd.f32 %v6886_v31, %v6885_v11 }
 0x42c   : > { %v6994_v60 = vpop.f32.mrb[232].mxu0 }
 0x42d   : > { %v6995_v1 = vpop.f32.mrb[233].mxu0  ;;  %v5075_v51 = vadd.f32 %v6887_v45, %v9519_v24 }
 0x42e   : > { %v6996_v55 = vadd.f32 %v6995_v1, %v6994_v60  ;;  %v6997_v25 = vpop.f32.mrb[234].mxu0 }
 0x42f   : > { %v6998_v53 = vpop.f32.mrb[235].mxu0  ;;  %v6888_v39 = vpop.f32.mrb[204].mxu1 }
 0x430   : > { %v6999_v36 = vadd.f32 %v6998_v53, %v6997_v25  ;;  %v6889_v14 = vpop.f32.mrb[205].mxu1  ;;  %v9625_v17 = vadd.f32 %v6996_v55, %v5072_v15 }
 0x431   : > { %v6890_v27 = vadd.f32 %v6889_v14, %v6888_v39  ;;  %v6891_v54 = vpop.f32.mrb[206].mxu1 }
 0x432   : > { %v6892_v29 = vpop.f32.mrb[207].mxu1  ;;  %v9627_v3 = vadd.f32 %v6999_v36, %v5075_v51 }
 0x433   : > { %v5080_v33 = vadd.f32 %v6890_v27, %v9533_v62  ;;  %v6893_v43 = vadd.f32 %v6892_v29, %v6891_v54 }
 0x434   : > { %v7000_v61 = vpop.f32.mrb[236].mxu0 }
 0x435   : > { %v7001_v10 = vpop.f32.mrb[237].mxu0  ;;  %v5083_v24 = vadd.f32 %v6893_v43, %v9540_v16 }
 0x436   : > { %v7002_v28 = vadd.f32 %v7001_v10, %v7000_v61  ;;  %v7003_v58 = vpop.f32.mrb[238].mxu0 }
 0x437   : > { %v7004_v44 = vpop.f32.mrb[239].mxu0  ;;  %v6894_v47 = vpop.f32.mrb[208].mxu1 }
 0x438   : > { %v7005_v52 = vadd.f32 %v7004_v44, %v7003_v58  ;;  %v6895_v18 = vpop.f32.mrb[209].mxu1  ;;  %v9631_v19 = vadd.f32 %v7002_v28, %v5080_v33 }
 0x439   : > { %v6896_v7 = vadd.f32 %v6895_v18, %v6894_v47  ;;  %v6897_v13 = vpop.f32.mrb[210].mxu1 }
 0x43a   : > { %v6898_v48 = vpop.f32.mrb[211].mxu1  ;;  %v9633_v41 = vadd.f32 %v7005_v52, %v5083_v24 }
 0x43b   : > { %v5088_v62 = vadd.f32 %v6896_v7, %v9545_v26  ;;  %v6899_v11 = vadd.f32 %v6898_v48, %v6897_v13 }
 0x43c   : > { %v7006_v31 = vpop.f32.mrb[240].mxu0 }
 0x43d   : > { %v7007_v15 = vpop.f32.mrb[241].mxu0  ;;  %v5091_v16 = vadd.f32 %v6899_v11, %v9548_v9 }
 0x43e   : > { %v7008_v45 = vadd.f32 %v7007_v15, %v7006_v31  ;;  %v7009_v60 = vpop.f32.mrb[242].mxu0 }
 0x43f   : > { %v7010_v1 = vpop.f32.mrb[243].mxu0  ;;  %v6900_v51 = vpop.f32.mrb[212].mxu1 }
 0x440   : > { %v7011_v55 = vadd.f32 %v7010_v1, %v7009_v60  ;;  %v6901_v25 = vpop.f32.mrb[213].mxu1  ;;  %v9637_v53 = vadd.f32 %v7008_v45, %v5088_v62 }
 0x441   : > { %v6902_v39 = vadd.f32 %v6901_v25, %v6900_v51  ;;  %v6903_v36 = vpop.f32.mrb[214].mxu1 }
 0x442   : > { %v6904_v14 = vpop.f32.mrb[215].mxu1  ;;  %v9639_v27 = vadd.f32 %v7011_v55, %v5091_v16 }
 0x443   : > { %v5096_v26 = vadd.f32 %v6902_v39, %v9552_v59  ;;  %v6905_v54 = vadd.f32 %v6904_v14, %v6903_v36 }
 0x444   : > { %v7012_v29 = vpop.f32.mrb[244].mxu0 }
 0x445   : > { %v7013_v33 = vpop.f32.mrb[245].mxu0  ;;  %v5099_v9 = vadd.f32 %v6905_v54, %v9554_v6 }
 0x446   : > { %v7014_v43 = vadd.f32 %v7013_v33, %v7012_v29  ;;  %v7015_v61 = vpop.f32.mrb[246].mxu0 }
 0x447   : > { %v7016_v10 = vpop.f32.mrb[247].mxu0  ;;  %v6906_v24 = vpop.f32.mrb[216].mxu1 }
 0x448   : > { %v7017_v28 = vadd.f32 %v7016_v10, %v7015_v61  ;;  %v6907_v58 = vpop.f32.mrb[217].mxu1  ;;  %v9643_v44 = vadd.f32 %v7014_v43, %v5096_v26 }
 0x449   : > { %v6908_v47 = vadd.f32 %v6907_v58, %v6906_v24  ;;  %v6909_v52 = vpop.f32.mrb[218].mxu1 }
 0x44a   : > { %v6910_v18 = vpop.f32.mrb[219].mxu1  ;;  %v9645_v7 = vadd.f32 %v7017_v28, %v5099_v9 }
 0x44b   : > { %v5104_v59 = vadd.f32 %v6908_v47, %v9558_v56  ;;  %v6911_v13 = vadd.f32 %v6910_v18, %v6909_v52 }
 0x44c   : > { %v7018_v48 = vpop.f32.mrb[248].mxu0 }
 0x44d   : > { %v7019_v62 = vpop.f32.mrb[249].mxu0  ;;  %v5107_v6 = vadd.f32 %v6911_v13, %v9560_v46 }
 0x44e   : > { %v7020_v11 = vadd.f32 %v7019_v62, %v7018_v48  ;;  %v7021_v31 = vpop.f32.mrb[250].mxu0 }
 0x44f   : > { %v7022_v15 = vpop.f32.mrb[251].mxu0  ;;  %v6912_v16 = vpop.f32.mrb[220].mxu1 }
 0x450   : > { %v7023_v45 = vadd.f32 %v7022_v15, %v7021_v31  ;;  %v6913_v60 = vpop.f32.mrb[221].mxu1  ;;  %v9649_v1 = vadd.f32 %v7020_v11, %v5104_v59 }
 0x451   : > { %v6914_v51 = vadd.f32 %v6913_v60, %v6912_v16  ;;  %v6915_v55 = vpop.f32.mrb[222].mxu1 }
 0x452   : > { %v6916_v25 = vpop.f32.mrb[223].mxu1  ;;  %v9651_v39 = vadd.f32 %v7023_v45, %v5107_v6 }
 0x453   : > { %v5112_v56 = vadd.f32 %v6914_v51, %v9564_v42  ;;  %v6917_v36 = vadd.f32 %v6916_v25, %v6915_v55 }
 0x454   : > { %v7024_v14 = vpop.f32.mrb[252].mxu0 }
 0x455   : > { %v7025_v26 = vpop.f32.mrb[253].mxu0  ;;  %v5115_v46 = vadd.f32 %v6917_v36, %v9566_v38 }
 0x456   : > { %v7026_v54 = vadd.f32 %v7025_v26, %v7024_v14  ;;  %v7027_v29 = vpop.f32.mrb[254].mxu0 }
 0x457   : > { %v7028_v33 = vpop.f32.mrb[255].mxu0  ;;  %v6918_v9 = vpop.f32.mrb[224].mxu1 }
 0x458   : > { %v7029_v43 = vadd.f32 %v7028_v33, %v7027_v29  ;;  %v6919_v61 = vpop.f32.mrb[225].mxu1  ;;  %v9655_v10 = vadd.f32 %v7026_v54, %v5112_v56 }
 0x459   : > { %v6920_v24 = vadd.f32 %v6919_v61, %v6918_v9  ;;  %v6921_v28 = vpop.f32.mrb[226].mxu1 }
 0x45a   : > { %v6922_v58 = vpop.f32.mrb[227].mxu1  ;;  %v9657_v47 = vadd.f32 %v7029_v43, %v5115_v46 }
 0x45b   : > { %v5120_v42 = vadd.f32 %v6920_v24, %v9570_v50  ;;  %v6923_v52 = vadd.f32 %v6922_v58, %v6921_v28 }
 0x45c   : > { %v7030_v18 = vpop.f32.mrb[0].mxu0 }
 0x45d   : > { %v7031_v59 = vpop.f32.mrb[1].mxu0  ;;  %v5123_v38 = vadd.f32 %v6923_v52, %v9572_v21 }
 0x45e   : > { %v7032_v13 = vadd.f32 %v7031_v59, %v7030_v18  ;;  %v7033_v48 = vpop.f32.mrb[2].mxu0 }
 0x45f   : > { %v7034_v62 = vpop.f32.mrb[3].mxu0  ;;  %v6924_v6 = vpop.f32.mrb[228].mxu1 }
 0x460   : > { %v7035_v11 = vadd.f32 %v7034_v62, %v7033_v48  ;;  %v6925_v31 = vpop.f32.mrb[229].mxu1  ;;  %v9661_v15 = vadd.f32 %v7032_v13, %v5120_v42 }
 0x461   : > { %v6926_v16 = vadd.f32 %v6925_v31, %v6924_v6  ;;  %v6927_v45 = vpop.f32.mrb[230].mxu1 }
 0x462   : > { %v6928_v60 = vpop.f32.mrb[231].mxu1  ;;  %v9663_v51 = vadd.f32 %v7035_v11, %v5123_v38 }
 0x463   : > { %v5128_v50 = vadd.f32 %v6926_v16, %v9576_v49  ;;  %v6929_v55 = vadd.f32 %v6928_v60, %v6927_v45 }
 0x464   : > { %v7036_v25 = vpop.f32.mrb[4].mxu0 }
 0x465   : > { %v7037_v56 = vpop.f32.mrb[5].mxu0  ;;  %v5131_v21 = vadd.f32 %v6929_v55, %v9578_v23 }
 0x466   : > { %v7038_v36 = vadd.f32 %v7037_v56, %v7036_v25  ;;  %v7039_v14 = vpop.f32.mrb[6].mxu0 }
 0x467   : > { %v7040_v26 = vpop.f32.mrb[7].mxu0  ;;  %v6930_v46 = vpop.f32.mrb[232].mxu1 }
 0x468   : > { %v7041_v54 = vadd.f32 %v7040_v26, %v7039_v14  ;;  %v6931_v29 = vpop.f32.mrb[233].mxu1  ;;  %v9667_v33 = vadd.f32 %v7038_v36, %v5128_v50 }
 0x469   : > { %v6932_v9 = vadd.f32 %v6931_v29, %v6930_v46  ;;  %v6933_v43 = vpop.f32.mrb[234].mxu1 }
 0x46a   : > { %v6934_v61 = vpop.f32.mrb[235].mxu1  ;;  %v9669_v24 = vadd.f32 %v7041_v54, %v5131_v21 }
 0x46b   : > { %v5136_v49 = vadd.f32 %v6932_v9, %v9582_v32  ;;  %v6935_v28 = vadd.f32 %v6934_v61, %v6933_v43 }
 0x46c   : > { %v7042_v58 = vpop.f32.mrb[8].mxu0 }
 0x46d   : > { %v7043_v42 = vpop.f32.mrb[9].mxu0  ;;  %v5139_v23 = vadd.f32 %v6935_v28, %v9584_v5 }
 0x46e   : > { %v7044_v52 = vadd.f32 %v7043_v42, %v7042_v58  ;;  %v7045_v18 = vpop.f32.mrb[10].mxu0 }
 0x46f   : > { %v7046_v59 = vpop.f32.mrb[11].mxu0  ;;  %v6936_v38 = vpop.f32.mrb[236].mxu1 }
 0x470   : > { %v7047_v13 = vadd.f32 %v7046_v59, %v7045_v18  ;;  %v6937_v48 = vpop.f32.mrb[237].mxu1  ;;  %v9673_v62 = vadd.f32 %v7044_v52, %v5136_v49 }
 0x471   : > { %v6938_v6 = vadd.f32 %v6937_v48, %v6936_v38  ;;  %v6939_v11 = vpop.f32.mrb[238].mxu1 }
 0x472   : > { %v6940_v31 = vpop.f32.mrb[239].mxu1  ;;  %v9675_v16 = vadd.f32 %v7047_v13, %v5139_v23 }
 0x473   : > { %v5144_v32 = vadd.f32 %v6938_v6, %v9590_v34  ;;  %v6941_v45 = vadd.f32 %v6940_v31, %v6939_v11 }
 0x474   : > { %v7048_v60 = vpop.f32.mrb[12].mxu0 }
 0x475   : > { %v7049_v50 = vpop.f32.mrb[13].mxu0  ;;  %v5147_v5 = vadd.f32 %v6941_v45, %v9593_v40 }
 0x476   : > { %v7050_v55 = vadd.f32 %v7049_v50, %v7048_v60  ;;  %v7051_v25 = vpop.f32.mrb[14].mxu0 }
 0x477   : > { %v7052_v56 = vpop.f32.mrb[15].mxu0  ;;  %v6942_v21 = vpop.f32.mrb[240].mxu1 }
 0x478   : > { %v7053_v36 = vadd.f32 %v7052_v56, %v7051_v25  ;;  %v6943_v14 = vpop.f32.mrb[241].mxu1  ;;  %v9679_v26 = vadd.f32 %v7050_v55, %v5144_v32 }
 0x479   : > { %v6944_v46 = vadd.f32 %v6943_v14, %v6942_v21  ;;  %v6945_v54 = vpop.f32.mrb[242].mxu1 }
 0x47a   : > { %v6946_v29 = vpop.f32.mrb[243].mxu1  ;;  %v9681_v9 = vadd.f32 %v7053_v36, %v5147_v5 }
 0x47b   : > { %v5152_v34 = vadd.f32 %v6944_v46, %v9595_v0  ;;  %v6947_v43 = vadd.f32 %v6946_v29, %v6945_v54 }
 0x47c   : > { %v7054_v61 = vpop.f32.mrb[16].mxu0 }
 0x47d   : > { %v7055_v49 = vpop.f32.mrb[17].mxu0  ;;  %v5155_v40 = vadd.f32 %v6947_v43, %v9597_v63 }
 0x47e   : > { %v7056_v28 = vadd.f32 %v7055_v49, %v7054_v61  ;;  %v7057_v58 = vpop.f32.mrb[18].mxu0 }
 0x47f   : > { %v7058_v42 = vpop.f32.mrb[19].mxu0  ;;  %v6948_v23 = vpop.f32.mrb[244].mxu1 }
 0x480   : > { %v7059_v52 = vadd.f32 %v7058_v42, %v7057_v58  ;;  %v6949_v18 = vpop.f32.mrb[245].mxu1  ;;  %v9685_v59 = vadd.f32 %v7056_v28, %v5152_v34 }
 0x481   : > { %v6950_v38 = vadd.f32 %v6949_v18, %v6948_v23  ;;  %v6951_v13 = vpop.f32.mrb[246].mxu1 }
 0x482   : > { %v6952_v48 = vpop.f32.mrb[247].mxu1  ;;  %v9687_v6 = vadd.f32 %v7059_v52, %v5155_v40 }
 0x483   : > { %v5160_v0 = vadd.f32 %v6950_v38, %v9599_v57  ;;  %v6953_v11 = vadd.f32 %v6952_v48, %v6951_v13 }
 0x484   : > { %v7060_v31 = vpop.f32.mrb[20].mxu0 }
 0x485   : > { %v7061_v32 = vpop.f32.mrb[21].mxu0  ;;  %v5163_v63 = vadd.f32 %v6953_v11, %v9601_v12 }
 0x486   : > { %v7062_v45 = vadd.f32 %v7061_v32, %v7060_v31  ;;  %v7063_v60 = vpop.f32.mrb[22].mxu0 }
 0x487   : > { %v7064_v50 = vpop.f32.mrb[23].mxu0  ;;  %v6954_v5 = vpop.f32.mrb[248].mxu1 }
 0x488   : > { %v7065_v55 = vadd.f32 %v7064_v50, %v7063_v60  ;;  %v6955_v25 = vpop.f32.mrb[249].mxu1  ;;  %v9691_v56 = vadd.f32 %v7062_v45, %v5160_v0 }
 0x489   : > { %v6956_v21 = vadd.f32 %v6955_v25, %v6954_v5  ;;  %v6957_v36 = vpop.f32.mrb[250].mxu1  ;;  %v9708_v25 = vld [vmem:[#allocation10 + $0x3] ss:$0 sm:$0xff] }
 0x48a   : > { %v6958_v14 = vpop.f32.mrb[251].mxu1  ;;  %v9693_v46 = vadd.f32 %v7065_v55, %v5163_v63  ;;  %v9703_v63 = vld [vmem:[#allocation10 + $0x2] ss:$0 sm:$0xff] }
 0x48b   : > { %v5168_v57 = vadd.f32 %v6956_v21, %v9603_v22  ;;  %v6959_v54 = vadd.f32 %v6958_v14, %v6957_v36 }
 0x48c   : > { %v7066_v29 = vpop.f32.mrb[24].mxu0 }
 0x48d   : > { %v7067_v34 = vpop.f32.mrb[25].mxu0  ;;  %v5171_v12 = vadd.f32 %v6959_v54, %v9605_v8 }
 0x48e   : > { %v7068_v43 = vadd.f32 %v7067_v34, %v7066_v29  ;;  %v7069_v61 = vpop.f32.mrb[26].mxu0 }
 0x48f   : > { %v7070_v49 = vpop.f32.mrb[27].mxu0  ;;  %v6960_v40 = vpop.f32.mrb[252].mxu1 }
 0x490   : > { %v7071_v28 = vadd.f32 %v7070_v49, %v7069_v61  ;;  %v6961_v58 = vpop.f32.mrb[253].mxu1  ;;  %v9697_v42 = vadd.f32 %v7068_v43, %v5168_v57  ;;  %v7510_v43 = vld [vmem:[%s7968_s26 + $0x10] sm:$0xff]  ;;  %v7511_v49 = vld [vmem:[%s7968_s26] sm:$0xff] }
 0x491   : > { %v6962_v23 = vadd.f32 %v6961_v58, %v6960_v40  ;;  %v6963_v52 = vpop.f32.mrb[254].mxu1 }
 0x492   : > { %v6964_v18 = vpop.f32.mrb[255].mxu1  ;;  %v9699_v38 = vadd.f32 %v7071_v28, %v5171_v12 }
 0x493   : > { %v5176_v22 = vadd.f32 %v6962_v23, %v9607_v37  ;;  %v6965_v13 = vadd.f32 %v6964_v18, %v6963_v52  ;;  %v7512_v23 = vld [vmem:[%s7968_s26 + $0x18] sm:$0xff] }
 0x494   : > { %v7072_v48 = vpop.f32.mrb[28].mxu0 }
 0x495   : > { %v5179_v0 = vadd.f32 %v6965_v13, %v9609_v30  ;;  %v7073_v8 = vpop.f32.mrb[29].mxu0 }
 0x496   : > { %v7074_v11 = vadd.f32 %v7073_v8, %v7072_v48  ;;  %v7075_v31 = vpop.f32.mrb[30].mxu0  ;;  %v7513_v48 = vld [vmem:[%s7968_s26 + $0x8] sm:$0xff] }
 0x497   : > { %v7076_v32 = vpop.f32.mrb[31].mxu0  ;;  %v7168_v45 = vpop.f32.mrb[0].mxu1 }
 0x498   : > { %v7077_v60 = vadd.f32 %v7076_v32, %v7075_v31  ;;  %v5386_v50 = vadd.f32 %v7168_v45, %v9619_v4  ;;  %v5377_v5 = vpop.f32.mrb[1].mxu1  ;;  %v9706_v55 = vadd.f32 %v7074_v11, %v5176_v22 }
 0x499   : > { %v5378_v37 = vadd.f32 %v5377_v5, %v9613_v20  ;;  %v7169_v30 = vpop.f32.mrb[2].mxu1 }
 0x49a   : > { %v5510_v21 = vmul.f32 %v9703_v63, %v5386_v50  ;;  %v5389_v36 = vadd.f32 %v7169_v30, %v9621_v35  ;;  %v5380_v14 = vpop.f32.mrb[3].mxu1  ;;  %v9713_v57 = vadd.f32 %v7077_v60, %v5179_v0 }
 0x49b   : > { %v5508_v4 = vmul.f32 %v9703_v63, %v5378_v37  ;;  %v5381_v54 = vadd.f32 %v5380_v14, %v9615_v2 }
 0x49c   : > { %v5546_v29 = vadd.f32 %v9708_v25, %v5510_v21  ;;  %v5511_v34 = vmul.f32 %v9703_v63, %v5389_v36 }
 0x49d   : > { %v5544_v20 = vadd.f32 %v9708_v25, %v5508_v4  ;;  %v5509_v12 = vmul.f32 %v9703_v63, %v5381_v54  ;;  %v7515_v4 = vld [vmem:[%s7968_s26 + $0x20] sm:$0xff] }
 0x49e   : > { %v5578_v61 = vadd.f32 %v7510_v43, %v5546_v29  ;;  %v5547_v35 = vadd.f32 %v9708_v25, %v5511_v34 }
 0x49f   : > { %v5576_v40 = vadd.f32 %v7511_v49, %v5544_v20  ;;  %v5545_v28 = vadd.f32 %v9708_v25, %v5509_v12  ;;  %v7172_v58 = vpop.f32.mrb[4].mxu1  ;;  %v7516_v20 = vld [vmem:[%s7968_s26 + $0x38] sm:$0xff]  ;;  %v7517_v49 = vld [vmem:[%s7968_s26 + $0x28] sm:$0xff] }
 0x4a0   : > { %v5610_v2 = vmax.f32 %v5578_v61, 0.0  ;;  %v5579_v52 = vadd.f32 %v7512_v23, %v5547_v35  ;;  %v5402_v18 = vadd.f32 %v7172_v58, %v9631_v19  ;;  %v5393_v22 = vpop.f32.mrb[5].mxu1 }
 0x4a1   : > { %v5608_v13 = vmax.f32 %v5576_v40, 0.0  ;;  %v5577_v0 = vadd.f32 %v7513_v48, %v5545_v28  ;;  %v5394_v8 = vadd.f32 %v5393_v22, %v9625_v17  ;;  %v7173_v11 = vpop.f32.mrb[6].mxu1 }
 0x4a2   : > { %5642 = vst [vmem:[%s9731_s21 + $0x10] sm:$0xff] %v5610_v2  ;;  %v5611_v31 = vmax.f32 %v5579_v52, 0.0  ;;  %v5514_v32 = vmul.f32 %v9703_v63, %v5402_v18  ;;  %v5405_v19 = vadd.f32 %v7173_v11, %v9633_v41  ;;  %v5396_v45 = vpop.f32.mrb[7].mxu1  ;;  %v7514_v41 = vld [vmem:[%s7968_s26 + $0x30] sm:$0xff] }
 0x4a3   : > { %5640 = vst [vmem:[%s9731_s21] sm:$0xff] %v5608_v13  ;;  %v5609_v60 = vmax.f32 %v5577_v0, 0.0  ;;  %v5512_v17 = vmul.f32 %v9703_v63, %v5394_v8  ;;  %v5397_v50 = vadd.f32 %v5396_v45, %v9627_v3 }
 0x4a4   : > { %5643 = vst [vmem:[%s9731_s21 + $0x18] sm:$0xff] %v5611_v31  ;;  %v5550_v5 = vadd.f32 %v9708_v25, %v5514_v32  ;;  %v5515_v37 = vmul.f32 %v9703_v63, %v5405_v19  ;;  %v7519_v32 = vld [vmem:[%s7968_s26 + $0x40] sm:$0xff] }
 0x4a5   : > { %5641 = vst [vmem:[%s9731_s21 + $0x8] sm:$0xff] %v5609_v60  ;;  %v5548_v30 = vadd.f32 %v9708_v25, %v5512_v17  ;;  %v5513_v21 = vmul.f32 %v9703_v63, %v5397_v50  ;;  %v7520_v17 = vld [vmem:[%s7968_s26 + $0x58] sm:$0xff] }
 0x4a6   : > { %v5582_v36 = vadd.f32 %v7514_v41, %v5550_v5  ;;  %v5551_v14 = vadd.f32 %v9708_v25, %v5515_v37 }
 0x4a7   : > { %v5580_v54 = vadd.f32 %v7515_v4, %v5548_v30  ;;  %v5549_v3 = vadd.f32 %v9708_v25, %v5513_v21  ;;  %v7176_v29 = vpop.f32.mrb[8].mxu1  ;;  %v7521_v21 = vld [vmem:[%s7968_s26 + $0x48] sm:$0xff] }
 0x4a8   : > { %v5614_v34 = vmax.f32 %v5582_v36, 0.0  ;;  %v5583_v12 = vadd.f32 %v7516_v20, %v5551_v14  ;;  %v5418_v43 = vadd.f32 %v7176_v29, %v9643_v44  ;;  %v5409_v61 = vpop.f32.mrb[9].mxu1 }
 0x4a9   : > { %v5612_v35 = vmax.f32 %v5580_v54, 0.0  ;;  %v5581_v40 = vadd.f32 %v7517_v49, %v5549_v3  ;;  %v5410_v28 = vadd.f32 %v5409_v61, %v9637_v53  ;;  %v7177_v58 = vpop.f32.mrb[10].mxu1 }
 0x4aa   : > { %5646 = vst [vmem:[%s9731_s21 + $0x30] sm:$0xff] %v5614_v34  ;;  %v5615_v2 = vmax.f32 %v5583_v12, 0.0  ;;  %v5518_v23 = vmul.f32 %v9703_v63, %v5418_v43  ;;  %v5421_v52 = vadd.f32 %v7177_v58, %v9645_v7  ;;  %v5412_v18 = vpop.f32.mrb[11].mxu1  ;;  %v7518_v7 = vld [vmem:[%s7968_s26 + $0x50] sm:$0xff] }
 0x4ab   : > { %5644 = vst [vmem:[%s9731_s21 + $0x20] sm:$0xff] %v5612_v35  ;;  %v5613_v44 = vmax.f32 %v5581_v40, 0.0  ;;  %v5516_v22 = vmul.f32 %v9703_v63, %v5410_v28  ;;  %v5413_v13 = vadd.f32 %v5412_v18, %v9639_v27  ;;  %v7523_v40 = vld [vmem:[%s7968_s26 + $0x60] sm:$0xff] }
 0x4ac   : > { %5647 = vst [vmem:[%s9731_s21 + $0x38] sm:$0xff] %v5615_v2  ;;  %v5554_v53 = vadd.f32 %v9708_v25, %v5518_v23  ;;  %v5519_v48 = vmul.f32 %v9703_v63, %v5421_v52  ;;  %v7524_v23 = vld [vmem:[%s7968_s26 + $0x78] sm:$0xff] }
 0x4ad   : > { %5645 = vst [vmem:[%s9731_s21 + $0x28] sm:$0xff] %v5613_v44  ;;  %v5552_v0 = vadd.f32 %v9708_v25, %v5516_v22  ;;  %v5517_v8 = vmul.f32 %v9703_v63, %v5413_v13  ;;  %v7525_v13 = vld [vmem:[%s7968_s26 + $0x68] sm:$0xff] }
 0x4ae   : > { %v5586_v11 = vadd.f32 %v7518_v7, %v5554_v53  ;;  %v5555_v31 = vadd.f32 %v9708_v25, %v5519_v48 }
 0x4af   : > { %v5584_v19 = vadd.f32 %v7519_v32, %v5552_v0  ;;  %v5553_v27 = vadd.f32 %v9708_v25, %v5517_v8  ;;  %v7180_v45 = vpop.f32.mrb[12].mxu1 }
 0x4b0   : > { %v5618_v60 = vmax.f32 %v5586_v11, 0.0  ;;  %v5587_v50 = vadd.f32 %v7520_v17, %v5555_v31  ;;  %v5434_v5 = vadd.f32 %v7180_v45, %v9655_v10  ;;  %v5425_v37 = vpop.f32.mrb[13].mxu1 }
 0x4b1   : > { %v5616_v30 = vmax.f32 %v5584_v19, 0.0  ;;  %v5585_v41 = vadd.f32 %v7521_v21, %v5553_v27  ;;  %v5426_v36 = vadd.f32 %v5425_v37, %v9649_v1  ;;  %v7181_v14 = vpop.f32.mrb[14].mxu1 }
 0x4b2   : > { %5650 = vst [vmem:[%s9731_s21 + $0x50] sm:$0xff] %v5618_v60  ;;  %v5619_v4 = vmax.f32 %v5587_v50, 0.0  ;;  %v5522_v54 = vmul.f32 %v9703_v63, %v5434_v5  ;;  %v5437_v3 = vadd.f32 %v7181_v14, %v9657_v47  ;;  %v5428_v29 = vpop.f32.mrb[15].mxu1  ;;  %v7522_v47 = vld [vmem:[%s7968_s26 + $0x70] sm:$0xff]  ;;  %v7527_v5 = vld [vmem:[%s7968_s26 + $0x80] sm:$0xff] }
 0x4b3   : > { %5648 = vst [vmem:[%s9731_s21 + $0x40] sm:$0xff] %v5616_v30  ;;  %v5617_v10 = vmax.f32 %v5585_v41, 0.0  ;;  %v5520_v34 = vmul.f32 %v9703_v63, %v5426_v36  ;;  %v5429_v20 = vadd.f32 %v5428_v29, %v9651_v39  ;;  %v7528_v41 = vld [vmem:[%s7968_s26 + $0x98] sm:$0xff] }
 0x4b4   : > { %5651 = vst [vmem:[%s9731_s21 + $0x58] sm:$0xff] %v5619_v4  ;;  %v5558_v1 = vadd.f32 %v9708_v25, %v5522_v54  ;;  %v5523_v12 = vmul.f32 %v9703_v63, %v5437_v3  ;;  %v7529_v3 = vld [vmem:[%s7968_s26 + $0x88] sm:$0xff] }
 0x4b5   : > { %5649 = vst [vmem:[%s9731_s21 + $0x48] sm:$0xff] %v5617_v10  ;;  %v5556_v43 = vadd.f32 %v9708_v25, %v5520_v34  ;;  %v5521_v61 = vmul.f32 %v9703_v63, %v5429_v20 }
 0x4b6   : > { %v5590_v35 = vadd.f32 %v7522_v47, %v5558_v1  ;;  %v5559_v49 = vadd.f32 %v9708_v25, %v5523_v12 }
 0x4b7   : > { %v5588_v28 = vadd.f32 %v7523_v40, %v5556_v43  ;;  %v5557_v39 = vadd.f32 %v9708_v25, %v5521_v61  ;;  %v7184_v58 = vpop.f32.mrb[16].mxu1 }
 0x4b8   : > { %v5622_v2 = vmax.f32 %v5590_v35, 0.0  ;;  %v5591_v52 = vadd.f32 %v7524_v23, %v5559_v49  ;;  %v5450_v18 = vadd.f32 %v7184_v58, %v9667_v33  ;;  %v5441_v44 = vpop.f32.mrb[17].mxu1  ;;  %v7531_v58 = vld [vmem:[%s7968_s26 + $0xa0] sm:$0xff] }
 0x4b9   : > { %v5620_v22 = vmax.f32 %v5588_v28, 0.0  ;;  %v5589_v53 = vadd.f32 %v7525_v13, %v5557_v39  ;;  %v5442_v48 = vadd.f32 %v5441_v44, %v9661_v15  ;;  %v7185_v0 = vpop.f32.mrb[18].mxu1 }
 0x4ba   : > { %5654 = vst [vmem:[%s9731_s21 + $0x70] sm:$0xff] %v5622_v2  ;;  %v5623_v8 = vmax.f32 %v5591_v52, 0.0  ;;  %v5526_v7 = vmul.f32 %v9703_v63, %v5450_v18  ;;  %v5453_v11 = vadd.f32 %v7185_v0, %v9669_v24  ;;  %v5444_v31 = vpop.f32.mrb[19].mxu1  ;;  %v7526_v24 = vld [vmem:[%s7968_s26 + $0x90] sm:$0xff]  ;;  %v7532_v18 = vld [vmem:[%s7968_s26 + $0xb8] sm:$0xff] }
 0x4bb   : > { %5652 = vst [vmem:[%s9731_s21 + $0x60] sm:$0xff] %v5620_v22  ;;  %v5621_v33 = vmax.f32 %v5589_v53, 0.0  ;;  %v5524_v32 = vmul.f32 %v9703_v63, %v5442_v48  ;;  %v5445_v19 = vadd.f32 %v5444_v31, %v9663_v51  ;;  %v7533_v48 = vld [vmem:[%s7968_s26 + $0xa8] sm:$0xff] }
 0x4bc   : > { %5655 = vst [vmem:[%s9731_s21 + $0x78] sm:$0xff] %v5623_v8  ;;  %v5562_v15 = vadd.f32 %v9708_v25, %v5526_v7  ;;  %v5527_v27 = vmul.f32 %v9703_v63, %v5453_v11 }
 0x4bd   : > { %5653 = vst [vmem:[%s9731_s21 + $0x68] sm:$0xff] %v5621_v33  ;;  %v5560_v45 = vadd.f32 %v9708_v25, %v5524_v32  ;;  %v5525_v60 = vmul.f32 %v9703_v63, %v5445_v19 }
 0x4be   : > { %v5594_v17 = vadd.f32 %v7526_v24, %v5562_v15  ;;  %v5563_v50 = vadd.f32 %v9708_v25, %v5527_v27 }
 0x4bf   : > { %v5592_v37 = vadd.f32 %v7527_v5, %v5560_v45  ;;  %v5561_v51 = vadd.f32 %v9708_v25, %v5525_v60  ;;  %v7188_v30 = vpop.f32.mrb[20].mxu1 }
 0x4c0   : > { %v5626_v21 = vmax.f32 %v5594_v17, 0.0  ;;  %v5595_v36 = vadd.f32 %v7528_v41, %v5563_v50  ;;  %v5466_v14 = vadd.f32 %v7188_v30, %v9679_v26  ;;  %v5457_v4 = vpop.f32.mrb[21].mxu1  ;;  %v7535_v50 = vld [vmem:[%s7968_s26 + $0xc0] sm:$0xff]  ;;  %v7536_v30 = vld [vmem:[%s7968_s26 + $0xd8] sm:$0xff] }
 0x4c1   : > { %v5624_v54 = vmax.f32 %v5592_v37, 0.0  ;;  %v5593_v29 = vadd.f32 %v7529_v3, %v5561_v51  ;;  %v5458_v10 = vadd.f32 %v5457_v4, %v9673_v62  ;;  %v7189_v34 = vpop.f32.mrb[22].mxu1  ;;  %v7537_v4 = vld [vmem:[%s7968_s26 + $0xc8] sm:$0xff] }
 0x4c2   : > { %5658 = vst [vmem:[%s9731_s21 + $0x90] sm:$0xff] %v5626_v21  ;;  %v5627_v20 = vmax.f32 %v5595_v36, 0.0  ;;  %v5530_v1 = vmul.f32 %v9703_v63, %v5466_v14  ;;  %v5469_v12 = vadd.f32 %v7189_v34, %v9681_v9  ;;  %v5460_v43 = vpop.f32.mrb[23].mxu1  ;;  %v7530_v9 = vld [vmem:[%s7968_s26 + $0xb0] sm:$0xff] }
 0x4c3   : > { %5656 = vst [vmem:[%s9731_s21 + $0x80] sm:$0xff] %v5624_v54  ;;  %v5625_v26 = vmax.f32 %v5593_v29, 0.0  ;;  %v5528_v61 = vmul.f32 %v9703_v63, %v5458_v10  ;;  %v5461_v47 = vadd.f32 %v5460_v43, %v9675_v16 }
 0x4c4   : > { %5659 = vst [vmem:[%s9731_s21 + $0x98] sm:$0xff] %v5627_v20  ;;  %v5566_v62 = vadd.f32 %v9708_v25, %v5530_v1  ;;  %v5531_v35 = vmul.f32 %v9703_v63, %v5469_v12 }
 0x4c5   : > { %5657 = vst [vmem:[%s9731_s21 + $0x88] sm:$0xff] %v5625_v26  ;;  %v5564_v49 = vadd.f32 %v9708_v25, %v5528_v61  ;;  %v5529_v40 = vmul.f32 %v9703_v63, %v5461_v47  ;;  %v7538_v47 = vld [vmem:[%s7968_s26 + $0xf0] sm:$0xff] }
 0x4c6   : > { %v5598_v28 = vadd.f32 %v7530_v9, %v5566_v62  ;;  %v5567_v39 = vadd.f32 %v9708_v25, %v5531_v35 }
 0x4c7   : > { %v5596_v2 = vadd.f32 %v7531_v58, %v5564_v49  ;;  %v5565_v16 = vadd.f32 %v9708_v25, %v5529_v40  ;;  %v7192_v23 = vpop.f32.mrb[24].mxu1  ;;  %v7539_v49 = vld [vmem:[%s7968_s26 + $0xe0] sm:$0xff] }
 0x4c8   : > { %v5630_v52 = vmax.f32 %v5598_v28, 0.0  ;;  %v5599_v44 = vadd.f32 %v7532_v18, %v5567_v39  ;;  %v5482_v22 = vadd.f32 %v7192_v23, %v9691_v56  ;;  %v5473_v13 = vpop.f32.mrb[25].mxu1  ;;  %v7540_v28 = vld [vmem:[%s7968_s26 + $0xf8] sm:$0xff] }
 0x4c9   : > { %v5628_v53 = vmax.f32 %v5596_v2, 0.0  ;;  %v5597_v0 = vadd.f32 %v7533_v48, %v5565_v16  ;;  %v5474_v8 = vadd.f32 %v5473_v13, %v9685_v59  ;;  %v7193_v7 = vpop.f32.mrb[26].mxu1 }
 0x4ca   : > { %5662 = vst [vmem:[%s9731_s21 + $0xb0] sm:$0xff] %v5630_v52  ;;  %v5631_v11 = vmax.f32 %v5599_v44, 0.0  ;;  %v5534_v31 = vmul.f32 %v9703_v63, %v5482_v22  ;;  %v5485_v33 = vadd.f32 %v7193_v7, %v9693_v46  ;;  %v5476_v32 = vpop.f32.mrb[27].mxu1  ;;  %v7534_v46 = vld [vmem:[%s7968_s26 + $0xd0] sm:$0xff] }
 0x4cb   : > { %5660 = vst [vmem:[%s9731_s21 + $0xa0] sm:$0xff] %v5628_v53  ;;  %v5629_v56 = vmax.f32 %v5597_v0, 0.0  ;;  %v5532_v19 = vmul.f32 %v9703_v63, %v5474_v8  ;;  %v5477_v15 = vadd.f32 %v5476_v32, %v9687_v6 }
 0x4cc   : > { %5663 = vst [vmem:[%s9731_s21 + $0xb8] sm:$0xff] %v5631_v11  ;;  %v5570_v59 = vadd.f32 %v9708_v25, %v5534_v31  ;;  %v5535_v27 = vmul.f32 %v9703_v63, %v5485_v33 }
 0x4cd   : > { %5661 = vst [vmem:[%s9731_s21 + $0xa8] sm:$0xff] %v5629_v56  ;;  %v5568_v45 = vadd.f32 %v9708_v25, %v5532_v19  ;;  %v5533_v60 = vmul.f32 %v9703_v63, %v5477_v15 }
 0x4ce   : > { %v5602_v24 = vadd.f32 %v7534_v46, %v5570_v59  ;;  %v5571_v17 = vadd.f32 %v9708_v25, %v5535_v27 }
 0x4cf   : > { %v5600_v5 = vadd.f32 %v7535_v50, %v5568_v45  ;;  %v5569_v6 = vadd.f32 %v9708_v25, %v5533_v60  ;;  %v7196_v37 = vpop.f32.mrb[28].mxu1 }
 0x4d0   : > { %v5634_v51 = vmax.f32 %v5602_v24, 0.0  ;;  %v5603_v21 = vadd.f32 %v7536_v30, %v5571_v17  ;;  %v5498_v41 = vadd.f32 %v7196_v37, %v9706_v55  ;;  %v5489_v36 = vpop.f32.mrb[29].mxu1 }
 0x4d1   : > { %v5632_v14 = vmax.f32 %v5600_v5, 0.0  ;;  %v5601_v54 = vadd.f32 %v7537_v4, %v5569_v6  ;;  %v5490_v3 = vadd.f32 %v5489_v36, %v9697_v42  ;;  %v7197_v29 = vpop.f32.mrb[30].mxu1 }
 0x4d2   : > { %5666 = vst [vmem:[%s9731_s21 + $0xd0] sm:$0xff] %v5634_v51  ;;  %v5635_v10 = vmax.f32 %v5603_v21, 0.0  ;;  %v5538_v34 = vmul.f32 %v9703_v63, %v5498_v41  ;;  %v5501_v20 = vadd.f32 %v7197_v29, %v9713_v57  ;;  %v5492_v1 = vpop.f32.mrb[31].mxu1 }
 0x4d3   : > { %5664 = vst [vmem:[%s9731_s21 + $0xc0] sm:$0xff] %v5632_v14  ;;  %v5633_v55 = vmax.f32 %v5601_v54, 0.0  ;;  %v5536_v12 = vmul.f32 %v9703_v63, %v5490_v3  ;;  %v5493_v43 = vadd.f32 %v5492_v1, %v9699_v38 }
 0x4d4   : > { %5667 = vst [vmem:[%s9731_s21 + $0xd8] sm:$0xff] %v5635_v10  ;;  %v5574_v42 = vadd.f32 %v9708_v25, %v5538_v34  ;;  %v5539_v26 = vmul.f32 %v9703_v63, %v5501_v20 }
 0x4d5   : > { %5665 = vst [vmem:[%s9731_s21 + $0xc8] sm:$0xff] %v5633_v55  ;;  %v5572_v61 = vadd.f32 %v9708_v25, %v5536_v12  ;;  %v5537_v57 = vmul.f32 %v9703_v63, %v5493_v43  ;;  %v7541_v63 = vld [vmem:[%s7968_s26 + $0xe8] sm:$0xff] }
 0x4d6   : > { %v5606_v62 = vadd.f32 %v7538_v47, %v5574_v42  ;;  %v5575_v35 = vadd.f32 %v9708_v25, %v5539_v26 }
 0x4d7   : > { %v5604_v38 = vadd.f32 %v7539_v49, %v5572_v61  ;;  %v5573_v40 = vadd.f32 %v9708_v25, %v5537_v57 }
 0x4d8   : > { %v5638_v9 = vmax.f32 %v5606_v62, 0.0  ;;  %v5607_v39 = vadd.f32 %v7540_v28, %v5575_v35 }
 0x4d9   : > { %v5636_v58 = vmax.f32 %v5604_v38, 0.0  ;;  %v5605_v2 = vadd.f32 %v7541_v63, %v5573_v40 }
 0x4da   : > { %5670 = vst [vmem:[%s9731_s21 + $0xf0] sm:$0xff] %v5638_v9  ;;  %v5639_v16 = vmax.f32 %v5607_v39, 0.0 }
 0x4db   : > { %5668 = vst [vmem:[%s9731_s21 + $0xe0] sm:$0xff] %v5636_v58  ;;  %v5637_v25 = vmax.f32 %v5605_v2, 0.0 }
 0x4dc   : > { %5671 = vst [vmem:[%s9731_s21 + $0xf8] sm:$0xff] %v5639_v16 }
 0x4dd   : > { %5669 = vst [vmem:[%s9731_s21 + $0xe8] sm:$0xff] %v5637_v25 }
 0x4de   : > { %7669 = shalt.err (!%p7666_p4)
}
 0x4df   : > { %s7670_s27 = scalar_lea.hbm %s9877_s8, 4096  ;;  %s7674_s14 = scalar_lea.hbm %s9930_s4, 8192 }
 0x4e0   : > { %p7671_p9 = scmp.ne.s32.totalorder %s9877_s8, %s7670_s27  ;;  %p7675_p8 = scmp.lt.u32.totalorder %s9877_s8, %s9930_s4 }
 0x4e1   : > { %p7676_p13 = scmp.lt.u32.totalorder %s7674_s14, %s7670_s27  ;;  %p7678_p10 = scmp.lt.u32.totalorder %s7670_s27, %s9877_s8 }
 0x4e2   : > { %p7672_p0 = pnand %p7671_p9, %p7914_p5 }
 0x4e3   : > { %p7677_p6 = por %p7676_p13, %p7675_p8 }
 0x4e4   : > { %p7673_p11 = pneg %p7672_p0 }
 0x4e5   : > { %p7679_p3 = por %p7678_p10, %p7677_p6 }
 0x4e7   : > { %p7680_p7 = pnand %p7679_p3, %p7673_p11 }
 0x4e9   : > { %7683 = shalt.err (!%p7680_p7)
}
 0x4ea   : > { %s7742_s21 = smov 128   ;;  %s7743_s23 = smov 8  }
 0x4eb   : > { %7212 = dma.vmem_to_hbm [thread:$0]  (%p7914_p5), %s9879_s29, 4096, %s9877_s8, %s5673_s19, %s7742_s21, %s7742_s21, %s7743_s23  }
 0x4ec PF: > { %s5701_s6 = sand.u32 1, %s7718_s15   ;;  %p9956_p12 = scmp.ne.s32.totalorder %s9935_s22, 0 }
 0x4ed   : > { %p9957_p2 = scmp.ge.s32.totalorder %s7730_s18, 2  ;;  %s5702_s7 = scalar_lea.sflag [#allocation6], %s5701_s6 }
 0x4ef   : > { %p7229_p1 = pnand %p9957_p2, %p9956_p12 }
 0x4f1   : > { %7713 = dma.done.wait (!%p7229_p1), %s5702_s7, 4096  }
 0x4f2   : > { %7715 = vsyncadd (!%p7229_p1), %s5702_s7, 4294963200  ;;  %p19_p4 = scmp.ge.s32.totalorder %s7900_s10, 4   ;;  %s9958_s15 = smov %s7722_s16 }
 0x4f3   : > { %s9959_s16 = smov %s7726_s17  ;;  %s9960_s17 = smov %s7910_s11 }
 0x4f4   : > { %s9961_s18 = smov %s7900_s10  ;;  %21 = sbr.rel (!%p19_p4) target bundleno = 7 (0x7), region = 97 }
 0x4fb   :  { %5707 = vsyncpa [#allocation5], 1 }
 0x4fc   :  { %5709 = vsyncpa [#allocation5 + $0x1], 1 }
 0x4fd   :  { %5710 = vsyncpa [#allocation8], 1 }
 0x4fe   :  { %5711 = vsyncpa [#allocation11], 1 }
 0x4ff   :  { %5712 = vsyncpa [#allocation6], 1 }
 0x500   :  { %5714 = vsyncpa [#allocation6 + $0x1], 1 }

</bundles_post_ra>
